<compile_context>
chip_gen: v7x
topology: tpu7x:2x2x1
jax: 0.10.0
libtpu: 0.0.40
codegen_flags: <defaults>
</compile_context>

<pallas_src>
import jax
import jax.numpy as jnp
from jax import lax
from jax.experimental import pallas as pl
from jax.experimental.pallas import tpu as pltpu

N, C_IN, H, W = 1, 160, 14, 14
C_OUT = 960
EPS = 1e-3

M_PIX = N * H * W          # 196 true pixels
M_PAD = 256                # padded pixel (lane) extent, multiple of 128
C_OUT_PAD = 1024           # padded output-channel extent
TN = 512                   # output-channel tile (4 x 128 lanes per TC on v7x)


def _fused_add_conv_bn_kernel(a_ref, b_ref, w_ref, gamma_ref, beta_ref, o_ref):
    # a_ref, b_ref : (C_IN, M_PAD)  f32 inputs (x236, x221), channels x pixels
    # w_ref        : (TN, C_IN)     bf16 1x1-conv weight tile
    # gamma_ref    : (TN, 1)        f32 BN scale tile
    # beta_ref     : (TN, 1)        f32 BN shift tile
    # o_ref        : (TN, M_PAD)    f32 output tile

    # elementwise add (VPU), cast to bf16 for a native-MXU matmul
    x = (a_ref[...] + b_ref[...]).astype(jnp.bfloat16)

    # 1x1 conv == W @ x on the MXU, f32 accumulator
    y = jnp.dot(w_ref[...], x, preferred_element_type=jnp.float32)  # (TN, M_PAD)

    # BatchNorm2d training-mode stats over the true N*H*W pixels.
    # Padded pixel columns of x are zero => corresponding y columns are zero,
    # so plain sums are exact; divide by the true count 196 (biased variance).
    inv_n = jnp.float32(1.0 / M_PIX)
    mean = jnp.sum(y, axis=-1, keepdims=True) * inv_n            # (TN, 1)
    mean_sq = jnp.sum(y * y, axis=-1, keepdims=True) * inv_n     # (TN, 1)
    var = jnp.maximum(mean_sq - mean * mean, 0.0)
    scale = lax.rsqrt(var + EPS) * gamma_ref[...]                # (TN, 1)

    o_ref[...] = (y - mean) * scale + beta_ref[...]


def fused_add_conv_bn(x236, x221, conv_w, gamma, beta):
    """x236, x221: (N, C_IN, H, W) NCHW float32.
       conv_w: (C_OUT, C_IN)  (PyTorch Conv2d weight squeezed of the 1x1 dims).
       gamma, beta: (C_OUT,)  BN affine parameters.
       Returns (N, C_OUT, H, W) float32."""
    # NCHW -> (C_IN, N*H*W): pure reshape (N == 1), then zero-pad pixels.
    a2d = jnp.pad(x236.reshape(C_IN, M_PIX), ((0, 0), (0, M_PAD - M_PIX)))
    b2d = jnp.pad(x221.reshape(C_IN, M_PIX), ((0, 0), (0, M_PAD - M_PIX)))

    # Weight already (C_OUT, C_IN); pad channels and ship as bf16.
    w = jnp.pad(conv_w, ((0, C_OUT_PAD - C_OUT), (0, 0))).astype(jnp.bfloat16)
    g = jnp.pad(gamma, (0, C_OUT_PAD - C_OUT),
                constant_values=1.0).reshape(C_OUT_PAD, 1)
    be = jnp.pad(beta, (0, C_OUT_PAD - C_OUT)).reshape(C_OUT_PAD, 1)

    out2d = pl.pallas_call(
        _fused_add_conv_bn_kernel,
        out_shape=jax.ShapeDtypeStruct((C_OUT_PAD, M_PAD), jnp.float32),
        grid=(C_OUT_PAD // TN,),
        in_specs=[
            pl.BlockSpec((C_IN, M_PAD), lambda j: (0, 0)),   # x236 (resident)
            pl.BlockSpec((C_IN, M_PAD), lambda j: (0, 0)),   # x221 (resident)
            pl.BlockSpec((TN, C_IN), lambda j: (j, 0)),      # weight tile
            pl.BlockSpec((TN, 1), lambda j: (j, 0)),         # gamma tile
            pl.BlockSpec((TN, 1), lambda j: (j, 0)),         # beta tile
        ],
        out_specs=pl.BlockSpec((TN, M_PAD), lambda j: (j, 0)),
        compiler_params=pltpu.CompilerParams(
            dimension_semantics=("parallel",)),
    )(a2d, b2d, w, g, be)

    # (C_OUT, N*H*W) -> NCHW: slice off padding, pure reshape (N == 1).
    return out2d[:C_OUT, :M_PIX].reshape(N, C_OUT, H, W)


if __name__ == "__main__":
    key = jax.random.PRNGKey(0)
    k1, k2, k3, k4, k5 = jax.random.split(key, 5)

    # deterministic synthetic inputs / parameters at the module's shapes
    x236 = jax.random.normal(k1, (N, C_IN, H, W), dtype=jnp.float32)
    x221 = jax.random.normal(k2, (N, C_IN, H, W), dtype=jnp.float32)
    conv_w = jax.random.normal(k3, (C_OUT, C_IN), dtype=jnp.float32) * 0.05
    gamma = 1.0 + 0.1 * jax.random.normal(k4, (C_OUT,), dtype=jnp.float32)
    beta = 0.1 * jax.random.normal(k5, (C_OUT,), dtype=jnp.float32)

    out = fused_add_conv_bn(x236, x221, conv_w, gamma, beta)
    jax.block_until_ready(out)

    assert out.shape == (N, C_OUT, H, W)
    assert out.dtype == jnp.float32
    print("KERNEL_OK")
</pallas_src>

<mosaic_0001>
module attributes {stable_mosaic.version = 11 : i64} {
  func.func @_fused_add_conv_bn_kernel(%arg0: i32, %arg1: memref<160x256xf32, #tpu.memory_space<vmem>>, %arg2: memref<160x256xf32, #tpu.memory_space<vmem>>, %arg3: memref<512x160xbf16, #tpu.memory_space<vmem>>, %arg4: memref<512x1xf32, #tpu.memory_space<vmem>>, %arg5: memref<512x1xf32, #tpu.memory_space<vmem>>, %arg6: memref<512x256xf32, #tpu.memory_space<vmem>>) attributes {dimension_semantics = [#tpu.dimension_semantics<parallel>], iteration_bounds = array<i64: 2>, scalar_prefetch = 0 : i64, scratch_operands = 0 : i64, tpu.core_type = #tpu.core_type<tc>, window_params = [{pipeline_mode = #tpu.pipeline_mode<synchronous>, transform_indices = @transform_0, window_bounds = array<i64: 160, 256>}, {pipeline_mode = #tpu.pipeline_mode<synchronous>, transform_indices = @transform_1, window_bounds = array<i64: 160, 256>}, {transform_indices = @transform_2, window_bounds = array<i64: 512, 160>}, {transform_indices = @transform_3, window_bounds = array<i64: 512, 1>}, {transform_indices = @transform_4, window_bounds = array<i64: 512, 1>}, {transform_indices = @transform_5, window_bounds = array<i64: 512, 256>}]} {
    %c0 = arith.constant 0 : index
    %c0_0 = arith.constant 0 : index
    %0 = vector.load %arg1[%c0, %c0_0] : memref<160x256xf32, #tpu.memory_space<vmem>>, vector<160x256xf32>
    %c0_1 = arith.constant 0 : index
    %c0_2 = arith.constant 0 : index
    %1 = vector.load %arg2[%c0_1, %c0_2] : memref<160x256xf32, #tpu.memory_space<vmem>>, vector<160x256xf32>
    %2 = arith.addf %0, %1 : vector<160x256xf32>
    %3 = arith.truncf %2 : vector<160x256xf32> to vector<160x256xbf16>
    %c0_3 = arith.constant 0 : index
    %c0_4 = arith.constant 0 : index
    %4 = vector.load %arg3[%c0_3, %c0_4] : memref<512x160xbf16, #tpu.memory_space<vmem>>, vector<512x160xbf16>
    %cst = arith.constant dense<0.000000e+00> : vector<512x256xf32>
    %5 = tpu.matmul %4, %3, %cst {dimension_numbers = #tpu.dot_dimension_numbers<[1], [0], [0], [1], [0, 0, 1, 1], [], []>} : vector<512x160xbf16>, vector<160x256xbf16>, vector<512x256xf32> -> vector<512x256xf32>
    %cst_5 = arith.constant dense<0.000000e+00> : vector<512xf32>
    %6 = vector.multi_reduction <add>, %5, %cst_5 [1] : vector<512x256xf32> to vector<512xf32>
    %7 = vector.shape_cast %6 : vector<512xf32> to vector<512x1xf32>
    %cst_6 = arith.constant 0.00510204071 : f32
    %8 = vector.broadcast %cst_6 : f32 to vector<512x1xf32>
    %9 = arith.mulf %7, %8 : vector<512x1xf32>
    %10 = arith.mulf %5, %5 : vector<512x256xf32>
    %cst_7 = arith.constant dense<0.000000e+00> : vector<512xf32>
    %11 = vector.multi_reduction <add>, %10, %cst_7 [1] : vector<512x256xf32> to vector<512xf32>
    %12 = vector.shape_cast %11 : vector<512xf32> to vector<512x1xf32>
    %cst_8 = arith.constant 0.00510204071 : f32
    %13 = vector.broadcast %cst_8 : f32 to vector<512x1xf32>
    %14 = arith.mulf %12, %13 : vector<512x1xf32>
    %15 = arith.mulf %9, %9 : vector<512x1xf32>
    %16 = arith.subf %14, %15 : vector<512x1xf32>
    %cst_9 = arith.constant 0.000000e+00 : f32
    %17 = vector.broadcast %cst_9 : f32 to vector<512x1xf32>
    %18 = arith.maximumf %16, %17 : vector<512x1xf32>
    %cst_10 = arith.constant 1.000000e-03 : f32
    %19 = vector.broadcast %cst_10 : f32 to vector<512x1xf32>
    %20 = arith.addf %18, %19 : vector<512x1xf32>
    %21 = math.rsqrt %20 : vector<512x1xf32>
    %c0_11 = arith.constant 0 : index
    %c0_12 = arith.constant 0 : index
    %22 = vector.load %arg4[%c0_11, %c0_12] : memref<512x1xf32, #tpu.memory_space<vmem>>, vector<512x1xf32>
    %23 = arith.mulf %21, %22 : vector<512x1xf32>
    %24 = vector.broadcast %9 : vector<512x1xf32> to vector<512x256xf32>
    %25 = arith.subf %5, %24 : vector<512x256xf32>
    %26 = vector.broadcast %23 : vector<512x1xf32> to vector<512x256xf32>
    %27 = arith.mulf %25, %26 : vector<512x256xf32>
    %c0_13 = arith.constant 0 : index
    %c0_14 = arith.constant 0 : index
    %28 = vector.load %arg5[%c0_13, %c0_14] : memref<512x1xf32, #tpu.memory_space<vmem>>, vector<512x1xf32>
    %29 = vector.broadcast %28 : vector<512x1xf32> to vector<512x256xf32>
    %30 = arith.addf %27, %29 : vector<512x256xf32>
    %c0_15 = arith.constant 0 : index
    %c0_16 = arith.constant 0 : index
    %31 = vector.load %arg6[%c0_15, %c0_16] : memref<512x256xf32, #tpu.memory_space<vmem>>, vector<512x256xf32>
    tpu.vector_store %arg6[%c0_15, %c0_16], %30 {strides = array<i32>} : memref<512x256xf32, #tpu.memory_space<vmem>>, vector<512x256xf32>,
    return
  }
  func.func @transform_0(%arg0: i32) -> (i32, i32) {
    %c0_i32 = arith.constant 0 : i32
    %c0_i32_0 = arith.constant 0 : i32
    %c0_i32_1 = arith.constant 0 : i32
    return %c0_i32, %c0_i32_0 : i32, i32
  }
  func.func @transform_1(%arg0: i32) -> (i32, i32) {
    %c0_i32 = arith.constant 0 : i32
    %c0_i32_0 = arith.constant 0 : i32
    %c0_i32_1 = arith.constant 0 : i32
    return %c0_i32, %c0_i32_0 : i32, i32
  }
  func.func @transform_2(%arg0: i32) -> (i32, i32) {
    %c0_i32 = arith.constant 0 : i32
    %c0_i32_0 = arith.constant 0 : i32
    return %arg0, %c0_i32 : i32, i32
  }
  func.func @transform_3(%arg0: i32) -> (i32, i32) {
    %c0_i32 = arith.constant 0 : i32
    %c0_i32_0 = arith.constant 0 : i32
    return %arg0, %c0_i32 : i32, i32
  }
  func.func @transform_4(%arg0: i32) -> (i32, i32) {
    %c0_i32 = arith.constant 0 : i32
    %c0_i32_0 = arith.constant 0 : i32
    return %arg0, %c0_i32 : i32, i32
  }
  func.func @transform_5(%arg0: i32) -> (i32, i32) {
    %c0_i32 = arith.constant 0 : i32
    %c0_i32_0 = arith.constant 0 : i32
    return %arg0, %c0_i32 : i32, i32
  }
}

</mosaic_0001>

<bundles_post_ra>
// kernel: tpu_custom_call.1
= control target key start
LH: loop header
LB: loop body
LE: loop exit
PB: predicated region body
PF: predicated region fallthrough
CT: control target
= control target key end

     0   :  { %10 = vsyncpa [#allocation3], 0  ;;  %s7187_s0 = inlined_call_operand.vmem [shape: f32[160,256], index: 0, kind: input, shape index: {}]   ;;  %s7188_s1 = inlined_call_operand.vmem [shape: f32[160,256], index: 1, kind: input, shape index: {}]   ;;  %s7189_s2 = inlined_call_operand.vmem [shape: bf16[1024,160], index: 2, kind: input, shape index: {}]   ;;  %s7190_s3 = inlined_call_operand.vmem [shape: f32[1024,1], index: 3, kind: input, shape index: {}]   ;;  %s7191_s4 = inlined_call_operand.vmem [shape: f32[1024,1], index: 4, kind: input, shape index: {}]   ;;  %s7192_s5 = inlined_call_operand.hbm [shape: f32[1024,256], index: 5, kind: output, shape index: {}]  }
   0x1   :  { %12 = vsyncpa [#allocation3 + $0x1], 0  ;;  %s4124_s18 = smov 0   ;;  %s4126_s19 = smov 0  }
   0x2   :  { %s4128_s20 = smov 0   ;;  %s4130_s21 = smov 0  }
   0x3 LB: > { %s4145_s22 = sadd.s32 4294967295, %s4088_s21   ;;  %s3621_s23 = sadd.s32 4294967294, %s4088_s21   ;;  %s4088_s21 = sphi %s4130_s21, %s8345_s21   ;;  %s4084_s20 = sphi %s4128_s20, %s8344_s20   ;;  %s4080_s19 = sphi %s4126_s19, %s8343_s19   ;;  %s4076_s18 = sphi %s4124_s18, %s8342_s18  }
   0x4   : > { %s4149_s24 = sadd.s32 1, %s4088_s21   ;;  %s145_s25 = sadd.s32 1, %s4084_s20 }
   0x5   : > { %s142_s26 = ssub.s32 %s4088_s21, %s4149_s24  ;;  %p155_p0 = scmp.ne.s32.totalorder %s4084_s20, %s4080_s19 }
   0x6   : > { %p143_p1 = scmp.eq.s32.totalorder %s142_s26, 0  ;;  %p156_p2 = scmp.eq.s32.totalorder %s4145_s22, 1 }
   0x7   : > { %p161_p3 = scmp.ne.s32.totalorder %s4080_s19, %s4076_s18  ;;  %p162_p4 = scmp.eq.s32.totalorder %s3621_s23, 1 }
   0x8   : > { %s4160_s27 = scalar_select %p143_p1, %s4084_s20, %s145_s25  }
   0x9   : > { %p4162_p5 = por %p156_p2, %p155_p0  ;;  %p4166_p6 = por %p162_p4, %p161_p3 }
   0xa   : > { %p3624_p7 = scmp.ge.s32.totalorder %s4088_s21, 1  ;;  %p214_p8 = scmp.lt.s32.totalorder %s4088_s21, 3 }
   0xc   : > { %p215_p9 = pnand %p3624_p7, %p214_p8 }
   0xe   : > { %218 = sbr.rel (%p215_p9) target bundleno = 850 (0x352), region = 40 }
  0x15   : > { %v275_v0 = vld [vmem:[%s7187_s0 + $0x8] sm:$0xff]  ;;  %v277_v1 = vld [vmem:[%s7187_s0 + $0x18] sm:$0xff]  ;;  %s3626_s11 = sshll.u32 %s4145_s22, 6  ;;  %v274_v5 = vld [vmem:[%s7187_s0] sm:$0xff]  ;;  %v4090_v7 = vmov 0   ;;  %vm766_vm0 = vcmask 261120  }
  0x16   : > { %v315_v2 = vld [vmem:[%s7188_s1 + $0x8] sm:$0xff]  ;;  %v317_v3 = vld [vmem:[%s7188_s1 + $0x18] sm:$0xff]  ;;  %v276_v6 = vld [vmem:[%s7187_s0 + $0x10] sm:$0xff]  ;;  %3801 = vset.pattern.permute.xlu0 %v4090_v7  ;;  %3800 = vset.pattern.permute.xlu1 %v4090_v7  ;;  %p254_p10 = scmp.lt.s32.totalorder %s3626_s11, 127  ;;  %s4091_s12 = smov [#allocation2]  }
  0x17   : > { %v355_v4 = vadd.f32 %v315_v2, %v275_v0  ;;  %v357_v8 = vadd.f32 %v317_v3, %v277_v1  ;;  %v314_v9 = vld [vmem:[%s7188_s1] sm:$0xff]  ;;  %v316_v10 = vld [vmem:[%s7188_s1 + $0x10] sm:$0xff]  ;;  %v279_v11 = vld [vmem:[%s7187_s0 + $0x28] sm:$0xff]  ;;  %s4030_s13 = sshll.u32 %s4091_s12, 4  ;;  %s4031_s13 = int_to_ptr.vmem [resolvable:$false] %s4030_s13 }
  0x18   : > { %v354_v12 = vadd.f32 %v314_v9, %v274_v5  ;;  %v356_v13 = vadd.f32 %v316_v10, %v276_v6  ;;  %s8347_s11 = smov (!%p254_p10, %s3626_s11), 127  ;;  %v281_v14 = vld [vmem:[%s7187_s0 + $0x38] sm:$0xff]  ;;  %v319_v15 = vld [vmem:[%s7188_s1 + $0x28] sm:$0xff]  ;;  %v278_v20 = vld [vmem:[%s7187_s0 + $0x20] sm:$0xff]  ;;  %s4032_s14 = scalar_lea.vmem %s4031_s13, 32768 }
  0x19   : > { %v321_v16 = vld [vmem:[%s7188_s1 + $0x38] sm:$0xff]  ;;  %v395_v17 = vpack.c.bf16 %v357_v8, %v355_v4  ;;  %v359_v18 = vadd.f32 %v319_v15, %v279_v11  ;;  %v280_v21 = vld [vmem:[%s7187_s0 + $0x30] sm:$0xff]  ;;  %v318_v22 = vld [vmem:[%s7188_s1 + $0x20] sm:$0xff]  ;;  %s4218_s30 = sshll.u32 %s8347_s11, 3 }
  0x1a   : > { %v361_v19 = vadd.f32 %v321_v16, %v281_v14  ;;  %v394_v23 = vpack.c.bf16 %v356_v13, %v354_v12  ;;  %v320_v24 = vld [vmem:[%s7188_s1 + $0x30] sm:$0xff]  ;;  %v358_v25 = vadd.f32 %v318_v22, %v278_v20  ;;  %v283_v26 = vld [vmem:[%s7187_s0 + $0x48] sm:$0xff]  ;;  %v285_v27 = vld [vmem:[%s7187_s0 + $0x58] sm:$0xff]  ;;  %s4233_s11 = scalar_lea.vmem %s7191_s4, %s4218_s30  ;;  %s4431_s8 = scalar_lea.vmem %s7189_s2, %s4218_s30 }
  0x1b   : > { %863 = vmatprep.subr.bf16.mxu0 %v395_v17  ;;  %3738 = vmatprep.subr.bf16.mxu1 %v395_v17  ;;  %v360_v29 = vadd.f32 %v320_v24, %v280_v21  ;;  %v323_v30 = vld [vmem:[%s7188_s1 + $0x48] sm:$0xff]  ;;  %v325_v31 = vld [vmem:[%s7188_s1 + $0x58] sm:$0xff]  ;;  %v282_v32 = vld [vmem:[%s7187_s0 + $0x40] sm:$0xff]  ;;  %s6037_s23 = scalar_lea.vmem %s7190_s3, %s4218_s30  ;;  %s250_s30 = sand.u32 1, %s4080_s19  }
  0x1c   : > { %v397_v28 = vpack.c.bf16 %v361_v19, %v359_v18  ;;  %864 = vmatpush1.bf16.msra.mxu0 %v394_v23  ;;  %3748 = vmatpush1.bf16.msra.mxu1 %v394_v23  ;;  %v2881_v33 = vld [vmem:[%s4233_s11 + $0x8] sm:$0xff]  ;;  %v2880_v34 = vld [vmem:[%s4233_s11] sm:$0xff]  ;;  %v363_v35 = vadd.f32 %v323_v30, %v283_v26  ;;  %v365_v36 = vadd.f32 %v325_v31, %v285_v27  ;;  %v284_v38 = vld [vmem:[%s7187_s0 + $0x50] sm:$0xff]  ;;  %s3625_s25 = sshll.u32 %s250_s30, 10 }
  0x1d   : > { %2951 = vperm.xlu0 %3801, %v2881_v33   ;;  %2946 = vperm.xlu1 %3800, %v2880_v34   ;;  %v396_v37 = vpack.c.bf16 %v360_v29, %v358_v25  ;;  %v322_v39 = vld [vmem:[%s7188_s1 + $0x40] sm:$0xff]  ;;  %v2883_v40 = vld [vmem:[%s4233_s11 + $0x18] sm:$0xff]  ;;  %v2882_v41 = vld [vmem:[%s4233_s11 + $0x10] sm:$0xff]  ;;  %s6505_s26 = scalar_lea.vmem [#allocation2], %s3625_s25 }
  0x1e   : > { %865 = vmatprep.subr.bf16.mxu0 %v397_v28  ;;  %3739 = vmatprep.subr.bf16.mxu1 %v397_v28  ;;  %v399_v42 = vpack.c.bf16 %v365_v36, %v363_v35  ;;  %v324_v43 = vld [vmem:[%s7188_s1 + $0x50] sm:$0xff]  ;;  %v362_v44 = vadd.f32 %v322_v39, %v282_v32  ;;  %v287_v46 = vld [vmem:[%s7187_s0 + $0x68] sm:$0xff]  ;;  %v289_v47 = vld [vmem:[%s7187_s0 + $0x78] sm:$0xff]  ;;  %s3535_s6 = sshll.u32 %s6505_s26, 4  ;;  %s7138_s6 = int_to_ptr.vmem [resolvable:$true] %s3535_s6 }
  0x1f   : > { %v364_v45 = vadd.f32 %v324_v43, %v284_v38  ;;  %v327_v48 = vld [vmem:[%s7188_s1 + $0x68] sm:$0xff]  ;;  %v329_v49 = vld [vmem:[%s7188_s1 + $0x78] sm:$0xff]  ;;  %v286_v51 = vld [vmem:[%s7187_s0 + $0x60] sm:$0xff]  ;;  %s4026_s10 = scalar_lea.vmem %s7138_s6, 16384  ;;  %p4033_p0 = scmp.lt.s32.totalorder %s7138_s6, %s4031_s13 }
  0x20   : > { %866 = vmatpush1.bf16.msra.mxu0 %v396_v37  ;;  %3749 = vmatpush1.bf16.msra.mxu1 %v396_v37  ;;  %v367_v50 = vadd.f32 %v327_v48, %v287_v46  ;;  %v288_v52 = vld [vmem:[%s7187_s0 + $0x70] sm:$0xff]  ;;  %v2885_v54 = vld [vmem:[%s4233_s11 + $0x28] sm:$0xff]  ;;  %v369_v55 = vadd.f32 %v329_v49, %v289_v47  ;;  %v326_v56 = vld [vmem:[%s7188_s1 + $0x60] sm:$0xff]  ;;  %p4027_p11 = scmp.ne.s32.totalorder %s7138_s6, %s4026_s10  ;;  %p4034_p1 = scmp.lt.s32.totalorder %s4032_s14, %s4026_s10 }
  0x21   : > { %2961 = vperm.xlu0 %3801, %v2883_v40   ;;  %2956 = vperm.xlu1 %3800, %v2882_v41   ;;  %v398_v53 = vpack.c.bf16 %v364_v45, %v362_v44  ;;  %v328_v57 = vld [vmem:[%s7188_s1 + $0x70] sm:$0xff]  ;;  %v2884_v58 = vld [vmem:[%s4233_s11 + $0x20] sm:$0xff]  ;;  %v366_v59 = vadd.f32 %v326_v56, %v286_v51  ;;  %v291_v61 = vld [vmem:[%s7187_s0 + $0x88] sm:$0xff] }
  0x22   : > { %867 = vmatprep.subr.bf16.mxu0 %v399_v42  ;;  %3740 = vmatprep.subr.bf16.mxu1 %v399_v42  ;;  %v368_v60 = vadd.f32 %v328_v57, %v288_v52  ;;  %v293_v62 = vld [vmem:[%s7187_s0 + $0x98] sm:$0xff]  ;;  %v401_v63 = vpack.c.bf16 %v369_v55, %v367_v50  ;;  %v331_v0 = vld [vmem:[%s7188_s1 + $0x88] sm:$0xff]  ;;  %v290_v2 = vld [vmem:[%s7187_s0 + $0x80] sm:$0xff]  ;;  %p4028_p12 = pnand %p4027_p11, %p4162_p5  ;;  %p4035_p2 = por %p4034_p1, %p4033_p0 }
  0x23   : > { %v333_v1 = vld [vmem:[%s7188_s1 + $0x98] sm:$0xff]  ;;  %v371_v4 = vadd.f32 %v331_v0, %v291_v61  ;;  %v292_v6 = vld [vmem:[%s7187_s0 + $0x90] sm:$0xff]  ;;  %v330_v7 = vld [vmem:[%s7188_s1 + $0x80] sm:$0xff] }
  0x24   : > { %868 = vmatpush1.bf16.msra.mxu0 %v398_v53  ;;  %3750 = vmatpush1.bf16.msra.mxu1 %v398_v53  ;;  %v400_v3 = vpack.c.bf16 %v368_v60, %v366_v59  ;;  %v373_v5 = vadd.f32 %v333_v1, %v293_v62  ;;  %v332_v8 = vld [vmem:[%s7188_s1 + $0x90] sm:$0xff]  ;;  %v2887_v9 = vld [vmem:[%s4233_s11 + $0x38] sm:$0xff]  ;;  %v370_v11 = vadd.f32 %v330_v7, %v290_v2  ;;  %v295_v13 = vld [vmem:[%s7187_s0 + $0xa8] sm:$0xff]  ;;  %p4029_p13 = pneg %p4028_p12 }
  0x25   : > { %2971 = vperm.xlu0 %3801, %v2885_v54   ;;  %2966 = vperm.xlu1 %3800, %v2884_v58   ;;  %v2886_v10 = vld [vmem:[%s4233_s11 + $0x30] sm:$0xff]  ;;  %v372_v12 = vadd.f32 %v332_v8, %v292_v6  ;;  %v297_v15 = vld [vmem:[%s7187_s0 + $0xb8] sm:$0xff]  ;;  %v335_v16 = vld [vmem:[%s7188_s1 + $0xa8] sm:$0xff] }
  0x26   : > { %869 = vmatprep.subr.bf16.mxu0 %v401_v63  ;;  %3741 = vmatprep.subr.bf16.mxu1 %v401_v63  ;;  %v403_v14 = vpack.c.bf16 %v373_v5, %v371_v4  ;;  %v337_v17 = vld [vmem:[%s7188_s1 + $0xb8] sm:$0xff]  ;;  %v375_v18 = vadd.f32 %v335_v16, %v295_v13  ;;  %v294_v20 = vld [vmem:[%s7187_s0 + $0xa0] sm:$0xff]  ;;  %v296_v21 = vld [vmem:[%s7187_s0 + $0xb0] sm:$0xff]  ;;  %p4036_p3 = pnand %p4035_p2, %p4029_p13 }
  0x27   : > { %v377_v19 = vadd.f32 %v337_v17, %v297_v15  ;;  %v334_v22 = vld [vmem:[%s7188_s1 + $0xa0] sm:$0xff]  ;;  %v402_v23 = vpack.c.bf16 %v372_v12, %v370_v11  ;;  %v2889_v24 = vld [vmem:[%s4233_s11 + $0x48] sm:$0xff]  ;;  %v336_v26 = vld [vmem:[%s7188_s1 + $0xb0] sm:$0xff] }
  0x28   : > { %870 = vmatpush1.bf16.msra.mxu0 %v400_v3  ;;  %3751 = vmatpush1.bf16.msra.mxu1 %v400_v3  ;;  %v2888_v25 = vld [vmem:[%s4233_s11 + $0x40] sm:$0xff]  ;;  %v374_v27 = vadd.f32 %v334_v22, %v294_v20  ;;  %v376_v28 = vadd.f32 %v336_v26, %v296_v21  ;;  %v299_v29 = vld [vmem:[%s7187_s0 + $0xc8] sm:$0xff]  ;;  %v301_v30 = vld [vmem:[%s7187_s0 + $0xd8] sm:$0xff] }
  0x29   : > { %2981 = vperm.xlu0 %3801, %v2887_v9   ;;  %2976 = vperm.xlu1 %3800, %v2886_v10   ;;  %v339_v31 = vld [vmem:[%s7188_s1 + $0xc8] sm:$0xff]  ;;  %v405_v32 = vpack.c.bf16 %v377_v19, %v375_v18  ;;  %v341_v33 = vld [vmem:[%s7188_s1 + $0xd8] sm:$0xff]  ;;  %v298_v35 = vld [vmem:[%s7187_s0 + $0xc0] sm:$0xff] }
  0x2a   : > { %871 = vmatprep.subr.bf16.mxu0 %v403_v14  ;;  %3742 = vmatprep.subr.bf16.mxu1 %v403_v14  ;;  %v379_v34 = vadd.f32 %v339_v31, %v299_v29  ;;  %v300_v36 = vld [vmem:[%s7187_s0 + $0xd0] sm:$0xff]  ;;  %v381_v37 = vadd.f32 %v341_v33, %v301_v30  ;;  %v338_v38 = vld [vmem:[%s7188_s1 + $0xc0] sm:$0xff]  ;;  %v404_v40 = vpack.c.bf16 %v376_v28, %v374_v27  ;;  %v2891_v41 = vld [vmem:[%s4233_s11 + $0x58] sm:$0xff] }
  0x2b   : > { %v340_v39 = vld [vmem:[%s7188_s1 + $0xd0] sm:$0xff]  ;;  %v378_v43 = vadd.f32 %v338_v38, %v298_v35  ;;  %v303_v45 = vld [vmem:[%s7187_s0 + $0xe8] sm:$0xff]  ;;  %v305_v46 = vld [vmem:[%s7187_s0 + $0xf8] sm:$0xff] }
  0x2c   : > { %872 = vmatpush1.bf16.msra.mxu0 %v402_v23  ;;  %3752 = vmatpush1.bf16.msra.mxu1 %v402_v23  ;;  %v2890_v42 = vld [vmem:[%s4233_s11 + $0x50] sm:$0xff]  ;;  %v380_v44 = vadd.f32 %v340_v39, %v300_v36  ;;  %v343_v47 = vld [vmem:[%s7188_s1 + $0xe8] sm:$0xff]  ;;  %v345_v48 = vld [vmem:[%s7188_s1 + $0xf8] sm:$0xff]  ;;  %v407_v50 = vpack.c.bf16 %v381_v37, %v379_v34 }
  0x2d   : > { %2991 = vperm.xlu0 %3801, %v2889_v24   ;;  %2986 = vperm.xlu1 %3800, %v2888_v25   ;;  %v302_v49 = vld [vmem:[%s7187_s0 + $0xe0] sm:$0xff]  ;;  %v383_v51 = vadd.f32 %v343_v47, %v303_v45  ;;  %v385_v52 = vadd.f32 %v345_v48, %v305_v46  ;;  %v304_v53 = vld [vmem:[%s7187_s0 + $0xf0] sm:$0xff]  ;;  %v307_v56 = vld [vmem:[%s7187_s0 + $0x108] sm:$0xff] }
  0x2e   : > { %873 = vmatprep.subr.bf16.mxu0 %v405_v32  ;;  %3743 = vmatprep.subr.bf16.mxu1 %v405_v32  ;;  %v342_v54 = vld [vmem:[%s7188_s1 + $0xe0] sm:$0xff]  ;;  %v344_v55 = vld [vmem:[%s7188_s1 + $0xf0] sm:$0xff]  ;;  %v406_v57 = vpack.c.bf16 %v380_v44, %v378_v43  ;;  %v309_v60 = vld [vmem:[%s7187_s0 + $0x118] sm:$0xff] }
  0x2f   : > { %v382_v58 = vadd.f32 %v342_v54, %v302_v49  ;;  %v384_v59 = vadd.f32 %v344_v55, %v304_v53  ;;  %v347_v61 = vld [vmem:[%s7188_s1 + $0x108] sm:$0xff]  ;;  %v349_v62 = vld [vmem:[%s7188_s1 + $0x118] sm:$0xff]  ;;  %v306_v63 = vld [vmem:[%s7187_s0 + $0x100] sm:$0xff]  ;;  %v409_v4 = vpack.c.bf16 %v385_v52, %v383_v51 }
  0x30   : > { %874 = vmatpush1.bf16.msra.mxu0 %v404_v40  ;;  %3753 = vmatpush1.bf16.msra.mxu1 %v404_v40  ;;  %v308_v0 = vld [vmem:[%s7187_s0 + $0x110] sm:$0xff]  ;;  %v346_v1 = vld [vmem:[%s7188_s1 + $0x100] sm:$0xff]  ;;  %v2893_v2 = vld [vmem:[%s4233_s11 + $0x68] sm:$0xff]  ;;  %v387_v5 = vadd.f32 %v347_v61, %v307_v56  ;;  %v389_v6 = vadd.f32 %v349_v62, %v309_v60 }
  0x31   : > { %3001 = vperm.xlu0 %3801, %v2891_v41   ;;  %2996 = vperm.xlu1 %3800, %v2890_v42   ;;  %v2892_v3 = vld [vmem:[%s4233_s11 + $0x60] sm:$0xff]  ;;  %v348_v7 = vld [vmem:[%s7188_s1 + $0x110] sm:$0xff]  ;;  %v311_v8 = vld [vmem:[%s7187_s0 + $0x128] sm:$0xff]  ;;  %v408_v11 = vpack.c.bf16 %v384_v59, %v382_v58  ;;  %v386_v13 = vadd.f32 %v346_v1, %v306_v63 }
  0x32   : > { %875 = vmatprep.subr.bf16.mxu0 %v407_v50  ;;  %3744 = vmatprep.subr.bf16.mxu1 %v407_v50  ;;  %v313_v9 = vld [vmem:[%s7187_s0 + $0x138] sm:$0xff]  ;;  %v351_v10 = vld [vmem:[%s7188_s1 + $0x128] sm:$0xff]  ;;  %v388_v14 = vadd.f32 %v348_v7, %v308_v0  ;;  %v310_v16 = vld [vmem:[%s7187_s0 + $0x120] sm:$0xff]  ;;  %v411_v21 = vpack.c.bf16 %v389_v6, %v387_v5 }
  0x33   : > { %v2895_v12 = vld [vmem:[%s4233_s11 + $0x78] sm:$0xff]  ;;  %v312_v17 = vld [vmem:[%s7187_s0 + $0x130] sm:$0xff]  ;;  %v350_v18 = vld [vmem:[%s7188_s1 + $0x120] sm:$0xff]  ;;  %v391_v22 = vadd.f32 %v351_v10, %v311_v8 }
  0x34   : > { %876 = vmatpush1.bf16.msra.mxu0 %v406_v57  ;;  %3754 = vmatpush1.bf16.msra.mxu1 %v406_v57  ;;  %v353_v15 = vld [vmem:[%s7188_s1 + $0x138] sm:$0xff]  ;;  %v352_v19 = vld [vmem:[%s7188_s1 + $0x130] sm:$0xff]  ;;  %v3804_v24 = vld [vmem:[%s4431_s8 + $0x4] ss:$8 sps:$4 sm:$0xff]   ;;  %v410_v25 = vpack.c.bf16 %v388_v14, %v386_v13  ;;  %v390_v26 = vadd.f32 %v350_v18, %v310_v16 }
  0x35   : > { %3011 = vperm.xlu0 %3801, %v2893_v2   ;;  %3006 = vperm.xlu1 %3800, %v2892_v3   ;;  %v2894_v20 = vld [vmem:[%s4233_s11 + $0x70] sm:$0xff]  ;;  %v393_v23 = vadd.f32 %v353_v15, %v313_v9  ;;  %v392_v27 = vadd.f32 %v352_v19, %v312_v17  ;;  %v3807_v28 = vld [vmem:[%s4431_s8 + $0x104] ss:$8 sps:$4 sm:$0xff]   ;;  %v2899_v33 = vld [vmem:[%s4233_s11 + $0x98] sm:$0xff] }
  0x36   : > { %877 = vmatprep.subr.bf16.mxu0 %v409_v4  ;;  %3745 = vmatprep.subr.bf16.mxu1 %v409_v4  ;;  %v2897_v29 = vld [vmem:[%s4233_s11 + $0x88] sm:$0xff]  ;;  %v2896_v30 = vld [vmem:[%s4233_s11 + $0x80] sm:$0xff]  ;;  %v2898_v34 = vld [vmem:[%s4233_s11 + $0x90] sm:$0xff] }
  0x37   : > { %v413_v31 = vpack.c.bf16 %v393_v23, %v391_v22  ;;  %3697 = vmatprep.mubr.msk.bf16.mxu0 %vm766_vm0, %v3804_v24  ;;  %3713 = vmatprep.mubr.msk.bf16.mxu1 %vm766_vm0, %v3807_v28  ;;  %v412_v32 = vpack.c.bf16 %v392_v27, %v390_v26  ;;  %v3802_v35 = vld [vmem:[%s4431_s8] ss:$8 sps:$4 sm:$0xff]   ;;  %v3808_v37 = vld [vmem:[%s4431_s8 + $0x14] ss:$8 sps:$4 sm:$0xff]   ;;  %v3810_v43 = vld [vmem:[%s4431_s8 + $0x10] ss:$8 sps:$4 sm:$0xff]  }
  0x38   : > { %878 = vmatpush1.bf16.msra.mxu0 %v408_v11  ;;  %3755 = vmatpush1.bf16.msra.mxu1 %v408_v11  ;;  %v3805_v36 = vld [vmem:[%s4431_s8 + $0x100] ss:$8 sps:$4 sm:$0xff]   ;;  %v3811_v38 = vld [vmem:[%s4431_s8 + $0x114] ss:$8 sps:$4 sm:$0xff]   ;;  %v3813_v44 = vld [vmem:[%s4431_s8 + $0x110] ss:$8 sps:$4 sm:$0xff]  }
  0x39   : > { %3021 = vperm.xlu0 %3801, %v2895_v12   ;;  %3016 = vperm.xlu1 %3800, %v2894_v20   ;;  %v2901_v39 = vld [vmem:[%s4233_s11 + $0xa8] sm:$0xff]  ;;  %v2900_v40 = vld [vmem:[%s4233_s11 + $0xa0] sm:$0xff]  ;;  %v2903_v41 = vld [vmem:[%s4233_s11 + $0xb8] sm:$0xff] }
  0x3a   : > { %879 = vmatprep.subr.bf16.mxu0 %v411_v21  ;;  %3746 = vmatprep.subr.bf16.mxu1 %v411_v21  ;;  %v2902_v42 = vld [vmem:[%s4233_s11 + $0xb0] sm:$0xff]  ;;  %v3814_v45 = vld [vmem:[%s4431_s8 + $0x24] ss:$8 sps:$4 sm:$0xff]   ;;  %v2907_v49 = vld [vmem:[%s4233_s11 + $0xd8] sm:$0xff] }
  0x3b   : > { %v3817_v46 = vld [vmem:[%s4431_s8 + $0x124] ss:$8 sps:$4 sm:$0xff]   ;;  %v2906_v50 = vld [vmem:[%s4233_s11 + $0xd0] sm:$0xff]  ;;  %v3816_v51 = vld [vmem:[%s4431_s8 + $0x20] ss:$8 sps:$4 sm:$0xff]  }
  0x3c   : > { %880 = vmatpush1.bf16.msra.mxu0 %v410_v25  ;;  %3756 = vmatpush1.bf16.msra.mxu1 %v410_v25  ;;  %v2905_v47 = vld [vmem:[%s4233_s11 + $0xc8] sm:$0xff]  ;;  %v2904_v48 = vld [vmem:[%s4233_s11 + $0xc0] sm:$0xff]  ;;  %v3820_v53 = vld [vmem:[%s4431_s8 + $0x34] ss:$8 sps:$4 sm:$0xff]  }
  0x3d   : > { %3031 = vperm.xlu0 %3801, %v2897_v29   ;;  %3026 = vperm.xlu1 %3800, %v2896_v30   ;;  %v3819_v52 = vld [vmem:[%s4431_s8 + $0x120] ss:$8 sps:$4 sm:$0xff]   ;;  %v3823_v54 = vld [vmem:[%s4431_s8 + $0x134] ss:$8 sps:$4 sm:$0xff]   ;;  %v3822_v59 = vld [vmem:[%s4431_s8 + $0x30] ss:$8 sps:$4 sm:$0xff]  }
  0x3e   : > { %881 = vmatprep.subr.bf16.mxu0 %v413_v31  ;;  %3747 = vmatprep.subr.bf16.mxu1 %v413_v31  ;;  %v2909_v55 = vld [vmem:[%s4233_s11 + $0xe8] sm:$0xff]  ;;  %v2908_v56 = vld [vmem:[%s4233_s11 + $0xe0] sm:$0xff]  ;;  %v2911_v57 = vld [vmem:[%s4233_s11 + $0xf8] sm:$0xff] }
  0x3f   : > { %v2910_v58 = vld [vmem:[%s4233_s11 + $0xf0] sm:$0xff]  ;;  %v3826_v61 = vld [vmem:[%s4431_s8 + $0x44] ss:$8 sps:$4 sm:$0xff]   ;;  %v2915_v1 = vld [vmem:[%s4233_s11 + $0x118] sm:$0xff] }
  0x40   : > { %882 = vmatpush1.bf16.msra.mxu0 %v412_v32  ;;  %3757 = vmatpush1.bf16.msra.mxu1 %v412_v32  ;;  %v3825_v60 = vld [vmem:[%s4431_s8 + $0x130] ss:$8 sps:$4 sm:$0xff]   ;;  %v3829_v62 = vld [vmem:[%s4431_s8 + $0x144] ss:$8 sps:$4 sm:$0xff]   ;;  %v3828_v3 = vld [vmem:[%s4431_s8 + $0x40] ss:$8 sps:$4 sm:$0xff]  }
  0x41   : > { %3041 = vperm.xlu0 %3801, %v2899_v33   ;;  %3036 = vperm.xlu1 %3800, %v2898_v34   ;;  %v2913_v63 = vld [vmem:[%s4233_s11 + $0x108] sm:$0xff]  ;;  %v2912_v0 = vld [vmem:[%s4233_s11 + $0x100] sm:$0xff]  ;;  %v2914_v2 = vld [vmem:[%s4233_s11 + $0x110] sm:$0xff] }
  0x42   : > { %v3831_v4 = vld [vmem:[%s4431_s8 + $0x140] ss:$8 sps:$4 sm:$0xff]   ;;  %v3832_v5 = vld [vmem:[%s4431_s8 + $0x54] ss:$8 sps:$4 sm:$0xff]   ;;  %v3834_v11 = vld [vmem:[%s4431_s8 + $0x50] ss:$8 sps:$4 sm:$0xff]  }
  0x43   : > { %896 = vmatmul.mubr.bf16.vlgmr.msra.gmra.mrb[0].mxu0 %v3802_v35  ;;  %1056 = vmatmul.mubr.bf16.vlgmr.msra.gmra.mrb[0].mxu1 %v3805_v36  ;;  %v3835_v6 = vld [vmem:[%s4431_s8 + $0x154] ss:$8 sps:$4 sm:$0xff]   ;;  %v2917_v7 = vld [vmem:[%s4233_s11 + $0x128] sm:$0xff]  ;;  %v2916_v8 = vld [vmem:[%s4233_s11 + $0x120] sm:$0xff] }
  0x44   : > { %3698 = vmatprep.mubr.msk.bf16.mxu0 %vm766_vm0, %v3808_v37  ;;  %3714 = vmatprep.mubr.msk.bf16.mxu1 %vm766_vm0, %v3811_v38  ;;  %v2919_v9 = vld [vmem:[%s4233_s11 + $0x138] sm:$0xff]  ;;  %v2918_v10 = vld [vmem:[%s4233_s11 + $0x130] sm:$0xff]  ;;  %v3838_v13 = vld [vmem:[%s4431_s8 + $0x64] ss:$8 sps:$4 sm:$0xff]  }
  0x45   : > { %3051 = vperm.xlu0 %3801, %v2901_v39   ;;  %3046 = vperm.xlu1 %3800, %v2900_v40   ;;  %v3837_v12 = vld [vmem:[%s4431_s8 + $0x150] ss:$8 sps:$4 sm:$0xff]   ;;  %v3841_v14 = vld [vmem:[%s4431_s8 + $0x164] ss:$8 sps:$4 sm:$0xff]   ;;  %v3840_v19 = vld [vmem:[%s4431_s8 + $0x60] ss:$8 sps:$4 sm:$0xff]  }
  0x46   : > { %v2921_v15 = vld [vmem:[%s4233_s11 + $0x148] sm:$0xff]  ;;  %v2920_v16 = vld [vmem:[%s4233_s11 + $0x140] sm:$0xff]  ;;  %v2923_v17 = vld [vmem:[%s4233_s11 + $0x158] sm:$0xff] }
  0x47   : > { %v2922_v18 = vld [vmem:[%s4233_s11 + $0x150] sm:$0xff]  ;;  %v3843_v20 = vld [vmem:[%s4431_s8 + $0x160] ss:$8 sps:$4 sm:$0xff]   ;;  %v2927_v25 = vld [vmem:[%s4233_s11 + $0x178] sm:$0xff] }
  0x48   : > { %v3844_v21 = vld [vmem:[%s4431_s8 + $0x74] ss:$8 sps:$4 sm:$0xff]   ;;  %v2925_v23 = vld [vmem:[%s4233_s11 + $0x168] sm:$0xff]  ;;  %v2924_v24 = vld [vmem:[%s4233_s11 + $0x160] sm:$0xff] }
  0x49   : > { %3061 = vperm.xlu0 %3801, %v2903_v41   ;;  %3056 = vperm.xlu1 %3800, %v2902_v42   ;;  %v3847_v22 = vld [vmem:[%s4431_s8 + $0x174] ss:$8 sps:$4 sm:$0xff]   ;;  %v3846_v27 = vld [vmem:[%s4431_s8 + $0x70] ss:$8 sps:$4 sm:$0xff]   ;;  %v3850_v29 = vld [vmem:[%s4431_s8 + $0x84] ss:$8 sps:$4 sm:$0xff]  }
  0x4a   : > { %v2926_v26 = vld [vmem:[%s4233_s11 + $0x170] sm:$0xff]  ;;  %v3853_v30 = vld [vmem:[%s4431_s8 + $0x184] ss:$8 sps:$4 sm:$0xff]   ;;  %v2931_v33 = vld [vmem:[%s4233_s11 + $0x198] sm:$0xff] }
  0x4b   : > { %906 = vmatmul.mubr.bf16.gmra.mrb[4].mxu0 %v3810_v43  ;;  %1066 = vmatmul.mubr.bf16.gmra.mrb[4].mxu1 %v3813_v44  ;;  %v3849_v28 = vld [vmem:[%s4431_s8 + $0x170] ss:$8 sps:$4 sm:$0xff]   ;;  %v2929_v31 = vld [vmem:[%s4233_s11 + $0x188] sm:$0xff]  ;;  %v2928_v32 = vld [vmem:[%s4233_s11 + $0x180] sm:$0xff] }
  0x4c   : > { %3699 = vmatprep.mubr.msk.bf16.mxu0 %vm766_vm0, %v3814_v45  ;;  %3715 = vmatprep.mubr.msk.bf16.mxu1 %vm766_vm0, %v3817_v46  ;;  %v2930_v34 = vld [vmem:[%s4233_s11 + $0x190] sm:$0xff]  ;;  %v3852_v35 = vld [vmem:[%s4431_s8 + $0x80] ss:$8 sps:$4 sm:$0xff]   ;;  %v2935_v41 = vld [vmem:[%s4233_s11 + $0x1b8] sm:$0xff] }
  0x4d   : > { %3071 = vperm.xlu0 %3801, %v2905_v47   ;;  %3066 = vperm.xlu1 %3800, %v2904_v48   ;;  %v3855_v36 = vld [vmem:[%s4431_s8 + $0x180] ss:$8 sps:$4 sm:$0xff]   ;;  %v3856_v37 = vld [vmem:[%s4431_s8 + $0x94] ss:$8 sps:$4 sm:$0xff]   ;;  %v3858_v43 = vld [vmem:[%s4431_s8 + $0x90] ss:$8 sps:$4 sm:$0xff]  }
  0x4e   : > { %v3859_v38 = vld [vmem:[%s4431_s8 + $0x194] ss:$8 sps:$4 sm:$0xff]   ;;  %v2933_v39 = vld [vmem:[%s4233_s11 + $0x1a8] sm:$0xff]  ;;  %v2932_v40 = vld [vmem:[%s4233_s11 + $0x1a0] sm:$0xff] }
  0x4f   : > { %v2934_v42 = vld [vmem:[%s4233_s11 + $0x1b0] sm:$0xff]  ;;  %v3862_v45 = vld [vmem:[%s4431_s8 + $0xa4] ss:$8 sps:$4 sm:$0xff]  }
  0x50   : > { %v3861_v44 = vld [vmem:[%s4431_s8 + $0x190] ss:$8 sps:$4 sm:$0xff]   ;;  %v3865_v46 = vld [vmem:[%s4431_s8 + $0x1a4] ss:$8 sps:$4 sm:$0xff]  }
  0x51   : > { %3081 = vperm.xlu0 %3801, %v2907_v49   ;;  %3076 = vperm.xlu1 %3800, %v2906_v50   ;;  %v2937_v47 = vld [vmem:[%s4233_s11 + $0x1c8] sm:$0xff]  ;;  %v2936_v48 = vld [vmem:[%s4233_s11 + $0x1c0] sm:$0xff]  ;;  %v2939_v49 = vld [vmem:[%s4233_s11 + $0x1d8] sm:$0xff] }
  0x52   : > { %v2938_v50 = vld [vmem:[%s4233_s11 + $0x1d0] sm:$0xff] }
  0x53   : > { %916 = vmatmul.mubr.bf16.gmra.mrb[8].mxu0 %v3816_v51  ;;  %1076 = vmatmul.mubr.bf16.gmra.mrb[8].mxu1 %v3819_v52  ;;  %v3864_v51 = vld [vmem:[%s4431_s8 + $0xa0] ss:$8 sps:$4 sm:$0xff]  }
  0x54   : > { %3700 = vmatprep.mubr.msk.bf16.mxu0 %vm766_vm0, %v3820_v53  ;;  %3716 = vmatprep.mubr.msk.bf16.mxu1 %vm766_vm0, %v3823_v54  ;;  %v3867_v52 = vld [vmem:[%s4431_s8 + $0x1a0] ss:$8 sps:$4 sm:$0xff]   ;;  %v3868_v53 = vld [vmem:[%s4431_s8 + $0xb4] ss:$8 sps:$4 sm:$0xff]  }
  0x55   : > { %3091 = vperm.xlu0 %3801, %v2909_v55   ;;  %3086 = vperm.xlu1 %3800, %v2908_v56   ;;  %v3871_v54 = vld [vmem:[%s4431_s8 + $0x1b4] ss:$8 sps:$4 sm:$0xff]   ;;  %v2941_v55 = vld [vmem:[%s4233_s11 + $0x1e8] sm:$0xff]  ;;  %v2940_v56 = vld [vmem:[%s4233_s11 + $0x1e0] sm:$0xff] }
  0x59   : > { %3101 = vperm.xlu0 %3801, %v2911_v57   ;;  %3096 = vperm.xlu1 %3800, %v2910_v58   ;;  %v3870_v57 = vld [vmem:[%s4431_s8 + $0xb0] ss:$8 sps:$4 sm:$0xff]  }
  0x5a   : > { %v3873_v58 = vld [vmem:[%s4431_s8 + $0x1b0] ss:$8 sps:$4 sm:$0xff]  }
  0x5b   : > { %926 = vmatmul.mubr.bf16.gmra.mrb[12].mxu0 %v3822_v59  ;;  %1086 = vmatmul.mubr.bf16.gmra.mrb[12].mxu1 %v3825_v60  ;;  %v3874_v59 = vld [vmem:[%s4431_s8 + $0xc4] ss:$8 sps:$4 sm:$0xff]  }
  0x5c   : > { %3701 = vmatprep.mubr.msk.bf16.mxu0 %vm766_vm0, %v3826_v61  ;;  %3717 = vmatprep.mubr.msk.bf16.mxu1 %vm766_vm0, %v3829_v62  ;;  %v3877_v60 = vld [vmem:[%s4431_s8 + $0x1c4] ss:$8 sps:$4 sm:$0xff]   ;;  %v3876_v61 = vld [vmem:[%s4431_s8 + $0xc0] ss:$8 sps:$4 sm:$0xff]  }
  0x5d   : > { %3111 = vperm.xlu0 %3801, %v2913_v63   ;;  %3106 = vperm.xlu1 %3800, %v2912_v0   ;;  %v3879_v62 = vld [vmem:[%s4431_s8 + $0x1c0] ss:$8 sps:$4 sm:$0xff]   ;;  %v3880_v63 = vld [vmem:[%s4431_s8 + $0xd4] ss:$8 sps:$4 sm:$0xff]  }
  0x5e   : > { %v3883_v0 = vld [vmem:[%s4431_s8 + $0x1d4] ss:$8 sps:$4 sm:$0xff]  }
  0x61   : > { %3121 = vperm.xlu0 %3801, %v2915_v1   ;;  %3116 = vperm.xlu1 %3800, %v2914_v2   ;;  %v3882_v1 = vld [vmem:[%s4431_s8 + $0xd0] ss:$8 sps:$4 sm:$0xff]  }
  0x62   : > { %v3885_v2 = vld [vmem:[%s4431_s8 + $0x1d0] ss:$8 sps:$4 sm:$0xff]  }
  0x63   : > { %936 = vmatmul.mubr.bf16.gmra.mrb[16].mxu0 %v3828_v3  ;;  %1096 = vmatmul.mubr.bf16.gmra.mrb[16].mxu1 %v3831_v4  ;;  %v3886_v3 = vld [vmem:[%s4431_s8 + $0xe4] ss:$8 sps:$4 sm:$0xff]  }
  0x64   : > { %3702 = vmatprep.mubr.msk.bf16.mxu0 %vm766_vm0, %v3832_v5  ;;  %3718 = vmatprep.mubr.msk.bf16.mxu1 %vm766_vm0, %v3835_v6  ;;  %v3889_v4 = vld [vmem:[%s4431_s8 + $0x1e4] ss:$8 sps:$4 sm:$0xff]   ;;  %v3888_v5 = vld [vmem:[%s4431_s8 + $0xe0] ss:$8 sps:$4 sm:$0xff]  }
  0x65   : > { %3131 = vperm.xlu0 %3801, %v2917_v7   ;;  %3126 = vperm.xlu1 %3800, %v2916_v8   ;;  %v3891_v6 = vld [vmem:[%s4431_s8 + $0x1e0] ss:$8 sps:$4 sm:$0xff]   ;;  %v3892_v7 = vld [vmem:[%s4431_s8 + $0xf4] ss:$8 sps:$4 sm:$0xff]  }
  0x66   : > { %v3895_v8 = vld [vmem:[%s4431_s8 + $0x1f4] ss:$8 sps:$4 sm:$0xff]  }
  0x69   : > { %3141 = vperm.xlu0 %3801, %v2919_v9   ;;  %3136 = vperm.xlu1 %3800, %v2918_v10   ;;  %v3894_v9 = vld [vmem:[%s4431_s8 + $0xf0] ss:$8 sps:$4 sm:$0xff]  }
  0x6a   : > { %v3897_v10 = vld [vmem:[%s4431_s8 + $0x1f0] ss:$8 sps:$4 sm:$0xff]  }
  0x6b   : > { %946 = vmatmul.mubr.bf16.gmra.mrb[20].mxu0 %v3834_v11  ;;  %1106 = vmatmul.mubr.bf16.gmra.mrb[20].mxu1 %v3837_v12 }
  0x6c   : > { %3703 = vmatprep.mubr.msk.bf16.mxu0 %vm766_vm0, %v3838_v13  ;;  %3719 = vmatprep.mubr.msk.bf16.mxu1 %vm766_vm0, %v3841_v14 }
  0x6d   : > { %3151 = vperm.xlu0 %3801, %v2921_v15   ;;  %3146 = vperm.xlu1 %3800, %v2920_v16  }
  0x71   : > { %3161 = vperm.xlu0 %3801, %v2923_v17   ;;  %3156 = vperm.xlu1 %3800, %v2922_v18  }
  0x73   : > { %956 = vmatmul.mubr.bf16.gmra.mrb[24].mxu0 %v3840_v19  ;;  %1116 = vmatmul.mubr.bf16.gmra.mrb[24].mxu1 %v3843_v20 }
  0x74   : > { %3704 = vmatprep.mubr.msk.bf16.mxu0 %vm766_vm0, %v3844_v21  ;;  %3720 = vmatprep.mubr.msk.bf16.mxu1 %vm766_vm0, %v3847_v22 }
  0x75   : > { %3171 = vperm.xlu0 %3801, %v2925_v23   ;;  %3166 = vperm.xlu1 %3800, %v2924_v24  }
  0x79   : > { %3181 = vperm.xlu0 %3801, %v2927_v25   ;;  %3176 = vperm.xlu1 %3800, %v2926_v26  }
  0x7b   : > { %966 = vmatmul.mubr.bf16.gmra.mrb[28].mxu0 %v3846_v27  ;;  %1126 = vmatmul.mubr.bf16.gmra.mrb[28].mxu1 %v3849_v28 }
  0x7c   : > { %3705 = vmatprep.mubr.msk.bf16.mxu0 %vm766_vm0, %v3850_v29  ;;  %3721 = vmatprep.mubr.msk.bf16.mxu1 %vm766_vm0, %v3853_v30 }
  0x7d   : > { %3191 = vperm.xlu0 %3801, %v2929_v31   ;;  %3186 = vperm.xlu1 %3800, %v2928_v32  }
  0x81   : > { %3201 = vperm.xlu0 %3801, %v2931_v33   ;;  %3196 = vperm.xlu1 %3800, %v2930_v34  }
  0x83   : > { %976 = vmatmul.mubr.bf16.gmra.mrb[32].mxu0 %v3852_v35  ;;  %1136 = vmatmul.mubr.bf16.gmra.mrb[32].mxu1 %v3855_v36 }
  0x84   : > { %3706 = vmatprep.mubr.msk.bf16.mxu0 %vm766_vm0, %v3856_v37  ;;  %3722 = vmatprep.mubr.msk.bf16.mxu1 %vm766_vm0, %v3859_v38 }
  0x85   : > { %3211 = vperm.xlu0 %3801, %v2933_v39   ;;  %3206 = vperm.xlu1 %3800, %v2932_v40  }
  0x89   : > { %3221 = vperm.xlu0 %3801, %v2935_v41   ;;  %3216 = vperm.xlu1 %3800, %v2934_v42  }
  0x8b   : > { %986 = vmatmul.mubr.bf16.gmra.mrb[36].mxu0 %v3858_v43  ;;  %1146 = vmatmul.mubr.bf16.gmra.mrb[36].mxu1 %v3861_v44 }
  0x8c   : > { %3707 = vmatprep.mubr.msk.bf16.mxu0 %vm766_vm0, %v3862_v45  ;;  %3723 = vmatprep.mubr.msk.bf16.mxu1 %vm766_vm0, %v3865_v46 }
  0x8d   : > { %3231 = vperm.xlu0 %3801, %v2937_v47   ;;  %3226 = vperm.xlu1 %3800, %v2936_v48  }
  0x91   : > { %3241 = vperm.xlu0 %3801, %v2939_v49   ;;  %3236 = vperm.xlu1 %3800, %v2938_v50  }
  0x93   : > { %996 = vmatmul.mubr.bf16.gmra.mrb[40].mxu0 %v3864_v51  ;;  %1156 = vmatmul.mubr.bf16.gmra.mrb[40].mxu1 %v3867_v52 }
  0x94   : > { %3708 = vmatprep.mubr.msk.bf16.mxu0 %vm766_vm0, %v3868_v53  ;;  %3724 = vmatprep.mubr.msk.bf16.mxu1 %vm766_vm0, %v3871_v54 }
  0x95   : > { %3251 = vperm.xlu0 %3801, %v2941_v55   ;;  %3246 = vperm.xlu1 %3800, %v2940_v56  }
  0x9b   : > { %1006 = vmatmul.mubr.bf16.gmra.mrb[44].mxu0 %v3870_v57  ;;  %1166 = vmatmul.mubr.bf16.gmra.mrb[44].mxu1 %v3873_v58 }
  0x9c   : > { %3709 = vmatprep.mubr.msk.bf16.mxu0 %vm766_vm0, %v3874_v59  ;;  %3725 = vmatprep.mubr.msk.bf16.mxu1 %vm766_vm0, %v3877_v60  ;;  %v4585_v11 = vpop.permute.xlu0 %2951  ;;  %v4587_v12 = vpop.permute.xlu1 %2946 }
  0x9d   : > { %7583 = vst [vmem:[#allocation5_spill] sm:$0xff] %v4585_v11  ;;  %7584 = vst [vmem:[#allocation6_spill] sm:$0xff] %v4587_v12 }
  0xa0   : > { %v4589_v13 = vpop.permute.xlu0 %2961  ;;  %v4591_v14 = vpop.permute.xlu1 %2956 }
  0xa1   : > { %7585 = vst [vmem:[#allocation7_spill] sm:$0xff] %v4589_v13  ;;  %7586 = vst [vmem:[#allocation8_spill] sm:$0xff] %v4591_v14 }
  0xa3   : > { %1016 = vmatmul.mubr.bf16.gmra.mrb[48].mxu0 %v3876_v61  ;;  %1176 = vmatmul.mubr.bf16.gmra.mrb[48].mxu1 %v3879_v62 }
  0xa4   : > { %3710 = vmatprep.mubr.msk.bf16.mxu0 %vm766_vm0, %v3880_v63  ;;  %3726 = vmatprep.mubr.msk.bf16.mxu1 %vm766_vm0, %v3883_v0  ;;  %v4593_v15 = vpop.permute.xlu0 %2971  ;;  %v4595_v16 = vpop.permute.xlu1 %2966 }
  0xa5   : > { %7587 = vst [vmem:[#allocation9_spill] sm:$0xff] %v4593_v15  ;;  %7588 = vst [vmem:[#allocation10_spill] sm:$0xff] %v4595_v16 }
  0xa8   : > { %v4597_v17 = vpop.permute.xlu0 %2981  ;;  %v4599_v18 = vpop.permute.xlu1 %2976 }
  0xa9   : > { %7589 = vst [vmem:[#allocation11_spill] sm:$0xff] %v4597_v17  ;;  %7590 = vst [vmem:[#allocation12_spill] sm:$0xff] %v4599_v18 }
  0xab   : > { %1026 = vmatmul.mubr.bf16.gmra.mrb[52].mxu0 %v3882_v1  ;;  %1186 = vmatmul.mubr.bf16.gmra.mrb[52].mxu1 %v3885_v2 }
  0xac   : > { %3711 = vmatprep.mubr.msk.bf16.mxu0 %vm766_vm0, %v3886_v3  ;;  %3727 = vmatprep.mubr.msk.bf16.mxu1 %vm766_vm0, %v3889_v4  ;;  %v4601_v19 = vpop.permute.xlu0 %2991  ;;  %v4603_v20 = vpop.permute.xlu1 %2986 }
  0xad   : > { %7591 = vst [vmem:[#allocation13_spill] sm:$0xff] %v4601_v19  ;;  %7592 = vst [vmem:[#allocation14_spill] sm:$0xff] %v4603_v20 }
  0xb0   : > { %v4605_v21 = vpop.permute.xlu0 %3001  ;;  %v4607_v22 = vpop.permute.xlu1 %2996 }
  0xb1   : > { %7593 = vst [vmem:[#allocation15_spill] sm:$0xff] %v4605_v21  ;;  %7594 = vst [vmem:[#allocation16_spill] sm:$0xff] %v4607_v22 }
  0xb3   : > { %1036 = vmatmul.mubr.bf16.gmra.mrb[56].mxu0 %v3888_v5  ;;  %1196 = vmatmul.mubr.bf16.gmra.mrb[56].mxu1 %v3891_v6 }
  0xb4   : > { %3712 = vmatprep.mubr.msk.bf16.mxu0 %vm766_vm0, %v3892_v7  ;;  %3728 = vmatprep.mubr.msk.bf16.mxu1 %vm766_vm0, %v3895_v8  ;;  %v4609_v23 = vpop.permute.xlu0 %3011  ;;  %v4611_v24 = vpop.permute.xlu1 %3006 }
  0xb5   : > { %7595 = vst [vmem:[#allocation17_spill] sm:$0xff] %v4609_v23  ;;  %7596 = vst [vmem:[#allocation18_spill] sm:$0xff] %v4611_v24 }
  0xb8   : > { %v4613_v25 = vpop.permute.xlu0 %3021  ;;  %v4615_v26 = vpop.permute.xlu1 %3016 }
  0xb9   : > { %7597 = vst [vmem:[#allocation19_spill] sm:$0xff] %v4613_v25  ;;  %7598 = vst [vmem:[#allocation20_spill] sm:$0xff] %v4615_v26 }
  0xbb   : > { %1046 = vmatmul.mubr.bf16.gmra.mrb[60].mxu0 %v3894_v9  ;;  %1206 = vmatmul.mubr.bf16.gmra.mrb[60].mxu1 %v3897_v10 }
  0xbc   : > { %v4617_v27 = vpop.permute.xlu0 %3031  ;;  %v4619_v28 = vpop.permute.xlu1 %3026 }
  0xbd   : > { %7599 = vst [vmem:[#allocation21_spill] sm:$0xff] %v4617_v27  ;;  %7600 = vst [vmem:[#allocation22_spill] sm:$0xff] %v4619_v28 }
  0xc0   : > { %v4621_v29 = vpop.permute.xlu0 %3041  ;;  %v4623_v30 = vpop.permute.xlu1 %3036 }
  0xc1   : > { %7601 = vst [vmem:[#allocation23_spill] sm:$0xff] %v4621_v29  ;;  %7602 = vst [vmem:[#allocation24_spill] sm:$0xff] %v4623_v30 }
  0xc4   : > { %v4625_v31 = vpop.permute.xlu0 %3051  ;;  %v4627_v32 = vpop.permute.xlu1 %3046 }
  0xc5   : > { %7603 = vst [vmem:[#allocation25_spill] sm:$0xff] %v4625_v31  ;;  %7604 = vst [vmem:[#allocation26_spill] sm:$0xff] %v4627_v32 }
  0xc8   : > { %v4629_v33 = vpop.permute.xlu0 %3061  ;;  %v4631_v34 = vpop.permute.xlu1 %3056 }
  0xc9   : > { %7605 = vst [vmem:[#allocation27_spill] sm:$0xff] %v4629_v33  ;;  %7606 = vst [vmem:[#allocation28_spill] sm:$0xff] %v4631_v34 }
  0xcc   : > { %v4633_v35 = vpop.permute.xlu0 %3071  ;;  %v4675_v60 = vpop.permute.xlu1 %3066 }
  0xcd   : > { %7607 = vst [vmem:[#allocation29_spill] sm:$0xff] %v4633_v35  ;;  %7616 = vst [vmem:[#allocation38_spill] sm:$0xff] %v4675_v60 }
  0xd0   : > { %v4677_v61 = vpop.permute.xlu0 %3081 }
  0xd1   : > { %7617 = vst [vmem:[#allocation39_spill] sm:$0xff] %v4677_v61 }
 0x116   : > { %v4635_v36 = vpop.f32.mrb[0].mxu0  ;;  %v4637_v37 = vpop.f32.mrb[0].mxu1 }
 0x117   : > { %7608 = vst [vmem:[#allocation30_spill] sm:$0xff] %v4635_v36  ;;  %7609 = vst [vmem:[#allocation31_spill] sm:$0xff] %v4637_v37  ;;  %v4639_v38 = vpop.f32.mrb[1].mxu0  ;;  %v4641_v39 = vpop.f32.mrb[1].mxu1  ;;  %v1472_v40 = vmul.f32 %v4635_v36, %v4635_v36  ;;  %v1536_v41 = vmul.f32 %v4637_v37, %v4637_v37 }
 0x118   : > { %7610 = vst [vmem:[#allocation32_spill] sm:$0xff] %v4639_v38  ;;  %7611 = vst [vmem:[#allocation33_spill] sm:$0xff] %v4641_v39  ;;  %v4647_v42 = vpop.f32.mrb[2].mxu0  ;;  %v4649_v43 = vpop.f32.mrb[2].mxu1  ;;  %v1216_v44 = vadd.f32 %v4639_v38, %v4635_v36  ;;  %v1312_v45 = vadd.f32 %v4641_v39, %v4637_v37  ;;  %v1473_v46 = vmul.f32 %v4639_v38, %v4639_v38 }
 0x119   : > { %7612 = vst [vmem:[#allocation34_spill] sm:$0xff] %v4647_v42  ;;  %7613 = vst [vmem:[#allocation35_spill] sm:$0xff] %v4649_v43  ;;  %v1537_v47 = vmul.f32 %v4641_v39, %v4641_v39  ;;  %v4659_v48 = vpop.f32.mrb[3].mxu0  ;;  %v4661_v49 = vpop.f32.mrb[3].mxu1  ;;  %v1474_v50 = vmul.f32 %v4647_v42, %v4647_v42  ;;  %v1538_v51 = vmul.f32 %v4649_v43, %v4649_v43 }
 0x11a   : > { %7614 = vst [vmem:[#allocation36_spill] sm:$0xff] %v4659_v48  ;;  %7615 = vst [vmem:[#allocation37_spill] sm:$0xff] %v4661_v49  ;;  %1217 = vadd.xlane.f32.xlu0 %v1216_v44  ;;  %v1315_v52 = vadd.f32 %v4661_v49, %v4649_v43  ;;  %v1475_v53 = vmul.f32 %v4659_v48, %v4659_v48  ;;  %v1219_v54 = vadd.f32 %v4659_v48, %v4647_v42 }
 0x11b   : > { %v1539_v55 = vmul.f32 %v4661_v49, %v4661_v49  ;;  %v1600_v56 = vadd.f32 %v1473_v46, %v1472_v40  ;;  %v1696_v57 = vadd.f32 %v1537_v47, %v1536_v41 }
 0x11c   : > { %1316 = vadd.xlane.f32.xlu1 %v1315_v52  ;;  %v1603_v58 = vadd.f32 %v1475_v53, %v1474_v50 }
 0x11d   : > { %v1699_v59 = vadd.f32 %v1539_v55, %v1538_v51  ;;  %v4721_v55 = vpop.permute.xlu1 %3076 }
 0x11e   : > { %1313 = vadd.xlane.f32.xlu0 %v1312_v45  ;;  %v4679_v62 = vpop.f32.mrb[4].mxu0  ;;  %v4681_v63 = vpop.f32.mrb[4].mxu1  ;;  %7626 = vst [vmem:[#allocation48_spill] sm:$0xff] %v4721_v55 }
 0x11f   : > { %7618 = vst [vmem:[#allocation40_spill] sm:$0xff] %v4679_v62  ;;  %7619 = vst [vmem:[#allocation41_spill] sm:$0xff] %v4681_v63  ;;  %v4683_v0 = vpop.f32.mrb[5].mxu0  ;;  %v4685_v1 = vpop.f32.mrb[5].mxu1  ;;  %v1476_v2 = vmul.f32 %v4679_v62, %v4679_v62  ;;  %v1540_v3 = vmul.f32 %v4681_v63, %v4681_v63 }
 0x120   : > { %7620 = vst [vmem:[#allocation42_spill] sm:$0xff] %v4683_v0  ;;  %7621 = vst [vmem:[#allocation43_spill] sm:$0xff] %v4685_v1  ;;  %1604 = vadd.xlane.f32.xlu1 %v1603_v58  ;;  %v4691_v4 = vpop.f32.mrb[6].mxu0  ;;  %v1222_v5 = vadd.f32 %v4683_v0, %v4679_v62  ;;  %v4695_v6 = vpop.f32.mrb[6].mxu1  ;;  %v1318_v7 = vadd.f32 %v4685_v1, %v4681_v63  ;;  %v1477_v8 = vmul.f32 %v4683_v0, %v4683_v0 }
 0x121   : > { %7622 = vst [vmem:[#allocation44_spill] sm:$0xff] %v4691_v4  ;;  %7623 = vst [vmem:[#allocation45_spill] sm:$0xff] %v4695_v6  ;;  %v1541_v9 = vmul.f32 %v4685_v1, %v4685_v1  ;;  %v4703_v10 = vpop.f32.mrb[7].mxu0  ;;  %v4705_v40 = vpop.f32.mrb[7].mxu1  ;;  %v1478_v41 = vmul.f32 %v4691_v4, %v4691_v4  ;;  %v1542_v44 = vmul.f32 %v4695_v6, %v4695_v6 }
 0x122   : > { %7624 = vst [vmem:[#allocation46_spill] sm:$0xff] %v4703_v10  ;;  %7625 = vst [vmem:[#allocation47_spill] sm:$0xff] %v4705_v40  ;;  %1220 = vadd.xlane.f32.xlu0 %v1219_v54  ;;  %v1225_v45 = vadd.f32 %v4703_v10, %v4691_v4  ;;  %v1321_v46 = vadd.f32 %v4705_v40, %v4695_v6  ;;  %v1606_v47 = vadd.f32 %v1477_v8, %v1476_v2  ;;  %v4723_v54 = vpop.permute.xlu0 %3091  ;;  %v4781_v26 = vpop.permute.xlu1 %3086 }
 0x123   : > { %v1479_v50 = vmul.f32 %v4703_v10, %v4703_v10  ;;  %v4717_v51 = vadd.f32 %v1541_v9, %v1540_v3  ;;  %v1543_v52 = vmul.f32 %v4705_v40, %v4705_v40  ;;  %7627 = vst [vmem:[#allocation49_spill] sm:$0xff] %v4723_v54  ;;  %7636 = vst [vmem:[#allocation58_spill] sm:$0xff] %v4781_v26 }
 0x124   : > { %1700 = vadd.xlane.f32.xlu1 %v1699_v59 }
 0x125   : > { %v1609_v53 = vadd.f32 %v1479_v50, %v1478_v41  ;;  %v4725_v58 = vadd.f32 %v1543_v52, %v1542_v44 }
 0x126   : > { %1601 = vadd.xlane.f32.xlu0 %v1600_v56  ;;  %v4727_v61 = vpop.f32.mrb[8].mxu0  ;;  %v4729_v2 = vpop.f32.mrb[8].mxu1 }
 0x127   : > { %7628 = vst [vmem:[#allocation50_spill] sm:$0xff] %v4727_v61  ;;  %7629 = vst [vmem:[#allocation51_spill] sm:$0xff] %v4729_v2  ;;  %v4731_v8 = vpop.f32.mrb[9].mxu0  ;;  %v4733_v3 = vpop.f32.mrb[9].mxu1  ;;  %v1480_v9 = vmul.f32 %v4727_v61, %v4727_v61  ;;  %v1544_v59 = vmul.f32 %v4729_v2, %v4729_v2 }
 0x128   : > { %7630 = vst [vmem:[#allocation52_spill] sm:$0xff] %v4731_v8  ;;  %7631 = vst [vmem:[#allocation53_spill] sm:$0xff] %v4733_v3  ;;  %1223 = vadd.xlane.f32.xlu1 %v1222_v5  ;;  %v4739_v41 = vpop.f32.mrb[10].mxu0  ;;  %v4741_v44 = vpop.f32.mrb[10].mxu1  ;;  %v4745_v56 = vadd.f32 %v4731_v8, %v4727_v61  ;;  %v4749_v50 = vadd.f32 %v4733_v3, %v4729_v2  ;;  %v1481_v52 = vmul.f32 %v4731_v8, %v4731_v8 }
 0x129   : > { %7632 = vst [vmem:[#allocation54_spill] sm:$0xff] %v4739_v41  ;;  %7633 = vst [vmem:[#allocation55_spill] sm:$0xff] %v4741_v44  ;;  %v1545_v54 = vmul.f32 %v4733_v3, %v4733_v3  ;;  %v4755_v55 = vpop.f32.mrb[11].mxu0  ;;  %v4757_v5 = vpop.f32.mrb[11].mxu1  ;;  %v1482_v60 = vmul.f32 %v4739_v41, %v4739_v41  ;;  %v1546_v34 = vmul.f32 %v4741_v44, %v4741_v44 }
 0x12a   : > { %7634 = vst [vmem:[#allocation56_spill] sm:$0xff] %v4755_v55  ;;  %7635 = vst [vmem:[#allocation57_spill] sm:$0xff] %v4757_v5  ;;  %1697 = vadd.xlane.f32.xlu0 %v1696_v57  ;;  %v4765_v35 = vadd.f32 %v4755_v55, %v4739_v41  ;;  %v4769_v32 = vadd.f32 %v4757_v5, %v4741_v44  ;;  %v4771_v30 = vadd.f32 %v1481_v52, %v1480_v9  ;;  %v4783_v29 = vpop.permute.xlu0 %3101  ;;  %v4841_v19 = vpop.permute.xlu1 %3096 }
 0x12b   : > { %v1483_v33 = vmul.f32 %v4755_v55, %v4755_v55  ;;  %v4775_v28 = vadd.f32 %v1545_v54, %v1544_v59  ;;  %v1547_v31 = vmul.f32 %v4757_v5, %v4757_v5  ;;  %7637 = vst [vmem:[#allocation59_spill] sm:$0xff] %v4783_v29  ;;  %7646 = vst [vmem:[#allocation68_spill] sm:$0xff] %v4841_v19 }
 0x12c   : > { %1226 = vadd.xlane.f32.xlu1 %v1225_v45 }
 0x12d   : > { %v4779_v57 = vadd.f32 %v1483_v33, %v1482_v60  ;;  %v4785_v24 = vadd.f32 %v1547_v31, %v1546_v34 }
 0x12e   : > { %1319 = vadd.xlane.f32.xlu0 %v1318_v7  ;;  %v4787_v9 = vpop.f32.mrb[12].mxu0  ;;  %v4789_v52 = vpop.f32.mrb[12].mxu1 }
 0x12f   : > { %7638 = vst [vmem:[#allocation60_spill] sm:$0xff] %v4787_v9  ;;  %7639 = vst [vmem:[#allocation61_spill] sm:$0xff] %v4789_v52  ;;  %v4791_v27 = vpop.f32.mrb[13].mxu0  ;;  %v4793_v54 = vpop.f32.mrb[13].mxu1  ;;  %v1484_v45 = vmul.f32 %v4787_v9, %v4787_v9  ;;  %v1548_v33 = vmul.f32 %v4789_v52, %v4789_v52 }
 0x130   : > { %7640 = vst [vmem:[#allocation62_spill] sm:$0xff] %v4791_v27  ;;  %7641 = vst [vmem:[#allocation63_spill] sm:$0xff] %v4793_v54  ;;  %1322 = vadd.xlane.f32.xlu1 %v1321_v46  ;;  %v4799_v60 = vpop.f32.mrb[14].mxu0  ;;  %v4801_v31 = vpop.f32.mrb[14].mxu1  ;;  %v4805_v34 = vadd.f32 %v4791_v27, %v4787_v9  ;;  %v4809_v7 = vadd.f32 %v4793_v54, %v4789_v52  ;;  %v1485_v59 = vmul.f32 %v4791_v27, %v4791_v27 }
 0x131   : > { %7642 = vst [vmem:[#allocation64_spill] sm:$0xff] %v4799_v60  ;;  %7643 = vst [vmem:[#allocation65_spill] sm:$0xff] %v4801_v31  ;;  %v1549_v29 = vmul.f32 %v4793_v54, %v4793_v54  ;;  %v4815_v26 = vpop.f32.mrb[15].mxu0  ;;  %v4817_v46 = vpop.f32.mrb[15].mxu1  ;;  %v1486_v22 = vmul.f32 %v4799_v60, %v4799_v60  ;;  %v1550_v25 = vmul.f32 %v4801_v31, %v4801_v31 }
 0x132   : > { %7644 = vst [vmem:[#allocation66_spill] sm:$0xff] %v4815_v26  ;;  %7645 = vst [vmem:[#allocation67_spill] sm:$0xff] %v4817_v46  ;;  %1607 = vadd.xlane.f32.xlu0 %v1606_v47  ;;  %v4825_v20 = vadd.f32 %v4815_v26, %v4799_v60  ;;  %v4829_v17 = vadd.f32 %v4817_v46, %v4801_v31  ;;  %v4831_v23 = vadd.f32 %v1485_v59, %v1484_v45  ;;  %v4843_v16 = vpop.permute.xlu0 %3111  ;;  %v4907_v52 = vpop.permute.xlu1 %3106 }
 0x133   : > { %v1487_v18 = vmul.f32 %v4815_v26, %v4815_v26  ;;  %v4835_v21 = vadd.f32 %v1549_v29, %v1548_v33  ;;  %v1551_v15 = vmul.f32 %v4817_v46, %v4817_v46  ;;  %7647 = vst [vmem:[#allocation69_spill] sm:$0xff] %v4843_v16  ;;  %7656 = vst [vmem:[#allocation78_spill] sm:$0xff] %v4907_v52 }
 0x134   : > { %1610 = vadd.xlane.f32.xlu1 %v1609_v53 }
 0x135   : > { %v4839_v47 = vadd.f32 %v1487_v18, %v1486_v22  ;;  %v4845_v13 = vadd.f32 %v1551_v15, %v1550_v25 }
 0x136   : > { %1703 = vadd.xlane.f32.xlu0 %v4717_v51  ;;  %v4848_v45 = vpop.f32.mrb[16].mxu0  ;;  %v4850_v59 = vpop.f32.mrb[16].mxu1 }
 0x137   : > { %7648 = vst [vmem:[#allocation70_spill] sm:$0xff] %v4848_v45  ;;  %7649 = vst [vmem:[#allocation71_spill] sm:$0xff] %v4850_v59  ;;  %v1488_v29 = vmul.f32 %v4848_v45, %v4848_v45  ;;  %v4854_v33 = vpop.f32.mrb[17].mxu0  ;;  %v1552_v18 = vmul.f32 %v4850_v59, %v4850_v59  ;;  %v4858_v22 = vpop.f32.mrb[17].mxu1 }
 0x138   : > { %7650 = vst [vmem:[#allocation72_spill] sm:$0xff] %v4854_v33  ;;  %7651 = vst [vmem:[#allocation73_spill] sm:$0xff] %v4858_v22  ;;  %1706 = vadd.xlane.f32.xlu1 %v4725_v58  ;;  %v1489_v15 = vmul.f32 %v4854_v33, %v4854_v33  ;;  %v4863_v25 = vpop.f32.mrb[18].mxu0  ;;  %v1553_v51 = vmul.f32 %v4858_v22, %v4858_v22  ;;  %v4867_v53 = vpop.f32.mrb[18].mxu1  ;;  %v4871_v19 = vadd.f32 %v4854_v33, %v4848_v45 }
 0x139   : > { %7652 = vst [vmem:[#allocation74_spill] sm:$0xff] %v4863_v25  ;;  %7653 = vst [vmem:[#allocation75_spill] sm:$0xff] %v4867_v53  ;;  %v4875_v14 = vadd.f32 %v4858_v22, %v4850_v59  ;;  %v1490_v58 = vmul.f32 %v4863_v25, %v4863_v25  ;;  %v4879_v16 = vpop.f32.mrb[19].mxu0  ;;  %v1554_v11 = vmul.f32 %v4867_v53, %v4867_v53  ;;  %v4883_v12 = vpop.f32.mrb[19].mxu1 }
 0x13a   : > { %7654 = vst [vmem:[#allocation76_spill] sm:$0xff] %v4879_v16  ;;  %7655 = vst [vmem:[#allocation77_spill] sm:$0xff] %v4883_v12  ;;  %1229 = vadd.xlane.f32.xlu0 %v4745_v56  ;;  %v1491_v33 = vmul.f32 %v4879_v16, %v4879_v16  ;;  %v1555_v45 = vmul.f32 %v4883_v12, %v4883_v12  ;;  %v4892_v22 = vadd.f32 %v4879_v16, %v4863_v25  ;;  %v4909_v26 = vpop.permute.xlu0 %3121  ;;  %v4971_v27 = vpop.permute.xlu1 %3116 }
 0x13b   : > { %v4896_v59 = vadd.f32 %v4883_v12, %v4867_v53  ;;  %v4898_v46 = vadd.f32 %v1489_v15, %v1488_v29  ;;  %v4900_v31 = vadd.f32 %v1553_v51, %v1552_v18  ;;  %7657 = vst [vmem:[#allocation79_spill] sm:$0xff] %v4909_v26  ;;  %7666 = vst [vmem:[#allocation88_spill] sm:$0xff] %v4971_v27 }
 0x13c   : > { %1232 = vadd.xlane.f32.xlu1 %v4765_v35  ;;  %v4903_v56 = vadd.f32 %v1491_v33, %v1490_v58  ;;  %v4905_v54 = vadd.f32 %v1555_v45, %v1554_v11 }
 0x13e   : > { %1325 = vadd.xlane.f32.xlu0 %v4749_v50  ;;  %v4912_v16 = vpop.f32.mrb[20].mxu0  ;;  %v4914_v12 = vpop.f32.mrb[20].mxu1 }
 0x13f   : > { %7658 = vst [vmem:[#allocation80_spill] sm:$0xff] %v4912_v16  ;;  %7659 = vst [vmem:[#allocation81_spill] sm:$0xff] %v4914_v12  ;;  %v1492_v29 = vmul.f32 %v4912_v16, %v4912_v16  ;;  %v4918_v18 = vpop.f32.mrb[21].mxu0  ;;  %v1556_v35 = vmul.f32 %v4914_v12, %v4914_v12  ;;  %v4922_v11 = vpop.f32.mrb[21].mxu1 }
 0x140   : > { %7660 = vst [vmem:[#allocation82_spill] sm:$0xff] %v4918_v18  ;;  %7661 = vst [vmem:[#allocation83_spill] sm:$0xff] %v4922_v11  ;;  %1328 = vadd.xlane.f32.xlu1 %v4769_v32  ;;  %v4927_v45 = vadd.f32 %v4918_v18, %v4912_v16  ;;  %v1493_v50 = vmul.f32 %v4918_v18, %v4918_v18  ;;  %v4931_v33 = vpop.f32.mrb[22].mxu0  ;;  %v4935_v15 = vadd.f32 %v4922_v11, %v4914_v12  ;;  %v4939_v58 = vpop.f32.mrb[22].mxu1 }
 0x141   : > { %7662 = vst [vmem:[#allocation84_spill] sm:$0xff] %v4931_v33  ;;  %v1557_v51 = vmul.f32 %v4922_v11, %v4922_v11  ;;  %7663 = vst [vmem:[#allocation85_spill] sm:$0xff] %v4939_v58  ;;  %v1494_v32 = vmul.f32 %v4931_v33, %v4931_v33  ;;  %v4943_v26 = vpop.f32.mrb[23].mxu0  ;;  %v1558_v52 = vmul.f32 %v4939_v58, %v4939_v58  ;;  %v4947_v18 = vpop.f32.mrb[23].mxu1 }
 0x142   : > { %7664 = vst [vmem:[#allocation86_spill] sm:$0xff] %v4943_v26  ;;  %7665 = vst [vmem:[#allocation87_spill] sm:$0xff] %v4947_v18  ;;  %1613 = vadd.xlane.f32.xlu0 %v4771_v30  ;;  %v4952_v12 = vadd.f32 %v4943_v26, %v4931_v33  ;;  %v1495_v11 = vmul.f32 %v4943_v26, %v4943_v26  ;;  %v4958_v16 = vadd.f32 %v4947_v18, %v4939_v58  ;;  %v4973_v26 = vpop.permute.xlu0 %3131  ;;  %v5035_v3 = vpop.permute.xlu1 %3126 }
 0x143   : > { %v1559_v53 = vmul.f32 %v4947_v18, %v4947_v18  ;;  %v4962_v25 = vadd.f32 %v1493_v50, %v1492_v29  ;;  %v4964_v60 = vadd.f32 %v1557_v51, %v1556_v35  ;;  %7667 = vst [vmem:[#allocation89_spill] sm:$0xff] %v4973_v26  ;;  %7676 = vst [vmem:[#allocation98_spill] sm:$0xff] %v5035_v3 }
 0x144   : > { %1616 = vadd.xlane.f32.xlu1 %v4779_v57  ;;  %v4967_v30 = vadd.f32 %v1495_v11, %v1494_v32 }
 0x145   : > { %v4969_v33 = vadd.f32 %v1559_v53, %v1558_v52 }
 0x146   : > { %1709 = vadd.xlane.f32.xlu0 %v4775_v28  ;;  %v4976_v58 = vpop.f32.mrb[24].mxu0  ;;  %v4978_v9 = vpop.f32.mrb[24].mxu1 }
 0x147   : > { %7668 = vst [vmem:[#allocation90_spill] sm:$0xff] %v4976_v58  ;;  %7669 = vst [vmem:[#allocation91_spill] sm:$0xff] %v4978_v9  ;;  %v1496_v29 = vmul.f32 %v4976_v58, %v4976_v58  ;;  %v4982_v35 = vpop.f32.mrb[25].mxu0  ;;  %v1560_v57 = vmul.f32 %v4978_v9, %v4978_v9  ;;  %v4986_v52 = vpop.f32.mrb[25].mxu1 }
 0x148   : > { %7670 = vst [vmem:[#allocation92_spill] sm:$0xff] %v4982_v35  ;;  %7671 = vst [vmem:[#allocation93_spill] sm:$0xff] %v4986_v52  ;;  %1712 = vadd.xlane.f32.xlu1 %v4785_v24  ;;  %v4991_v53 = vadd.f32 %v4982_v35, %v4976_v58  ;;  %v1497_v28 = vmul.f32 %v4982_v35, %v4982_v35  ;;  %v4995_v11 = vpop.f32.mrb[26].mxu0  ;;  %v4999_v50 = vadd.f32 %v4986_v52, %v4978_v9  ;;  %v5003_v32 = vpop.f32.mrb[26].mxu1 }
 0x149   : > { %7672 = vst [vmem:[#allocation94_spill] sm:$0xff] %v4995_v11  ;;  %v1561_v51 = vmul.f32 %v4986_v52, %v4986_v52  ;;  %7673 = vst [vmem:[#allocation95_spill] sm:$0xff] %v5003_v32  ;;  %v1498_v24 = vmul.f32 %v4995_v11, %v4995_v11  ;;  %v5007_v26 = vpop.f32.mrb[27].mxu0  ;;  %v1562_v27 = vmul.f32 %v5003_v32, %v5003_v32  ;;  %v5011_v35 = vpop.f32.mrb[27].mxu1 }
 0x14a   : > { %7674 = vst [vmem:[#allocation96_spill] sm:$0xff] %v5007_v26  ;;  %7675 = vst [vmem:[#allocation97_spill] sm:$0xff] %v5011_v35  ;;  %1235 = vadd.xlane.f32.xlu0 %v4805_v34  ;;  %v5016_v9 = vadd.f32 %v5007_v26, %v4995_v11  ;;  %v1499_v52 = vmul.f32 %v5007_v26, %v5007_v26  ;;  %v5022_v58 = vadd.f32 %v5011_v35, %v5003_v32  ;;  %v5037_v26 = vpop.permute.xlu0 %3141  ;;  %v5099_v8 = vpop.permute.xlu1 %3136 }
 0x14b   : > { %v1563_v18 = vmul.f32 %v5011_v35, %v5011_v35  ;;  %v5026_v5 = vadd.f32 %v1497_v28, %v1496_v29  ;;  %v5028_v44 = vadd.f32 %v1561_v51, %v1560_v57  ;;  %7677 = vst [vmem:[#allocation99_spill] sm:$0xff] %v5037_v26  ;;  %7686 = vst [vmem:[#allocation108_spill] sm:$0xff] %v5099_v8 }
 0x14c   : > { %1238 = vadd.xlane.f32.xlu1 %v4825_v20  ;;  %v5031_v34 = vadd.f32 %v1499_v52, %v1498_v24 }
 0x14d   : > { %v5033_v11 = vadd.f32 %v1563_v18, %v1562_v27 }
 0x14e   : > { %1331 = vadd.xlane.f32.xlu0 %v4809_v7  ;;  %v5040_v32 = vpop.f32.mrb[28].mxu0  ;;  %v5042_v2 = vpop.f32.mrb[28].mxu1 }
 0x14f   : > { %7678 = vst [vmem:[#allocation100_spill] sm:$0xff] %v5040_v32  ;;  %7679 = vst [vmem:[#allocation101_spill] sm:$0xff] %v5042_v2  ;;  %v1500_v29 = vmul.f32 %v5040_v32, %v5040_v32  ;;  %v5046_v57 = vpop.f32.mrb[29].mxu0  ;;  %v1564_v20 = vmul.f32 %v5042_v2, %v5042_v2  ;;  %v5050_v27 = vpop.f32.mrb[29].mxu1 }
 0x150   : > { %7680 = vst [vmem:[#allocation102_spill] sm:$0xff] %v5046_v57  ;;  %7681 = vst [vmem:[#allocation103_spill] sm:$0xff] %v5050_v27  ;;  %1334 = vadd.xlane.f32.xlu1 %v4829_v17  ;;  %v5055_v18 = vadd.f32 %v5046_v57, %v5040_v32  ;;  %v1501_v7 = vmul.f32 %v5046_v57, %v5046_v57  ;;  %v5059_v52 = vpop.f32.mrb[30].mxu0  ;;  %v5063_v28 = vadd.f32 %v5050_v27, %v5042_v2  ;;  %v5067_v24 = vpop.f32.mrb[30].mxu1 }
 0x151   : > { %7682 = vst [vmem:[#allocation104_spill] sm:$0xff] %v5059_v52  ;;  %v1565_v51 = vmul.f32 %v5050_v27, %v5050_v27  ;;  %7683 = vst [vmem:[#allocation105_spill] sm:$0xff] %v5067_v24  ;;  %v1502_v17 = vmul.f32 %v5059_v52, %v5059_v52  ;;  %v5071_v3 = vpop.f32.mrb[31].mxu0  ;;  %v1566_v26 = vmul.f32 %v5067_v24, %v5067_v24  ;;  %v5075_v57 = vpop.f32.mrb[31].mxu1 }
 0x152   : > { %7684 = vst [vmem:[#allocation106_spill] sm:$0xff] %v5071_v3  ;;  %7685 = vst [vmem:[#allocation107_spill] sm:$0xff] %v5075_v57  ;;  %1619 = vadd.xlane.f32.xlu0 %v4831_v23  ;;  %v5080_v2 = vadd.f32 %v5071_v3, %v5059_v52  ;;  %v1503_v27 = vmul.f32 %v5071_v3, %v5071_v3  ;;  %v5086_v32 = vadd.f32 %v5075_v57, %v5067_v24  ;;  %v5101_v3 = vpop.permute.xlu0 %3151  ;;  %v5163_v1 = vpop.permute.xlu1 %3146 }
 0x153   : > { %v1567_v35 = vmul.f32 %v5075_v57, %v5075_v57  ;;  %v5090_v55 = vadd.f32 %v1501_v7, %v1500_v29  ;;  %v5092_v41 = vadd.f32 %v1565_v51, %v1564_v20  ;;  %7687 = vst [vmem:[#allocation109_spill] sm:$0xff] %v5101_v3  ;;  %7696 = vst [vmem:[#allocation118_spill] sm:$0xff] %v5163_v1 }
 0x154   : > { %1622 = vadd.xlane.f32.xlu1 %v4839_v47  ;;  %v5095_v23 = vadd.f32 %v1503_v27, %v1502_v17 }
 0x155   : > { %v5097_v52 = vadd.f32 %v1567_v35, %v1566_v26 }
 0x156   : > { %1715 = vadd.xlane.f32.xlu0 %v4835_v21  ;;  %v5104_v24 = vpop.f32.mrb[32].mxu0  ;;  %v5106_v61 = vpop.f32.mrb[32].mxu1 }
 0x157   : > { %7688 = vst [vmem:[#allocation110_spill] sm:$0xff] %v5104_v24  ;;  %7689 = vst [vmem:[#allocation111_spill] sm:$0xff] %v5106_v61  ;;  %v1504_v29 = vmul.f32 %v5104_v24, %v5104_v24  ;;  %v5110_v20 = vpop.f32.mrb[33].mxu0  ;;  %v1568_v47 = vmul.f32 %v5106_v61, %v5106_v61  ;;  %v5114_v26 = vpop.f32.mrb[33].mxu1 }
 0x158   : > { %7690 = vst [vmem:[#allocation112_spill] sm:$0xff] %v5110_v20  ;;  %7691 = vst [vmem:[#allocation113_spill] sm:$0xff] %v5114_v26  ;;  %1718 = vadd.xlane.f32.xlu1 %v4845_v13  ;;  %v5119_v35 = vadd.f32 %v5110_v20, %v5104_v24  ;;  %v1505_v21 = vmul.f32 %v5110_v20, %v5110_v20  ;;  %v5123_v27 = vpop.f32.mrb[34].mxu0  ;;  %v5127_v7 = vadd.f32 %v5114_v26, %v5106_v61  ;;  %v5131_v17 = vpop.f32.mrb[34].mxu1 }
 0x159   : > { %7692 = vst [vmem:[#allocation114_spill] sm:$0xff] %v5123_v27  ;;  %v1569_v51 = vmul.f32 %v5114_v26, %v5114_v26  ;;  %7693 = vst [vmem:[#allocation115_spill] sm:$0xff] %v5131_v17  ;;  %v1506_v13 = vmul.f32 %v5123_v27, %v5123_v27  ;;  %v5135_v8 = vpop.f32.mrb[35].mxu0  ;;  %v1570_v3 = vmul.f32 %v5131_v17, %v5131_v17  ;;  %v5139_v20 = vpop.f32.mrb[35].mxu1 }
 0x15a   : > { %7694 = vst [vmem:[#allocation116_spill] sm:$0xff] %v5135_v8  ;;  %7695 = vst [vmem:[#allocation117_spill] sm:$0xff] %v5139_v20  ;;  %1241 = vadd.xlane.f32.xlu0 %v4871_v19  ;;  %v5144_v61 = vadd.f32 %v5135_v8, %v5123_v27  ;;  %v1507_v26 = vmul.f32 %v5135_v8, %v5135_v8  ;;  %v5150_v24 = vadd.f32 %v5139_v20, %v5131_v17  ;;  %v5165_v8 = vpop.permute.xlu0 %3161  ;;  %v5227_v0 = vpop.permute.xlu1 %3156 }
 0x15b   : > { %v1571_v57 = vmul.f32 %v5139_v20, %v5139_v20  ;;  %v5154_v40 = vadd.f32 %v1505_v21, %v1504_v29  ;;  %v5156_v6 = vadd.f32 %v1569_v51, %v1568_v47  ;;  %7697 = vst [vmem:[#allocation119_spill] sm:$0xff] %v5165_v8  ;;  %7706 = vst [vmem:[#allocation128_spill] sm:$0xff] %v5227_v0 }
 0x15c   : > { %1244 = vadd.xlane.f32.xlu1 %v4892_v22  ;;  %v5159_v19 = vadd.f32 %v1507_v26, %v1506_v13 }
 0x15d   : > { %v5161_v27 = vadd.f32 %v1571_v57, %v1570_v3 }
 0x15e   : > { %1337 = vadd.xlane.f32.xlu0 %v4875_v14  ;;  %v5168_v17 = vpop.f32.mrb[36].mxu0  ;;  %v5170_v63 = vpop.f32.mrb[36].mxu1 }
 0x15f   : > { %7698 = vst [vmem:[#allocation120_spill] sm:$0xff] %v5168_v17  ;;  %7699 = vst [vmem:[#allocation121_spill] sm:$0xff] %v5170_v63  ;;  %v1508_v29 = vmul.f32 %v5168_v17, %v5168_v17  ;;  %v5174_v47 = vpop.f32.mrb[37].mxu0  ;;  %v1572_v22 = vmul.f32 %v5170_v63, %v5170_v63  ;;  %v5178_v3 = vpop.f32.mrb[37].mxu1 }
 0x160   : > { %7700 = vst [vmem:[#allocation122_spill] sm:$0xff] %v5174_v47  ;;  %7701 = vst [vmem:[#allocation123_spill] sm:$0xff] %v5178_v3  ;;  %1340 = vadd.xlane.f32.xlu1 %v4896_v59  ;;  %v5183_v57 = vadd.f32 %v5174_v47, %v5168_v17  ;;  %v1509_v14 = vmul.f32 %v5174_v47, %v5174_v47  ;;  %v5187_v26 = vpop.f32.mrb[38].mxu0  ;;  %v5191_v21 = vadd.f32 %v5178_v3, %v5170_v63  ;;  %v5195_v13 = vpop.f32.mrb[38].mxu1 }
 0x161   : > { %7702 = vst [vmem:[#allocation124_spill] sm:$0xff] %v5187_v26  ;;  %v1573_v51 = vmul.f32 %v5178_v3, %v5178_v3  ;;  %7703 = vst [vmem:[#allocation125_spill] sm:$0xff] %v5195_v13  ;;  %v1510_v59 = vmul.f32 %v5187_v26, %v5187_v26  ;;  %v5199_v1 = vpop.f32.mrb[39].mxu0  ;;  %v1574_v8 = vmul.f32 %v5195_v13, %v5195_v13  ;;  %v5203_v47 = vpop.f32.mrb[39].mxu1 }
 0x162   : > { %7704 = vst [vmem:[#allocation126_spill] sm:$0xff] %v5199_v1  ;;  %7705 = vst [vmem:[#allocation127_spill] sm:$0xff] %v5203_v47  ;;  %1625 = vadd.xlane.f32.xlu0 %v4898_v46  ;;  %v5208_v63 = vadd.f32 %v5199_v1, %v5187_v26  ;;  %v1511_v3 = vmul.f32 %v5199_v1, %v5199_v1  ;;  %v5214_v17 = vadd.f32 %v5203_v47, %v5195_v13  ;;  %v5229_v1 = vpop.permute.xlu0 %3171 }
 0x163   : > { %v1575_v20 = vmul.f32 %v5203_v47, %v5203_v47  ;;  %v5218_v10 = vadd.f32 %v1509_v14, %v1508_v29  ;;  %v5220_v4 = vadd.f32 %v1573_v51, %v1572_v22  ;;  %7707 = vst [vmem:[#allocation129_spill] sm:$0xff] %v5229_v1 }
 0x164   : > { %1628 = vadd.xlane.f32.xlu1 %v4903_v56  ;;  %v5223_v46 = vadd.f32 %v1511_v3, %v1510_v59 }
 0x165   : > { %v5225_v26 = vadd.f32 %v1575_v20, %v1574_v8 }
 0x166   : > { %1721 = vadd.xlane.f32.xlu0 %v4900_v31  ;;  %v5232_v13 = vpop.f32.mrb[40].mxu0  ;;  %v5234_v62 = vpop.f32.mrb[40].mxu1 }
 0x167   : > { %7708 = vst [vmem:[#allocation130_spill] sm:$0xff] %v5232_v13  ;;  %7709 = vst [vmem:[#allocation131_spill] sm:$0xff] %v5234_v62  ;;  %v1512_v29 = vmul.f32 %v5232_v13, %v5232_v13  ;;  %v5238_v22 = vpop.f32.mrb[41].mxu0  ;;  %v1576_v56 = vmul.f32 %v5234_v62, %v5234_v62  ;;  %v5242_v8 = vpop.f32.mrb[41].mxu1 }
 0x168   : > { %7710 = vst [vmem:[#allocation132_spill] sm:$0xff] %v5238_v22  ;;  %7711 = vst [vmem:[#allocation133_spill] sm:$0xff] %v5242_v8  ;;  %1724 = vadd.xlane.f32.xlu1 %v4905_v54  ;;  %v5247_v20 = vadd.f32 %v5238_v22, %v5232_v13  ;;  %v1513_v31 = vmul.f32 %v5238_v22, %v5238_v22  ;;  %v5251_v3 = vpop.f32.mrb[42].mxu0  ;;  %v5255_v14 = vadd.f32 %v5242_v8, %v5234_v62  ;;  %v5259_v59 = vpop.f32.mrb[42].mxu1 }
 0x169   : > { %7713 = vst [vmem:[#allocation135_spill] sm:$0xff] %v5251_v3  ;;  %v1577_v51 = vmul.f32 %v5242_v8, %v5242_v8  ;;  %7715 = vst [vmem:[#allocation137_spill] sm:$0xff] %v5259_v59  ;;  %v1514_v54 = vmul.f32 %v5251_v3, %v5251_v3  ;;  %v5263_v0 = vpop.f32.mrb[43].mxu0  ;;  %v1578_v1 = vmul.f32 %v5259_v59, %v5259_v59  ;;  %v5267_v22 = vpop.f32.mrb[43].mxu1 }
 0x16a   : > { %7712 = vst [vmem:[#allocation134_spill] sm:$0xff] %v5247_v20  ;;  %7714 = vst [vmem:[#allocation136_spill] sm:$0xff] %v5255_v14  ;;  %1247 = vadd.xlane.f32.xlu0 %v4927_v45  ;;  %v5272_v62 = vadd.f32 %v5263_v0, %v5251_v3  ;;  %v1515_v8 = vmul.f32 %v5263_v0, %v5263_v0  ;;  %v5278_v13 = vadd.f32 %v5267_v22, %v5259_v59 }
 0x16b   : > { %7716 = vst [vmem:[#allocation138_spill] sm:$0xff] %v5263_v0  ;;  %7717 = vst [vmem:[#allocation139_spill] sm:$0xff] %v5267_v22  ;;  %v1579_v47 = vmul.f32 %v5267_v22, %v5267_v22  ;;  %v5282_v14 = vadd.f32 %v1513_v31, %v1512_v29  ;;  %v5284_v20 = vadd.f32 %v1577_v51, %v1576_v56  ;;  %v5293_v0 = vpop.permute.xlu0 %3181 }
 0x16c   : > { %7718 = vst [vmem:[#allocation140_spill] sm:$0xff] %v5272_v62  ;;  %7719 = vst [vmem:[#allocation141_spill] sm:$0xff] %v5278_v13  ;;  %1250 = vadd.xlane.f32.xlu1 %v4952_v12  ;;  %v5287_v45 = vadd.f32 %v1515_v8, %v1514_v54  ;;  %v5291_v62 = vpop.permute.xlu1 %3166 }
 0x16d   : > { %v5289_v3 = vadd.f32 %v1579_v47, %v1578_v1  ;;  %7720 = vst [vmem:[#allocation142_spill] sm:$0xff] %v5291_v62  ;;  %7721 = vst [vmem:[#allocation143_spill] sm:$0xff] %v5293_v0 }
 0x16e   : > { %1343 = vadd.xlane.f32.xlu0 %v4935_v15  ;;  %v5296_v59 = vpop.f32.mrb[44].mxu0  ;;  %v5298_v13 = vpop.f32.mrb[44].mxu1 }
 0x16f   : > { %7722 = vst [vmem:[#allocation144_spill] sm:$0xff] %v5296_v59  ;;  %7723 = vst [vmem:[#allocation145_spill] sm:$0xff] %v5298_v13  ;;  %v1516_v29 = vmul.f32 %v5296_v59, %v5296_v59  ;;  %v5302_v56 = vpop.f32.mrb[45].mxu0  ;;  %v1580_v12 = vmul.f32 %v5298_v13, %v5298_v13  ;;  %v5306_v1 = vpop.f32.mrb[45].mxu1 }
 0x170   : > { %7724 = vst [vmem:[#allocation146_spill] sm:$0xff] %v5302_v56  ;;  %7725 = vst [vmem:[#allocation147_spill] sm:$0xff] %v5306_v1  ;;  %1346 = vadd.xlane.f32.xlu1 %v4958_v16  ;;  %v5311_v47 = vadd.f32 %v5302_v56, %v5296_v59  ;;  %v1517_v15 = vmul.f32 %v5302_v56, %v5302_v56  ;;  %v5315_v8 = vpop.f32.mrb[46].mxu0  ;;  %v5319_v31 = vadd.f32 %v5306_v1, %v5298_v13  ;;  %v5323_v54 = vpop.f32.mrb[46].mxu1 }
 0x171   : > { %7727 = vst [vmem:[#allocation149_spill] sm:$0xff] %v5315_v8  ;;  %v1581_v51 = vmul.f32 %v5306_v1, %v5306_v1  ;;  %7729 = vst [vmem:[#allocation151_spill] sm:$0xff] %v5323_v54  ;;  %v1518_v16 = vmul.f32 %v5315_v8, %v5315_v8  ;;  %v5327_v62 = vpop.f32.mrb[47].mxu0  ;;  %v1582_v0 = vmul.f32 %v5323_v54, %v5323_v54  ;;  %v5331_v56 = vpop.f32.mrb[47].mxu1 }
 0x172   : > { %7726 = vst [vmem:[#allocation148_spill] sm:$0xff] %v5311_v47  ;;  %7728 = vst [vmem:[#allocation150_spill] sm:$0xff] %v5319_v31  ;;  %1631 = vadd.xlane.f32.xlu0 %v4962_v25  ;;  %v5336_v13 = vadd.f32 %v5327_v62, %v5315_v8  ;;  %v1519_v1 = vmul.f32 %v5327_v62, %v5327_v62  ;;  %v5342_v59 = vadd.f32 %v5331_v56, %v5323_v54 }
 0x173   : > { %7730 = vst [vmem:[#allocation152_spill] sm:$0xff] %v5327_v62  ;;  %7731 = vst [vmem:[#allocation153_spill] sm:$0xff] %v5331_v56  ;;  %v1583_v22 = vmul.f32 %v5331_v56, %v5331_v56  ;;  %v5346_v31 = vadd.f32 %v1517_v15, %v1516_v29  ;;  %v5348_v47 = vadd.f32 %v1581_v51, %v1580_v12  ;;  %v5357_v62 = vpop.permute.xlu0 %3191 }
 0x174   : > { %7732 = vst [vmem:[#allocation154_spill] sm:$0xff] %v5336_v13  ;;  %7733 = vst [vmem:[#allocation155_spill] sm:$0xff] %v5342_v59  ;;  %1634 = vadd.xlane.f32.xlu1 %v4967_v30  ;;  %v5351_v25 = vadd.f32 %v1519_v1, %v1518_v16  ;;  %v5355_v13 = vpop.permute.xlu1 %3176 }
 0x175   : > { %v5353_v8 = vadd.f32 %v1583_v22, %v1582_v0  ;;  %7734 = vst [vmem:[#allocation156_spill] sm:$0xff] %v5355_v13  ;;  %7735 = vst [vmem:[#allocation157_spill] sm:$0xff] %v5357_v62 }
 0x176   : > { %1727 = vadd.xlane.f32.xlu0 %v4964_v60  ;;  %v5360_v54 = vpop.f32.mrb[48].mxu0  ;;  %v5362_v59 = vpop.f32.mrb[48].mxu1 }
 0x177   : > { %7736 = vst [vmem:[#allocation158_spill] sm:$0xff] %v5360_v54  ;;  %7737 = vst [vmem:[#allocation159_spill] sm:$0xff] %v5362_v59  ;;  %v1520_v29 = vmul.f32 %v5360_v54, %v5360_v54  ;;  %v5366_v12 = vpop.f32.mrb[49].mxu0  ;;  %v1584_v30 = vmul.f32 %v5362_v59, %v5362_v59  ;;  %v5370_v0 = vpop.f32.mrb[49].mxu1 }
 0x178   : > { %7738 = vst [vmem:[#allocation160_spill] sm:$0xff] %v5366_v12  ;;  %7739 = vst [vmem:[#allocation161_spill] sm:$0xff] %v5370_v0  ;;  %1730 = vadd.xlane.f32.xlu1 %v4969_v33  ;;  %v5375_v22 = vadd.f32 %v5366_v12, %v5360_v54  ;;  %v1521_v60 = vmul.f32 %v5366_v12, %v5366_v12  ;;  %v5379_v1 = vpop.f32.mrb[50].mxu0  ;;  %v5383_v15 = vadd.f32 %v5370_v0, %v5362_v59  ;;  %v5387_v16 = vpop.f32.mrb[50].mxu1 }
 0x179   : > { %7741 = vst [vmem:[#allocation163_spill] sm:$0xff] %v5379_v1  ;;  %v1585_v51 = vmul.f32 %v5370_v0, %v5370_v0  ;;  %7743 = vst [vmem:[#allocation165_spill] sm:$0xff] %v5387_v16  ;;  %v1522_v33 = vmul.f32 %v5379_v1, %v5379_v1  ;;  %v5391_v13 = vpop.f32.mrb[51].mxu0  ;;  %v1586_v62 = vmul.f32 %v5387_v16, %v5387_v16  ;;  %v5395_v12 = vpop.f32.mrb[51].mxu1 }
 0x17a   : > { %7740 = vst [vmem:[#allocation162_spill] sm:$0xff] %v5375_v22  ;;  %7742 = vst [vmem:[#allocation164_spill] sm:$0xff] %v5383_v15  ;;  %1253 = vadd.xlane.f32.xlu0 %v4991_v53  ;;  %v5400_v59 = vadd.f32 %v5391_v13, %v5379_v1  ;;  %v1523_v0 = vmul.f32 %v5391_v13, %v5391_v13  ;;  %v5406_v54 = vadd.f32 %v5395_v12, %v5387_v16 }
 0x17b   : > { %7744 = vst [vmem:[#allocation166_spill] sm:$0xff] %v5391_v13  ;;  %7745 = vst [vmem:[#allocation167_spill] sm:$0xff] %v5395_v12  ;;  %v1587_v56 = vmul.f32 %v5395_v12, %v5395_v12  ;;  %v5410_v15 = vadd.f32 %v1521_v60, %v1520_v29  ;;  %v5412_v22 = vadd.f32 %v1585_v51, %v1584_v30  ;;  %v5421_v13 = vpop.permute.xlu0 %3201 }
 0x17c   : > { %7746 = vst [vmem:[#allocation168_spill] sm:$0xff] %v5400_v59  ;;  %7747 = vst [vmem:[#allocation169_spill] sm:$0xff] %v5406_v54  ;;  %1256 = vadd.xlane.f32.xlu1 %v5016_v9  ;;  %v5415_v53 = vadd.f32 %v1523_v0, %v1522_v33  ;;  %v5419_v59 = vpop.permute.xlu1 %3186 }
 0x17d   : > { %v5417_v1 = vadd.f32 %v1587_v56, %v1586_v62  ;;  %7748 = vst [vmem:[#allocation170_spill] sm:$0xff] %v5419_v59  ;;  %7749 = vst [vmem:[#allocation171_spill] sm:$0xff] %v5421_v13 }
 0x17e   : > { %1349 = vadd.xlane.f32.xlu0 %v4999_v50  ;;  %v5424_v16 = vpop.f32.mrb[52].mxu0  ;;  %v5426_v54 = vpop.f32.mrb[52].mxu1 }
 0x17f   : > { %7750 = vst [vmem:[#allocation172_spill] sm:$0xff] %v5424_v16  ;;  %7751 = vst [vmem:[#allocation173_spill] sm:$0xff] %v5426_v54  ;;  %v1524_v29 = vmul.f32 %v5424_v16, %v5424_v16  ;;  %v5430_v30 = vpop.f32.mrb[53].mxu0  ;;  %v1588_v9 = vmul.f32 %v5426_v54, %v5426_v54  ;;  %v5434_v62 = vpop.f32.mrb[53].mxu1 }
 0x180   : > { %7752 = vst [vmem:[#allocation174_spill] sm:$0xff] %v5430_v30  ;;  %7753 = vst [vmem:[#allocation175_spill] sm:$0xff] %v5434_v62  ;;  %1352 = vadd.xlane.f32.xlu1 %v5022_v58  ;;  %v5439_v56 = vadd.f32 %v5430_v30, %v5424_v16  ;;  %v1525_v50 = vmul.f32 %v5430_v30, %v5430_v30  ;;  %v5443_v0 = vpop.f32.mrb[54].mxu0  ;;  %v5447_v60 = vadd.f32 %v5434_v62, %v5426_v54  ;;  %v5451_v33 = vpop.f32.mrb[54].mxu1 }
 0x181   : > { %7755 = vst [vmem:[#allocation177_spill] sm:$0xff] %v5443_v0  ;;  %v1589_v51 = vmul.f32 %v5434_v62, %v5434_v62  ;;  %7757 = vst [vmem:[#allocation179_spill] sm:$0xff] %v5451_v33  ;;  %v1526_v58 = vmul.f32 %v5443_v0, %v5443_v0  ;;  %v5455_v59 = vpop.f32.mrb[55].mxu0  ;;  %v1590_v13 = vmul.f32 %v5451_v33, %v5451_v33  ;;  %v5459_v30 = vpop.f32.mrb[55].mxu1 }
 0x182   : > { %7754 = vst [vmem:[#allocation176_spill] sm:$0xff] %v5439_v56  ;;  %7756 = vst [vmem:[#allocation178_spill] sm:$0xff] %v5447_v60  ;;  %1637 = vadd.xlane.f32.xlu0 %v5026_v5  ;;  %v5464_v54 = vadd.f32 %v5455_v59, %v5443_v0  ;;  %v1527_v62 = vmul.f32 %v5455_v59, %v5455_v59  ;;  %v5470_v16 = vadd.f32 %v5459_v30, %v5451_v33 }
 0x183   : > { %7758 = vst [vmem:[#allocation180_spill] sm:$0xff] %v5455_v59  ;;  %7759 = vst [vmem:[#allocation181_spill] sm:$0xff] %v5459_v30  ;;  %v1591_v12 = vmul.f32 %v5459_v30, %v5459_v30  ;;  %v5474_v60 = vadd.f32 %v1525_v50, %v1524_v29  ;;  %v5476_v56 = vadd.f32 %v1589_v51, %v1588_v9  ;;  %v5485_v59 = vpop.permute.xlu0 %3211  ;;  %v7837_v48 = vld [vmem:[#allocation168_spill] sm:$0xff] }
 0x184   : > { %7760 = vst [vmem:[#allocation182_spill] sm:$0xff] %v5464_v54  ;;  %7761 = vst [vmem:[#allocation183_spill] sm:$0xff] %v5470_v16  ;;  %1640 = vadd.xlane.f32.xlu1 %v5031_v34  ;;  %v5479_v5 = vadd.f32 %v1527_v62, %v1526_v58  ;;  %v5483_v54 = vpop.permute.xlu1 %3196 }
 0x185   : > { %v5481_v0 = vadd.f32 %v1591_v12, %v1590_v13  ;;  %7762 = vst [vmem:[#allocation184_spill] sm:$0xff] %v5483_v54  ;;  %7763 = vst [vmem:[#allocation185_spill] sm:$0xff] %v5485_v59 }
 0x186   : > { %1733 = vadd.xlane.f32.xlu0 %v5028_v44  ;;  %v5488_v33 = vpop.f32.mrb[56].mxu0  ;;  %v5490_v16 = vpop.f32.mrb[56].mxu1 }
 0x187   : > { %7764 = vst [vmem:[#allocation186_spill] sm:$0xff] %v5488_v33  ;;  %7765 = vst [vmem:[#allocation187_spill] sm:$0xff] %v5490_v16  ;;  %v1528_v29 = vmul.f32 %v5488_v33, %v5488_v33  ;;  %v5494_v9 = vpop.f32.mrb[57].mxu0  ;;  %v1592_v34 = vmul.f32 %v5490_v16, %v5490_v16  ;;  %v5498_v13 = vpop.f32.mrb[57].mxu1 }
 0x188   : > { %7766 = vst [vmem:[#allocation188_spill] sm:$0xff] %v5494_v9  ;;  %7767 = vst [vmem:[#allocation189_spill] sm:$0xff] %v5498_v13  ;;  %1736 = vadd.xlane.f32.xlu1 %v5033_v11  ;;  %v5503_v12 = vadd.f32 %v5494_v9, %v5488_v33  ;;  %v1529_v44 = vmul.f32 %v5494_v9, %v5494_v9  ;;  %v5507_v62 = vpop.f32.mrb[58].mxu0  ;;  %v5511_v50 = vadd.f32 %v5498_v13, %v5490_v16  ;;  %v5515_v58 = vpop.f32.mrb[58].mxu1 }
 0x189   : > { %7769 = vst [vmem:[#allocation191_spill] sm:$0xff] %v5507_v62  ;;  %v1593_v51 = vmul.f32 %v5498_v13, %v5498_v13  ;;  %7771 = vst [vmem:[#allocation193_spill] sm:$0xff] %v5515_v58  ;;  %v1530_v11 = vmul.f32 %v5507_v62, %v5507_v62  ;;  %v5519_v54 = vpop.f32.mrb[59].mxu0  ;;  %v1594_v59 = vmul.f32 %v5515_v58, %v5515_v58  ;;  %v5523_v9 = vpop.f32.mrb[59].mxu1 }
 0x18a   : > { %7768 = vst [vmem:[#allocation190_spill] sm:$0xff] %v5503_v12  ;;  %7770 = vst [vmem:[#allocation192_spill] sm:$0xff] %v5511_v50  ;;  %1259 = vadd.xlane.f32.xlu0 %v5055_v18  ;;  %v5528_v16 = vadd.f32 %v5519_v54, %v5507_v62  ;;  %v1531_v13 = vmul.f32 %v5519_v54, %v5519_v54  ;;  %v5534_v33 = vadd.f32 %v5523_v9, %v5515_v58 }
 0x18b   : > { %7772 = vst [vmem:[#allocation194_spill] sm:$0xff] %v5519_v54  ;;  %7773 = vst [vmem:[#allocation195_spill] sm:$0xff] %v5523_v9  ;;  %v1595_v30 = vmul.f32 %v5523_v9, %v5523_v9  ;;  %v5538_v50 = vadd.f32 %v1529_v44, %v1528_v29  ;;  %v5540_v12 = vadd.f32 %v1593_v51, %v1592_v34  ;;  %v5549_v54 = vpop.permute.xlu0 %3221 }
 0x18c   : > { %7774 = vst [vmem:[#allocation196_spill] sm:$0xff] %v5528_v16  ;;  %7775 = vst [vmem:[#allocation197_spill] sm:$0xff] %v5534_v33  ;;  %1262 = vadd.xlane.f32.xlu1 %v5080_v2  ;;  %v5543_v18 = vadd.f32 %v1531_v13, %v1530_v11  ;;  %v5547_v16 = vpop.permute.xlu1 %3206 }
 0x18d   : > { %v5545_v62 = vadd.f32 %v1595_v30, %v1594_v59  ;;  %7777 = vst [vmem:[#allocation199_spill] sm:$0xff] %v5547_v16  ;;  %7778 = vst [vmem:[#allocation200_spill] sm:$0xff] %v5549_v54 }
 0x18e   : > { %1355 = vadd.xlane.f32.xlu0 %v5063_v28  ;;  %v5552_v58 = vpop.f32.mrb[60].mxu0  ;;  %v5554_v33 = vpop.f32.mrb[60].mxu1 }
 0x18f   : > { %7776 = vst [vmem:[#allocation198_spill] sm:$0xff] %v5545_v62  ;;  %7779 = vst [vmem:[#allocation201_spill] sm:$0xff] %v5552_v58  ;;  %v1532_v29 = vmul.f32 %v5552_v58, %v5552_v58  ;;  %v5558_v34 = vpop.f32.mrb[61].mxu0  ;;  %v1596_v2 = vmul.f32 %v5554_v33, %v5554_v33  ;;  %v5562_v59 = vpop.f32.mrb[61].mxu1 }
 0x190   : > { %7780 = vst [vmem:[#allocation202_spill] sm:$0xff] %v5554_v33  ;;  %7781 = vst [vmem:[#allocation203_spill] sm:$0xff] %v5558_v34  ;;  %1358 = vadd.xlane.f32.xlu1 %v5086_v32  ;;  %v5567_v30 = vadd.f32 %v5558_v34, %v5552_v58  ;;  %v1533_v28 = vmul.f32 %v5558_v34, %v5558_v34  ;;  %v5571_v13 = vpop.f32.mrb[62].mxu0  ;;  %v5575_v44 = vadd.f32 %v5562_v59, %v5554_v33  ;;  %v5579_v11 = vpop.f32.mrb[62].mxu1 }
 0x191   : > { %7782 = vst [vmem:[#allocation204_spill] sm:$0xff] %v5562_v59  ;;  %7784 = vst [vmem:[#allocation206_spill] sm:$0xff] %v5571_v13  ;;  %v1597_v51 = vmul.f32 %v5562_v59, %v5562_v59  ;;  %v1534_v32 = vmul.f32 %v5571_v13, %v5571_v13  ;;  %v5583_v16 = vpop.f32.mrb[63].mxu0  ;;  %v1598_v54 = vmul.f32 %v5579_v11, %v5579_v11  ;;  %v5587_v34 = vpop.f32.mrb[63].mxu1  ;;  %v7862_v36 = vld [vmem:[#allocation190_spill] sm:$0xff] }
 0x192   : > { %7783 = vst [vmem:[#allocation205_spill] sm:$0xff] %v5567_v30  ;;  %7785 = vst [vmem:[#allocation207_spill] sm:$0xff] %v5575_v44  ;;  %1643 = vadd.xlane.f32.xlu0 %v5090_v55  ;;  %v5592_v33 = vadd.f32 %v5583_v16, %v5571_v13  ;;  %v1535_v59 = vmul.f32 %v5583_v16, %v5583_v16  ;;  %v5598_v58 = vadd.f32 %v5587_v34, %v5579_v11  ;;  %v5602_v44 = vpop.permute.xlu1 %3216 }
 0x193   : > { %7786 = vst [vmem:[#allocation208_spill] sm:$0xff] %v5579_v11  ;;  %7787 = vst [vmem:[#allocation209_spill] sm:$0xff] %v5583_v16  ;;  %v1599_v9 = vmul.f32 %v5587_v34, %v5587_v34  ;;  %v5604_v30 = vadd.f32 %v1533_v28, %v1532_v29  ;;  %v5606_v62 = vadd.f32 %v1597_v51, %v1596_v2  ;;  %v5614_v16 = vpop.permute.xlu0 %3231 }
 0x194   : > { %7788 = vst [vmem:[#allocation210_spill] sm:$0xff] %v5587_v34  ;;  %7789 = vst [vmem:[#allocation211_spill] sm:$0xff] %v5602_v44  ;;  %1646 = vadd.xlane.f32.xlu1 %v5095_v23  ;;  %v5609_v55 = vadd.f32 %v1535_v59, %v1534_v32 }
 0x195   : > { %v5611_v13 = vadd.f32 %v1599_v9, %v1598_v54  ;;  %7790 = vst [vmem:[#allocation212_spill] sm:$0xff] %v5614_v16 }
 0x196   : > { %1739 = vadd.xlane.f32.xlu0 %v5092_v41  ;;  %v5617_v11 = vpop.permute.xlu1 %3226 }
 0x197   : > { %7791 = vst [vmem:[#allocation213_spill] sm:$0xff] %v5617_v11  ;;  %v5621_v29 = vpop.permute.xlu0 %3241 }
 0x198   : > { %1742 = vadd.xlane.f32.xlu1 %v5097_v52  ;;  %7792 = vst [vmem:[#allocation214_spill] sm:$0xff] %v5621_v29 }
 0x199   : > { %v7878_v34 = vld [vmem:[#allocation205_spill] sm:$0xff] }
 0x19a   : > { %1265 = vadd.xlane.f32.xlu0 %v5119_v35  ;;  %v5624_v23 = vpop.permute.xlu1 %3236 }
 0x19b   : > { %7793 = vst [vmem:[#allocation215_spill] sm:$0xff] %v5624_v23  ;;  %v5628_v41 = vpop.permute.xlu0 %3251  ;;  %v7813_v23 = vld [vmem:[#allocation141_spill] sm:$0xff] }
 0x19c   : > { %1268 = vadd.xlane.f32.xlu1 %v5144_v61  ;;  %7794 = vst [vmem:[#allocation216_spill] sm:$0xff] %v5628_v41 }
 0x19e   : > { %1361 = vadd.xlane.f32.xlu0 %v5127_v7  ;;  %v5631_v52 = vpop.permute.xlu1 %3246 }
 0x19f   : > { %7795 = vst [vmem:[#allocation217_spill] sm:$0xff] %v5631_v52  ;;  %v7806_v52 = vld [vmem:[#allocation140_spill] sm:$0xff] }
 0x1a0   : > { %1364 = vadd.xlane.f32.xlu1 %v5150_v24 }
 0x1a2   : > { %1649 = vadd.xlane.f32.xlu0 %v5154_v40 }
 0x1a4   : > { %1652 = vadd.xlane.f32.xlu1 %v5159_v19 }
 0x1a6   : > { %1745 = vadd.xlane.f32.xlu0 %v5156_v6 }
 0x1a7   : > { %v1218_v35 = vpop.xlane.xlu0 %1217 }
 0x1a8   : > { %v5634_v61 = vmul.f32 0.0051020407, %v1218_v35  ;;  %1748 = vadd.xlane.f32.xlu1 %v5161_v27 }
 0x1a9   : > { %v1317_v7 = vpop.xlane.xlu1 %1316 }
 0x1aa   : > { %7796 = vst [vmem:[#allocation218_spill] sm:$0xff] %v5634_v61  ;;  %v5637_v54 = vmul.f32 0.0051020407, %v1317_v7  ;;  %1271 = vadd.xlane.f32.xlu0 %v5183_v57  ;;  %v5682_v6 = vmul.f32 %v5634_v61, %v5634_v61  ;;  %v7852_v61 = vld [vmem:[#allocation182_spill] sm:$0xff] }
 0x1ab   : > { %v1314_v19 = vpop.xlane.xlu0 %1313 }
 0x1ac   : > { %7797 = vst [vmem:[#allocation219_spill] sm:$0xff] %v5637_v54  ;;  %v5644_v9 = vmul.f32 0.0051020407, %v1314_v19  ;;  %1274 = vadd.xlane.f32.xlu1 %v5208_v63  ;;  %v5663_v32 = vmul.f32 %v5637_v54, %v5637_v54 }
 0x1ad   : > { %v1605_v2 = vpop.xlane.xlu1 %1604 }
 0x1ae   : > { %7798 = vst [vmem:[#allocation220_spill] sm:$0xff] %v5644_v9  ;;  %1367 = vadd.xlane.f32.xlu0 %v5191_v21  ;;  %v5659_v63 = vmul.f32 0.0051020407, %v1605_v2  ;;  %v5695_v40 = vmul.f32 %v5644_v9, %v5644_v9 }
 0x1af   : > { %v1221_v28 = vpop.xlane.xlu0 %1220 }
 0x1b0   : > { %v5656_v51 = vmul.f32 0.0051020407, %v1221_v28  ;;  %1370 = vadd.xlane.f32.xlu1 %v5214_v17  ;;  %v7804_v28 = vld [vmem:[#allocation134_spill] sm:$0xff] }
 0x1b1   : > { %v1701_v35 = vpop.xlane.xlu1 %1700 }
 0x1b2   : > { %7799 = vst [vmem:[#allocation221_spill] sm:$0xff] %v5656_v51  ;;  %v5667_v21 = vmul.f32 %v5656_v51, %v5656_v51  ;;  %v5669_v7 = vmul.f32 0.0051020407, %v1701_v35  ;;  %1655 = vadd.xlane.f32.xlu0 %v5218_v10 }
 0x1b3   : > { %v1602_v2 = vpop.xlane.xlu0 %1601 }
 0x1b4   : > { %v5684_v35 = vmul.f32 0.0051020407, %v1602_v2  ;;  %1658 = vadd.xlane.f32.xlu1 %v5223_v46  ;;  %v7822_v46 = vld [vmem:[#allocation154_spill] sm:$0xff] }
 0x1b5   : > { %v1224_v10 = vpop.xlane.xlu1 %1223 }
 0x1b6   : > { %v5689_v17 = vmul.f32 0.0051020407, %v1224_v10  ;;  %1751 = vadd.xlane.f32.xlu0 %v5220_v4 }
 0x1b7   : > { %v1698_v24 = vpop.xlane.xlu0 %1697 }
 0x1b8   : > { %7800 = vst [vmem:[#allocation222_spill] sm:$0xff] %v5689_v17  ;;  %1754 = vadd.xlane.f32.xlu1 %v5225_v26  ;;  %v5697_v59 = vmul.f32 0.0051020407, %v1698_v24 }
 0x1b9   : > { %v1227_v2 = vpop.xlane.xlu1 %1226 }
 0x1ba   : > { %v5703_v10 = vmul.f32 0.0051020407, %v1227_v2  ;;  %1277 = vadd.xlane.f32.xlu0 %v7804_v28  ;;  %v7810_v2 = vld [vmem:[#allocation136_spill] sm:$0xff] }
 0x1bb   : > { %v1320_v26 = vpop.xlane.xlu0 %1319 }
 0x1bc   : > { %7803 = vst [vmem:[#allocation223_spill] sm:$0xff] %v5703_v10  ;;  %v5708_v41 = vmul.f32 0.0051020407, %v1320_v26  ;;  %1280 = vadd.xlane.f32.xlu1 %v7806_v52  ;;  %v5726_v52 = vmul.f32 %v5689_v17, %v5689_v17 }
 0x1bd   : > { %v1323_v29 = vpop.xlane.xlu1 %1322 }
 0x1be   : > { %7805 = vst [vmem:[#allocation134_spill] sm:$0xff] %v5708_v41  ;;  %v5715_v19 = vmul.f32 0.0051020407, %v1323_v29  ;;  %1373 = vadd.xlane.f32.xlu0 %v7810_v2  ;;  %v5746_v11 = vmul.f32 %v5708_v41, %v5708_v41 }
 0x1bf   : > { %v1608_v16 = vpop.xlane.xlu0 %1607 }
 0x1c0   : > { %7809 = vst [vmem:[#allocation140_spill] sm:$0xff] %v5715_v19  ;;  %v5722_v27 = vmul.f32 0.0051020407, %v1608_v16  ;;  %1376 = vadd.xlane.f32.xlu1 %v7813_v23  ;;  %v5737_v16 = vmul.f32 %v5703_v10, %v5703_v10  ;;  %v7818_v10 = vld [vmem:[#allocation148_spill] sm:$0xff] }
 0x1c1   : > { %v1611_v24 = vpop.xlane.xlu1 %1610 }
 0x1c2   : > { %v5739_v26 = vmul.f32 0.0051020407, %v1611_v24  ;;  %1661 = vadd.xlane.f32.xlu0 %v5282_v14  ;;  %v5755_v24 = vmul.f32 %v5715_v19, %v5715_v19 }
 0x1c3   : > { %v1704_v4 = vpop.xlane.xlu0 %1703 }
 0x1c4   : > { %v5748_v57 = vmul.f32 0.0051020407, %v1704_v4  ;;  %1664 = vadd.xlane.f32.xlu1 %v5287_v45 }
 0x1c5   : > { %v1707_v44 = vpop.xlane.xlu1 %1706 }
 0x1c6   : > { %v5757_v14 = vmul.f32 0.0051020407, %v1707_v44  ;;  %1757 = vadd.xlane.f32.xlu0 %v5284_v20 }
 0x1c7   : > { %v1230_v23 = vpop.xlane.xlu0 %1229 }
 0x1c8   : > { %1760 = vadd.xlane.f32.xlu1 %v5289_v3  ;;  %v5763_v4 = vmul.f32 0.0051020407, %v1230_v23  ;;  %v7829_v23 = vld [vmem:[#allocation155_spill] sm:$0xff] }
 0x1c9   : > { %v1233_v45 = vpop.xlane.xlu1 %1232 }
 0x1ca   : > { %7816 = vst [vmem:[#allocation136_spill] sm:$0xff] %v5763_v4  ;;  %v5765_v28 = vmul.f32 0.0051020407, %v1233_v45  ;;  %1283 = vadd.xlane.f32.xlu0 %v7818_v10  ;;  %v7826_v10 = vld [vmem:[#allocation150_spill] sm:$0xff] }
 0x1cb   : > { %v1326_v2 = vpop.xlane.xlu0 %1325 }
 0x1cc   : > { %7817 = vst [vmem:[#allocation141_spill] sm:$0xff] %v5765_v28  ;;  %v5772_v17 = vmul.f32 0.0051020407, %v1326_v2  ;;  %1286 = vadd.xlane.f32.xlu1 %v7822_v46  ;;  %v5788_v46 = vmul.f32 %v5763_v4, %v5763_v4  ;;  %v5801_v20 = vmul.f32 %v5765_v28, %v5765_v28  ;;  %v7834_v28 = vld [vmem:[#allocation162_spill] sm:$0xff] }
 0x1cd   : > { %v1329_v41 = vpop.xlane.xlu1 %1328 }
 0x1ce   : > { %7821 = vst [vmem:[#allocation148_spill] sm:$0xff] %v5772_v17  ;;  %v5779_v54 = vmul.f32 0.0051020407, %v1329_v41  ;;  %1379 = vadd.xlane.f32.xlu0 %v7826_v10  ;;  %v5810_v49 = vmul.f32 %v5772_v17, %v5772_v17 }
 0x1cf   : > { %v1614_v43 = vpop.xlane.xlu0 %1613 }
 0x1d0   : > { %7825 = vst [vmem:[#allocation154_spill] sm:$0xff] %v5779_v54  ;;  %v5790_v29 = vmul.f32 0.0051020407, %v1614_v43  ;;  %1382 = vadd.xlane.f32.xlu1 %v7829_v23 }
 0x1d1   : > { %v1617_v3 = vpop.xlane.xlu1 %1616 }
 0x1d2   : > { %v5803_v2 = vmul.f32 0.0051020407, %v1617_v3  ;;  %1667 = vadd.xlane.f32.xlu0 %v5346_v31  ;;  %v5819_v3 = vmul.f32 %v5779_v54, %v5779_v54 }
 0x1d3   : > { %v1710_v43 = vpop.xlane.xlu0 %1709 }
 0x1d4   : > { %v5812_v45 = vmul.f32 0.0051020407, %v1710_v43  ;;  %1670 = vadd.xlane.f32.xlu1 %v5351_v25 }
 0x1d5   : > { %v1713_v19 = vpop.xlane.xlu1 %1712 }
 0x1d6   : > { %v5821_v31 = vmul.f32 0.0051020407, %v1713_v19  ;;  %1763 = vadd.xlane.f32.xlu0 %v5348_v47 }
 0x1d7   : > { %v1236_v23 = vpop.xlane.xlu0 %1235 }
 0x1d8   : > { %1766 = vadd.xlane.f32.xlu1 %v5353_v8  ;;  %v5827_v43 = vmul.f32 0.0051020407, %v1236_v23  ;;  %v7844_v23 = vld [vmem:[#allocation169_spill] sm:$0xff] }
 0x1d9   : > { %v1239_v25 = vpop.xlane.xlu1 %1238 }
 0x1da   : > { %7832 = vst [vmem:[#allocation150_spill] sm:$0xff] %v5827_v43  ;;  %v5829_v44 = vmul.f32 0.0051020407, %v1239_v25  ;;  %1289 = vadd.xlane.f32.xlu0 %v7834_v28  ;;  %v7841_v28 = vld [vmem:[#allocation164_spill] sm:$0xff] }
 0x1db   : > { %v1332_v4 = vpop.xlane.xlu0 %1331 }
 0x1dc   : > { %7833 = vst [vmem:[#allocation155_spill] sm:$0xff] %v5829_v44  ;;  %v5836_v41 = vmul.f32 0.0051020407, %v1332_v4  ;;  %1292 = vadd.xlane.f32.xlu1 %v7837_v48  ;;  %v5852_v48 = vmul.f32 %v5827_v43, %v5827_v43  ;;  %v5865_v47 = vmul.f32 %v5829_v44, %v5829_v44 }
 0x1dd   : > { %v1335_v17 = vpop.xlane.xlu1 %1334 }
 0x1de   : > { %v5843_v42 = vmul.f32 0.0051020407, %v1335_v17  ;;  %1385 = vadd.xlane.f32.xlu0 %v7841_v28 }
 0x1df   : > { %v1620_v38 = vpop.xlane.xlu0 %1619 }
 0x1e0   : > { %7840 = vst [vmem:[#allocation162_spill] sm:$0xff] %v5843_v42  ;;  %v5854_v54 = vmul.f32 0.0051020407, %v1620_v38  ;;  %1388 = vadd.xlane.f32.xlu1 %v7844_v23  ;;  %v5877_v51 = vmul.f32 %v5843_v42, %v5843_v42 }
 0x1e1   : > { %v1623_v8 = vpop.xlane.xlu1 %1622 }
 0x1e2   : > { %v5867_v4 = vmul.f32 0.0051020407, %v1623_v8  ;;  %1673 = vadd.xlane.f32.xlu0 %v5410_v15 }
 0x1e3   : > { %v5870_v38 = vpop.xlane.xlu0 %1715 }
 0x1e4   : > { %1676 = vadd.xlane.f32.xlu1 %v5415_v53  ;;  %v7848_v53 = vld [vmem:[#allocation176_spill] sm:$0xff] }
 0x1e5   : > { %v1719_v25 = vpop.xlane.xlu1 %1718 }
 0x1e6   : > { %v5879_v10 = vmul.f32 0.0051020407, %v1719_v25  ;;  %1769 = vadd.xlane.f32.xlu0 %v5412_v22 }
 0x1e7   : > { %v1242_v8 = vpop.xlane.xlu0 %1241 }
 0x1e8   : > { %1772 = vadd.xlane.f32.xlu1 %v5417_v1  ;;  %v5885_v44 = vmul.f32 0.0051020407, %v1242_v8 }
 0x1e9   : > { %v1245_v23 = vpop.xlane.xlu1 %1244 }
 0x1ea   : > { %7847 = vst [vmem:[#allocation168_spill] sm:$0xff] %v5885_v44  ;;  %v5887_v19 = vmul.f32 0.0051020407, %v1245_v23  ;;  %1295 = vadd.xlane.f32.xlu0 %v7848_v53  ;;  %v7855_v53 = vld [vmem:[#allocation178_spill] sm:$0xff] }
 0x1eb   : > { %v1338_v43 = vpop.xlane.xlu0 %1337 }
 0x1ec   : > { %v5894_v17 = vmul.f32 0.0051020407, %v1338_v43  ;;  %1298 = vadd.xlane.f32.xlu1 %v7852_v61  ;;  %v7858_v61 = vld [vmem:[#allocation183_spill] sm:$0xff] }
 0x1ed   : > { %v1341_v15 = vpop.xlane.xlu1 %1340 }
 0x1ee   : > { %7851 = vst [vmem:[#allocation164_spill] sm:$0xff] %v5894_v17  ;;  %v5901_v39 = vmul.f32 0.0051020407, %v1341_v15  ;;  %1391 = vadd.xlane.f32.xlu0 %v7855_v53 }
 0x1ef   : > { %v5906_v9 = vpop.xlane.xlu0 %1625 }
 0x1f0   : > { %1394 = vadd.xlane.f32.xlu1 %v7858_v61 }
 0x1f1   : > { %v5915_v15 = vpop.xlane.xlu1 %1628 }
 0x1f2   : > { %1679 = vadd.xlane.f32.xlu0 %v5474_v60 }
 0x1f3   : > { %v5918_v53 = vpop.xlane.xlu0 %1721 }
 0x1f4   : > { %1682 = vadd.xlane.f32.xlu1 %v5479_v5  ;;  %v7884_v5 = vld [vmem:[#allocation207_spill] sm:$0xff] }
 0x1f5   : > { %v5921_v28 = vpop.xlane.xlu1 %1724 }
 0x1f6   : > { %1775 = vadd.xlane.f32.xlu0 %v5476_v56  ;;  %v7866_v56 = vld [vmem:[#allocation196_spill] sm:$0xff] }
 0x1f7   : > { %v1248_v22 = vpop.xlane.xlu0 %1247 }
 0x1f8   : > { %1778 = vadd.xlane.f32.xlu1 %v5481_v0  ;;  %v5925_v61 = vmul.f32 0.0051020407, %v1248_v22 }
 0x1f9   : > { %v1251_v8 = vpop.xlane.xlu1 %1250 }
 0x1fa   : > { %7861 = vst [vmem:[#allocation169_spill] sm:$0xff] %v5925_v61  ;;  %v5927_v43 = vmul.f32 0.0051020407, %v1251_v8  ;;  %1301 = vadd.xlane.f32.xlu0 %v7862_v36  ;;  %v7869_v36 = vld [vmem:[#allocation192_spill] sm:$0xff] }
 0x1fb   : > { %v1344_v25 = vpop.xlane.xlu0 %1343 }
 0x1fc   : > { %v5934_v23 = vmul.f32 0.0051020407, %v1344_v25  ;;  %1304 = vadd.xlane.f32.xlu1 %v7866_v56  ;;  %v7873_v56 = vld [vmem:[#allocation197_spill] sm:$0xff] }
 0x1fd   : > { %v1347_v37 = vpop.xlane.xlu1 %1346 }
 0x1fe   : > { %7865 = vst [vmem:[#allocation176_spill] sm:$0xff] %v5934_v23  ;;  %v5941_v17 = vmul.f32 0.0051020407, %v1347_v37  ;;  %1397 = vadd.xlane.f32.xlu0 %v7869_v36 }
 0x1ff   : > { %v5946_v44 = vpop.xlane.xlu0 %1631 }
 0x200   : > { %7871 = vst [vmem:[#allocation182_spill] sm:$0xff] %v5946_v44  ;;  %1400 = vadd.xlane.f32.xlu1 %v7873_v56  ;;  %v7877_v56 = vld [vmem:[#allocation198_spill] sm:$0xff] }
 0x201   : > { %v5955_v37 = vpop.xlane.xlu1 %1634 }
 0x202   : > { %1685 = vadd.xlane.f32.xlu0 %v5538_v50 }
 0x203   : > { %v5958_v36 = vpop.xlane.xlu0 %1727 }
 0x204   : > { %7876 = vst [vmem:[#allocation178_spill] sm:$0xff] %v5958_v36  ;;  %1688 = vadd.xlane.f32.xlu1 %v5543_v18 }
 0x205   : > { %v5961_v60 = vpop.xlane.xlu1 %1730 }
 0x206   : > { %1781 = vadd.xlane.f32.xlu0 %v5540_v12 }
 0x207   : > { %v1254_v42 = vpop.xlane.xlu0 %1253 }
 0x208   : > { %1784 = vadd.xlane.f32.xlu1 %v7877_v56  ;;  %v5965_v25 = vmul.f32 0.0051020407, %v1254_v42  ;;  %v7881_v42 = vld [vmem:[#allocation94_spill] sm:$0xff] }
 0x209   : > { %v1257_v22 = vpop.xlane.xlu1 %1256 }
 0x20a   : > { %v5967_v1 = vmul.f32 0.0051020407, %v1257_v22  ;;  %1307 = vadd.xlane.f32.xlu0 %v7878_v34  ;;  %v7882_v22 = vld [vmem:[#allocation96_spill] sm:$0xff]  ;;  %v7883_v34 = vsub.f32 %v5659_v63, %v5667_v21  ;;  %v7888_v63 = vsub.f32 %v5684_v35, %v5682_v6  ;;  %v7892_v6 = vsub.f32 %v5722_v27, %v5726_v52 }
 0x20b   : > { %v1350_v0 = vpop.xlane.xlu0 %1349 }
 0x20c   : > { %v5974_v36 = vmul.f32 0.0051020407, %v1350_v0  ;;  %1310 = vadd.xlane.f32.xlu1 %v5592_v33  ;;  %v1985_v61 = vmax.f32 %v7883_v34, 0.0  ;;  %v7886_v33 = vsub.f32 %v5669_v7, %v5663_v32  ;;  %v1984_v21 = vmax.f32 %v7888_v63, 0.0  ;;  %v2178_v34 = vld [vmem:[%s6037_s23 + $0x10] sm:$0xff] }
 0x20d   : > { %v1353_v12 = vpop.xlane.xlu1 %1352  ;;  %v7891_v7 = vsub.f32 %v5697_v59, %v5695_v40 }
 0x20e   : > { %v5984_v44 = vmul.f32 0.0051020407, %v1353_v12  ;;  %1403 = vadd.xlane.f32.xlu0 %v7884_v5  ;;  %v2017_v18 = vmax.f32 %v7886_v33, 0.0  ;;  %v7889_v5 = vld [vmem:[#allocation95_spill] sm:$0xff]  ;;  %v2049_v32 = vadd.f32 0.001, %v1985_v61 }
 0x20f   : > { %v5992_v50 = vpop.xlane.xlu0 %1637  ;;  %v2016_v33 = vmax.f32 %v7891_v7, 0.0  ;;  %v2048_v63 = vadd.f32 0.001, %v1984_v21 }
 0x210   : > { %1406 = vadd.xlane.f32.xlu1 %v5598_v58  ;;  %v2081_v23 = vadd.f32 0.001, %v2017_v18  ;;  %v1986_v58 = vmax.f32 %v7892_v6, 0.0  ;;  %3898 = vrsqrt.f32 %v2049_v32  ;;  %v2209_v32 = vld [vmem:[%s6037_s23 + $0x108] sm:$0xff] }
 0x211   : > { %v6004_v0 = vpop.xlane.xlu1 %1640  ;;  %v2080_v61 = vadd.f32 0.001, %v2016_v33 }
 0x212   : > { %1691 = vadd.xlane.f32.xlu0 %v5604_v30  ;;  %3900 = vrsqrt.f32 %v2081_v23  ;;  %v2050_v40 = vadd.f32 0.001, %v1986_v58 }
 0x213   : > { %v6013_v35 = vpop.xlane.xlu0 %1733  ;;  %3902 = vrsqrt.f32 %v2048_v63 }
 0x214   : > { %1694 = vadd.xlane.f32.xlu1 %v5609_v55  ;;  %3904 = vrsqrt.f32 %v2080_v61  ;;  %v7893_v55 = vsub.f32 %v5739_v26, %v5737_v16 }
 0x215   : > { %v6016_v8 = vpop.xlane.xlu1 %1736  ;;  %3906 = vrsqrt.f32 %v2050_v40  ;;  %v7900_v40 = vsub.f32 %v5748_v57, %v5746_v11  ;;  %v7905_v11 = vsub.f32 %v5821_v31, %v5819_v3  ;;  %v7908_v3 = vsub.f32 %v5812_v45, %v5810_v49  ;;  %v2208_v49 = vld [vmem:[%s6037_s23 + $0x100] sm:$0xff] }
 0x216   : > { %1787 = vadd.xlane.f32.xlu0 %v5606_v62  ;;  %v1987_v18 = vmax.f32 %v7893_v55, 0.0 }
 0x217   : > { %v1260_v30 = vpop.xlane.xlu0 %1259  ;;  %v2021_v57 = vmax.f32 %v7905_v11, 0.0  ;;  %v2020_v31 = vmax.f32 %v7908_v3, 0.0  ;;  %v2176_v11 = vld [vmem:[%s6037_s23] sm:$0xff]  ;;  %v1833_v3 = vmul.f32 0.0051020407, %v5921_v28  ;;  %v1897_v28 = vmul.f32 %v5901_v39, %v5901_v39 }
 0x218   : > { %1790 = vadd.xlane.f32.xlu1 %v5611_v13  ;;  %v6020_v27 = vmul.f32 0.0051020407, %v1260_v30  ;;  %v7897_v13 = vsub.f32 %v5757_v14, %v5755_v24  ;;  %v2018_v30 = vmax.f32 %v7900_v40, 0.0  ;;  %v2051_v7 = vadd.f32 0.001, %v1987_v18  ;;  %v2177_v40 = vld [vmem:[%s6037_s23 + $0x8] sm:$0xff] }
 0x219   : > { %v1263_v59 = vpop.xlane.xlu1 %1262  ;;  %v7903_v24 = vsub.f32 %v5790_v29, %v5788_v46  ;;  %v2085_v56 = vadd.f32 0.001, %v2021_v57  ;;  %v2084_v57 = vadd.f32 0.001, %v2020_v31 }
 0x21a   : > { %v6022_v52 = vmul.f32 0.0051020407, %v1263_v59  ;;  %v2019_v26 = vmax.f32 %v7897_v13, 0.0  ;;  %v3899_v58 = vpop.eup %3898  ;;  %v2082_v23 = vadd.f32 0.001, %v2018_v30  ;;  %3908 = vrsqrt.f32 %v2051_v7 }
 0x21b   : > { %v1356_v21 = vpop.xlane.xlu0 %1355  ;;  %v1988_v14 = vmax.f32 %v7903_v24, 0.0  ;;  %v2241_v46 = vmul.f32 %v3899_v58, %v2177_v40  ;;  %v7909_v30 = vsub.f32 %v5879_v10, %v5877_v51  ;;  %v7910_v7 = vsub.f32 %v5803_v2, %v5801_v20 }
 0x21c   : > { %v6031_v33 = vmul.f32 0.0051020407, %v1356_v21  ;;  %v3901_v24 = vpop.eup %3900  ;;  %v2083_v12 = vadd.f32 0.001, %v2019_v26  ;;  %v7911_v51 = vsub.f32 %v5854_v54, %v5852_v48  ;;  %v1894_v20 = vmul.f32 %v5836_v41, %v5836_v41 }
 0x21d   : > { %v1359_v16 = vpop.xlane.xlu1 %1358  ;;  %v3903_v61 = vpop.eup %3902  ;;  %v2052_v21 = vadd.f32 0.001, %v1988_v14  ;;  %v2023_v29 = vmax.f32 %v7909_v30, 0.0  ;;  %v2273_v14 = vmul.f32 %v3901_v24, %v2209_v32  ;;  %v1989_v58 = vmax.f32 %v7910_v7, 0.0 }
 0x21e   : > { %7896 = vst [vmem:[#allocation183_spill] sm:$0xff] %v6031_v33  ;;  %v6049_v59 = vmul.f32 0.0051020407, %v1359_v16  ;;  %v1801_v16 = vmul.f32 0.0051020407, %v5915_v15  ;;  %v1865_v15 = vmul.f32 %v5887_v19, %v5887_v19  ;;  %v3905_v26 = vpop.eup %3904  ;;  %3910 = vrsqrt.f32 %v2083_v12 }
 0x21f   : > { %v6056_v13 = vpop.xlane.xlu0 %1643  ;;  %v3907_v45 = vpop.eup %3906  ;;  %v2240_v6 = vmul.f32 %v3903_v61, %v2176_v11  ;;  %3912 = vrsqrt.f32 %v2082_v23  ;;  %v1990_v10 = vmax.f32 %v7911_v51, 0.0  ;;  %v1830_v12 = vmul.f32 0.0051020407, %v5870_v38 }
 0x220   : > { %7901 = vst [vmem:[#allocation190_spill] sm:$0xff] %v6049_v59  ;;  %v1929_v18 = vsub.f32 %v1801_v16, %v1865_v15  ;;  %3914 = vrsqrt.f32 %v2052_v21  ;;  %v2272_v61 = vmul.f32 %v3905_v26, %v2208_v49  ;;  %v2087_v32 = vadd.f32 0.001, %v2023_v29  ;;  %v7922_v29 = vld [vmem:[#allocation168_spill] sm:$0xff] }
 0x221   : > { %v6069_v55 = vpop.xlane.xlu1 %1646  ;;  %3916 = vrsqrt.f32 %v2085_v56  ;;  %v2242_v40 = vmul.f32 %v3907_v45, %v2178_v34  ;;  %v1961_v2 = vsub.f32 %v1833_v3, %v1897_v28  ;;  %v1803_v24 = vmul.f32 0.0051020407, %v5955_v37 }
 0x222   : > { %v1993_v23 = vmax.f32 %v1929_v18, 0.0  ;;  %v2053_v38 = vadd.f32 0.001, %v1989_v58  ;;  %3918 = vrsqrt.f32 %v2084_v57  ;;  %v2054_v21 = vadd.f32 0.001, %v1990_v10  ;;  %v7923_v57 = vld [vmem:[#allocation164_spill] sm:$0xff] }
 0x223   : > { %v6078_v62 = vpop.xlane.xlu0 %1739  ;;  %v1958_v15 = vsub.f32 %v1830_v12, %v1894_v20  ;;  %v1867_v56 = vmul.f32 %v5927_v43, %v5927_v43  ;;  %3920 = vrsqrt.f32 %v2087_v32  ;;  %v1835_v30 = vmul.f32 0.0051020407, %v5961_v60  ;;  %v2213_v18 = vld [vmem:[%s6037_s23 + $0x128] sm:$0xff]  ;;  %v2212_v58 = vld [vmem:[%s6037_s23 + $0x120] sm:$0xff] }
 0x224   : > { %v2057_v26 = vadd.f32 0.001, %v1993_v23  ;;  %v2025_v45 = vmax.f32 %v1961_v2, 0.0  ;;  %v3909_v12 = vpop.eup %3908  ;;  %v7917_v28 = vsub.f32 %v5867_v4, %v5865_v47  ;;  %v1800_v20 = vmul.f32 0.0051020407, %v5906_v9  ;;  %v2180_v9 = vld [vmem:[%s6037_s23 + $0x20] sm:$0xff] }
 0x225   : > { %v6085_v63 = vpop.xlane.xlu1 %1742  ;;  %v1931_v3 = vsub.f32 %v1803_v24, %v1867_v56  ;;  %v2022_v23 = vmax.f32 %v1958_v15, 0.0  ;;  %v1832_v2 = vmul.f32 0.0051020407, %v5918_v53  ;;  %v1864_v10 = vmul.f32 %v7922_v29, %v7922_v29 }
 0x226   : > { %v1991_v60 = vmax.f32 %v7917_v28, 0.0  ;;  %v2210_v28 = vld [vmem:[%s6037_s23 + $0x110] sm:$0xff]  ;;  %3922 = vrsqrt.f32 %v2057_v26  ;;  %v2089_v4 = vadd.f32 0.001, %v2025_v45  ;;  %v1896_v15 = vmul.f32 %v7923_v57, %v7923_v57 }
 0x227   : > { %v1266_v16 = vpop.xlane.xlu0 %1265  ;;  %v1869_v37 = vmul.f32 %v5967_v1, %v5967_v1  ;;  %3924 = vrsqrt.f32 %v2053_v38  ;;  %v2086_v26 = vadd.f32 0.001, %v2022_v23  ;;  %v1928_v11 = vsub.f32 %v1800_v20, %v1864_v10  ;;  %v7924_v20 = vld [vmem:[#allocation182_spill] sm:$0xff] }
 0x228   : > { %v6100_v54 = vmul.f32 0.0051020407, %v1266_v16  ;;  %v3911_v32 = vpop.eup %3910  ;;  %3926 = vrsqrt.f32 %v2054_v21 }
 0x229   : > { %v1269_v48 = vpop.xlane.xlu1 %1268  ;;  %2594 = vperm.xlu1 %3800, %v2272_v61   ;;  %v3913_v56 = vpop.eup %3912  ;;  %v2179_v61 = vld [vmem:[%s6037_s23 + $0x18] sm:$0xff]  ;;  %3928 = vrsqrt.f32 %v2089_v4 }
 0x22a   : > { %7912 = vst [vmem:[#allocation196_spill] sm:$0xff] %v6100_v54  ;;  %v6102_v31 = vmul.f32 0.0051020407, %v1269_v48  ;;  %v2211_v48 = vld [vmem:[%s6037_s23 + $0x118] sm:$0xff]  ;;  %v3915_v53 = vpop.eup %3914  ;;  %v2243_v10 = vmul.f32 %v3909_v12, %v2179_v61 }
 0x22b   : > { %v1362_v34 = vpop.xlane.xlu0 %1361  ;;  %v2275_v47 = vmul.f32 %v3911_v32, %v2211_v48  ;;  %v1837_v32 = vmul.f32 0.0051020407, %v6016_v8  ;;  %v1802_v48 = vmul.f32 0.0051020407, %v7924_v20  ;;  %v2244_v21 = vmul.f32 %v3915_v53, %v2180_v9  ;;  %v2215_v4 = vld [vmem:[%s6037_s23 + $0x138] sm:$0xff]  ;;  %v7925_v8 = vld [vmem:[#allocation169_spill] sm:$0xff] }
 0x22c   : > { %v6111_v49 = vmul.f32 0.0051020407, %v1362_v34  ;;  %2434 = vperm.xlu0 %3801, %v2240_v6   ;;  %v1899_v6 = vmul.f32 %v5941_v17, %v5941_v17 }
 0x22d   : > { %v1365_v7 = vpop.xlane.xlu1 %1364  ;;  %2439 = vperm.xlu1 %3800, %v2241_v46  }
 0x22e   : > { %v6122_v16 = vmul.f32 0.0051020407, %v1365_v7  ;;  %v1963_v34 = vsub.f32 %v1835_v30, %v1899_v6  ;;  %v1805_v7 = vmul.f32 0.0051020407, %v6004_v0  ;;  %v1995_v30 = vmax.f32 %v1931_v3, 0.0  ;;  %v3917_v0 = vpop.eup %3916 }
 0x22f   : > { %v6128_v24 = vpop.xlane.xlu0 %1649  ;;  %v2274_v3 = vmul.f32 %v3913_v56, %v2210_v28  ;;  %v2277_v56 = vmul.f32 %v3917_v0, %v2213_v18  ;;  %v1866_v28 = vmul.f32 %v7925_v8, %v7925_v8  ;;  %v1807_v18 = vmul.f32 0.0051020407, %v6069_v55 }
 0x230   : > { %2599 = vperm.xlu0 %3801, %v2273_v14   ;;  %v2055_v14 = vadd.f32 0.001, %v1991_v60  ;;  %v1960_v60 = vsub.f32 %v1832_v2, %v1896_v15  ;;  %v2027_v46 = vmax.f32 %v1963_v34, 0.0  ;;  %v1933_v51 = vsub.f32 %v1805_v7, %v1869_v37 }
 0x231   : > { %v6141_v6 = vpop.xlane.xlu1 %1652  ;;  %2444 = vperm.xlu1 %3800, %v2242_v40   ;;  %v3919_v40 = vpop.eup %3918  ;;  %v2059_v57 = vadd.f32 0.001, %v1995_v30  ;;  %v1992_v2 = vmax.f32 %v1928_v11, 0.0  ;;  %v1901_v37 = vmul.f32 %v5984_v44, %v5984_v44  ;;  %v1930_v53 = vsub.f32 %v1802_v48, %v1866_v28  ;;  %v7927_v30 = vld [vmem:[#allocation176_spill] sm:$0xff] }
 0x232   : > { %v3921_v23 = vpop.eup %3920  ;;  %3930 = vrsqrt.f32 %v2055_v14  ;;  %v2276_v34 = vmul.f32 %v3919_v40, %v2212_v58  ;;  %v2024_v7 = vmax.f32 %v1960_v60, 0.0  ;;  %v2091_v15 = vadd.f32 0.001, %v2027_v46  ;;  %v7928_v46 = vld [vmem:[#allocation178_spill] sm:$0xff] }
 0x233   : > { %v6148_v45 = vpop.xlane.xlu0 %1745  ;;  %3932 = vrsqrt.f32 %v2086_v26  ;;  %v1997_v12 = vmax.f32 %v1933_v51, 0.0  ;;  %v1965_v61 = vsub.f32 %v1837_v32, %v1901_v37  ;;  %v1898_v58 = vmul.f32 %v7927_v30, %v7927_v30  ;;  %v3923_v26 = vpop.eup %3922  ;;  %v2185_v40 = vld [vmem:[%s6037_s23 + $0x48] sm:$0xff]  ;;  %v2214_v30 = vld [vmem:[%s6037_s23 + $0x130] sm:$0xff] }
 0x234   : > { %2609 = vperm.xlu0 %3801, %v2275_v47   ;;  %3934 = vrsqrt.f32 %v2059_v57  ;;  %v2279_v14 = vmul.f32 %v3921_v23, %v2215_v4  ;;  %v1834_v51 = vmul.f32 0.0051020407, %v7928_v46  ;;  %v1871_v57 = vmul.f32 %v6022_v52, %v6022_v52  ;;  %v3925_v23 = vpop.eup %3924  ;;  %v2217_v32 = vld [vmem:[%s6037_s23 + $0x148] sm:$0xff] }
 0x235   : > { %v6154_v38 = vpop.xlane.xlu1 %1748  ;;  %2604 = vperm.xlu1 %3800, %v2274_v3   ;;  %3936 = vrsqrt.f32 %v2091_v15  ;;  %v2061_v20 = vadd.f32 0.001, %v1997_v12  ;;  %v1839_v48 = vmul.f32 0.0051020407, %v6085_v63  ;;  %v2029_v37 = vmax.f32 %v1965_v61, 0.0 }
 0x236   : > { %v1903_v63 = vmul.f32 %v6049_v59, %v6049_v59  ;;  %v2249_v12 = vmul.f32 %v3923_v26, %v2185_v40  ;;  %v2181_v26 = vld [vmem:[%s6037_s23 + $0x28] sm:$0xff]  ;;  %v2182_v40 = vld [vmem:[%s6037_s23 + $0x30] sm:$0xff] }
 0x237   : > { %v1272_v47 = vpop.xlane.xlu0 %1271  ;;  %3938 = vrsqrt.f32 %v2061_v20  ;;  %v2093_v61 = vadd.f32 0.001, %v2029_v37 }
 0x238   : > { %2619 = vperm.xlu0 %3801, %v2277_v56   ;;  %v6163_v9 = vmul.f32 0.0051020407, %v1272_v47  ;;  %v1935_v47 = vsub.f32 %v1807_v18, %v1871_v57  ;;  %v1994_v57 = vmax.f32 %v1930_v53, 0.0  ;;  %v1967_v28 = vsub.f32 %v1839_v48, %v1903_v63  ;;  %v2187_v53 = vld [vmem:[%s6037_s23 + $0x58] sm:$0xff] }
 0x239   : > { %v1275_v11 = vpop.xlane.xlu1 %1274  ;;  %2449 = vperm.xlu1 %3800, %v2243_v10   ;;  %v3927_v10 = vpop.eup %3926  ;;  %v2088_v48 = vadd.f32 0.001, %v2024_v7  ;;  %v1873_v63 = vmul.f32 %v6102_v31, %v6102_v31 }
 0x23a   : > { %7926 = vst [vmem:[#allocation192_spill] sm:$0xff] %v6163_v9  ;;  %v6167_v0 = vmul.f32 0.0051020407, %v1275_v11  ;;  %v1999_v55 = vmax.f32 %v1935_v47, 0.0  ;;  %v2246_v20 = vmul.f32 %v3927_v10, %v2182_v40  ;;  %v2031_v7 = vmax.f32 %v1967_v28, 0.0 }
 0x23b   : > { %v1368_v3 = vpop.xlane.xlu0 %1367  ;;  %v1836_v10 = vmul.f32 0.0051020407, %v6013_v35  ;;  %v1806_v28 = vmul.f32 0.0051020407, %v6056_v13 }
 0x23c   : > { %v6178_v56 = vmul.f32 0.0051020407, %v1368_v3  ;;  %2629 = vperm.xlu0 %3801, %v2279_v14   ;;  %v3929_v14 = vpop.eup %3928  ;;  %v1962_v3 = vsub.f32 %v1834_v51, %v1898_v58  ;;  %v2245_v58 = vmul.f32 %v3925_v23, %v2181_v26  ;;  %v2095_v26 = vadd.f32 0.001, %v2031_v7  ;;  %v2183_v7 = vld [vmem:[%s6037_s23 + $0x38] sm:$0xff] }
 0x23d   : > { %v1371_v4 = vpop.xlane.xlu1 %1370  ;;  %2454 = vperm.xlu1 %3800, %v2244_v21   ;;  %v2056_v21 = vadd.f32 0.001, %v1992_v2  ;;  %v6195_v46 = vpop.eup %3930  ;;  %v2058_v2 = vadd.f32 0.001, %v1994_v57 }
 0x23e   : > { %7931 = vst [vmem:[#allocation197_spill] sm:$0xff] %v6178_v56  ;;  %v6186_v15 = vmul.f32 0.0051020407, %v1371_v4  ;;  %v1809_v4 = vmul.f32 0.0051020407, %v6141_v6  ;;  %v3933_v51 = vpop.eup %3932  ;;  %v2026_v18 = vmax.f32 %v1962_v3, 0.0 }
 0x23f   : > { %v6190_v11 = vpop.xlane.xlu0 %1655  ;;  %v1804_v6 = vmul.f32 0.0051020407, %v5992_v50  ;;  %v3935_v8 = vpop.eup %3934  ;;  %3940 = vrsqrt.f32 %v2056_v21  ;;  %v2063_v50 = vadd.f32 0.001, %v1999_v55  ;;  %v2219_v55 = vld [vmem:[%s6037_s23 + $0x158] sm:$0xff] }
 0x240   : > { %2479 = vperm.xlu0 %3801, %v2249_v12   ;;  %v2281_v12 = vmul.f32 %v3929_v14, %v2217_v32  ;;  %v1937_v37 = vsub.f32 %v1809_v4, %v1873_v63  ;;  %3942 = vrsqrt.f32 %v2093_v61  ;;  %v1841_v32 = vmul.f32 0.0051020407, %v6154_v38  ;;  %v3937_v57 = vpop.eup %3936 }
 0x241   : > { %v1659_v60 = vpop.xlane.xlu1 %1658  ;;  %2614 = vperm.xlu1 %3800, %v2276_v34   ;;  %v1868_v34 = vmul.f32 %v5965_v25, %v5965_v25  ;;  %v2278_v14 = vmul.f32 %v3933_v51, %v2214_v30  ;;  %3944 = vrsqrt.f32 %v2088_v48  ;;  %v2251_v21 = vmul.f32 %v3935_v8, %v2187_v53  ;;  %v3939_v48 = vpop.eup %3938 }
 0x242   : > { %3946 = vrsqrt.f32 %v2058_v2  ;;  %v2090_v3 = vadd.f32 0.001, %v2026_v18  ;;  %v1905_v61 = vmul.f32 %v6122_v16, %v6122_v16  ;;  %v1900_v38 = vmul.f32 %v5974_v36, %v5974_v36 }
 0x243   : > { %v6208_v59 = vpop.xlane.xlu0 %1751  ;;  %v1932_v23 = vsub.f32 %v1804_v6, %v1868_v34  ;;  %v1870_v30 = vmul.f32 %v6020_v27, %v6020_v27  ;;  %v2001_v40 = vmax.f32 %v1937_v37, 0.0  ;;  %3948 = vrsqrt.f32 %v2063_v50  ;;  %v2189_v34 = vld [vmem:[%s6037_s23 + $0x68] sm:$0xff] }
 0x244   : > { %2639 = vperm.xlu0 %3801, %v2281_v12   ;;  %v1969_v35 = vsub.f32 %v1841_v32, %v1905_v61  ;;  %v1811_v8 = vmul.f32 0.0051020407, %v1659_v60  ;;  %v1964_v53 = vsub.f32 %v1836_v10, %v1900_v38  ;;  %v2283_v51 = vmul.f32 %v3937_v57, %v2219_v55  ;;  %v7941_v61 = vld [vmem:[#allocation135_spill] sm:$0xff]  ;;  %v7942_v55 = vld [vmem:[#allocation138_spill] sm:$0xff] }
 0x245   : > { %v1755_v47 = vpop.xlane.xlu1 %1754  ;;  %2459 = vperm.xlu1 %3800, %v2245_v58   ;;  %v1996_v2 = vmax.f32 %v1932_v23, 0.0  ;;  %v1934_v6 = vsub.f32 %v1806_v28, %v1870_v30  ;;  %v1875_v63 = vmul.f32 %v6167_v0, %v6167_v0  ;;  %3950 = vrsqrt.f32 %v2095_v26 }
 0x246   : > { %v1843_v23 = vmul.f32 0.0051020407, %v1755_v47  ;;  %v2033_v57 = vmax.f32 %v1969_v35, 0.0  ;;  %v1907_v26 = vmul.f32 %v6186_v15, %v6186_v15  ;;  %3952 = vrsqrt.f32 %v2090_v3 }
 0x247   : > { %v1278_v4 = vpop.xlane.xlu0 %1277  ;;  %v2060_v60 = vadd.f32 0.001, %v1996_v2  ;;  %v1902_v2 = vmul.f32 %v6031_v33, %v6031_v33 }
 0x248   : > { %2489 = vperm.xlu0 %3801, %v2251_v21   ;;  %v6223_v13 = vmul.f32 0.0051020407, %v1278_v4  ;;  %v1939_v21 = vsub.f32 %v1811_v8, %v1875_v63  ;;  %v2247_v63 = vmul.f32 %v6195_v46, %v2183_v7  ;;  %v1998_v4 = vmax.f32 %v1934_v6, 0.0 }
 0x249   : > { %v1281_v18 = vpop.xlane.xlu1 %1280  ;;  %2464 = vperm.xlu1 %3800, %v2246_v20   ;;  %v2065_v20 = vadd.f32 0.001, %v2001_v40  ;;  %v3941_v30 = vpop.eup %3940  ;;  %v2253_v40 = vmul.f32 %v3939_v48, %v2189_v34  ;;  %v1971_v50 = vsub.f32 %v1843_v23, %v1907_v26  ;;  %v2097_v35 = vadd.f32 0.001, %v2033_v57  ;;  %v2191_v57 = vld [vmem:[%s6037_s23 + $0x78] sm:$0xff] }
 0x24a   : > { %v6225_v58 = vmul.f32 0.0051020407, %v1281_v18  ;;  %v3943_v8 = vpop.eup %3942  ;;  %v2003_v46 = vmax.f32 %v1939_v21, 0.0  ;;  %v1838_v6 = vmul.f32 0.0051020407, %v6078_v62  ;;  %v2216_v62 = vld [vmem:[%s6037_s23 + $0x140] sm:$0xff] }
 0x24b   : > { %v1374_v12 = vpop.xlane.xlu0 %1373  ;;  %v3945_v38 = vpop.eup %3944  ;;  %3954 = vrsqrt.f32 %v2065_v20  ;;  %v1808_v34 = vmul.f32 0.0051020407, %v6128_v24  ;;  %v2062_v21 = vadd.f32 0.001, %v1998_v4 }
 0x24c   : > { %v6235_v10 = vmul.f32 0.0051020407, %v1374_v12  ;;  %2649 = vperm.xlu0 %3801, %v2283_v51   ;;  %v2221_v12 = vld [vmem:[%s6037_s23 + $0x168] sm:$0xff]  ;;  %v1877_v3 = vmul.f32 %v6225_v58, %v6225_v58  ;;  %3956 = vrsqrt.f32 %v2097_v35  ;;  %v2067_v24 = vadd.f32 0.001, %v2003_v46 }
 0x24d   : > { %v1377_v28 = vpop.xlane.xlu1 %1376  ;;  %2624 = vperm.xlu1 %3800, %v2278_v14   ;;  %v2028_v14 = vmax.f32 %v1964_v53, 0.0  ;;  %v3947_v53 = vpop.eup %3946  ;;  %v2285_v26 = vmul.f32 %v3943_v8, %v2221_v12  ;;  %v1872_v8 = vmul.f32 %v6100_v54, %v6100_v54  ;;  %3958 = vrsqrt.f32 %v2060_v60  ;;  %v2223_v54 = vld [vmem:[%s6037_s23 + $0x178] sm:$0xff] }
 0x24e   : > { %7940 = vst [vmem:[#allocation198_spill] sm:$0xff] %v6235_v10  ;;  %v6243_v47 = vmul.f32 0.0051020407, %v1377_v28  ;;  %v2184_v28 = vld [vmem:[%s6037_s23 + $0x40] sm:$0xff]  ;;  %v2280_v33 = vmul.f32 %v3945_v38, %v2216_v62  ;;  %v1840_v35 = vmul.f32 0.0051020407, %v6148_v45  ;;  %v1904_v38 = vmul.f32 %v6111_v49, %v6111_v49 }
 0x24f   : > { %v6247_v51 = vpop.xlane.xlu0 %1661  ;;  %v2092_v32 = vadd.f32 0.001, %v2028_v14  ;;  %v2248_v20 = vmul.f32 %v3941_v30, %v2184_v28  ;;  %v1966_v30 = vsub.f32 %v1838_v6, %v1902_v2  ;;  %v1936_v48 = vsub.f32 %v1808_v34, %v1872_v8 }
 0x250   : > { %2499 = vperm.xlu0 %3801, %v2253_v40   ;;  %v3949_v40 = vpop.eup %3948 }
 0x251   : > { %v1665_v7 = vpop.xlane.xlu1 %1664  ;;  %2469 = vperm.xlu1 %3800, %v2247_v63   ;;  %v2035_v63 = vmax.f32 %v1971_v50, 0.0  ;;  %v3951_v18 = vpop.eup %3950  ;;  %v2255_v28 = vmul.f32 %v3949_v40, %v2191_v57  ;;  %3960 = vrsqrt.f32 %v2092_v32  ;;  %v1909_v50 = vmul.f32 %v6243_v47, %v6243_v47 }
 0x252   : > { %v1813_v23 = vmul.f32 0.0051020407, %v1665_v7  ;;  %v2186_v7 = vld [vmem:[%s6037_s23 + $0x50] sm:$0xff]  ;;  %3962 = vrsqrt.f32 %v2062_v21  ;;  %v2030_v34 = vmax.f32 %v1966_v30, 0.0  ;;  %v2287_v45 = vmul.f32 %v3951_v18, %v2223_v54  ;;  %v7951_v30 = vld [vmem:[#allocation149_spill] sm:$0xff] }
 0x253   : > { %v6262_v37 = vpop.xlane.xlu0 %1757  ;;  %v2250_v46 = vmul.f32 %v3947_v53, %v2186_v7  ;;  %3964 = vrsqrt.f32 %v2067_v24  ;;  %v2000_v21 = vmax.f32 %v1936_v48, 0.0  ;;  %v1810_v53 = vmul.f32 0.0051020407, %v6190_v11  ;;  %v2218_v54 = vld [vmem:[%s6037_s23 + $0x150] sm:$0xff] }
 0x254   : > { %2659 = vperm.xlu0 %3801, %v2285_v26   ;;  %v1941_v14 = vsub.f32 %v1813_v23, %v1877_v3  ;;  %v2099_v3 = vadd.f32 0.001, %v2035_v63  ;;  %v3953_v23 = vpop.eup %3952  ;;  %v2193_v63 = vld [vmem:[%s6037_s23 + $0x88] sm:$0xff] }
 0x255   : > { %v1761_v12 = vpop.xlane.xlu1 %1760  ;;  %2474 = vperm.xlu1 %3800, %v2248_v20   ;;  %v3955_v57 = vpop.eup %3954 }
 0x256   : > { %v1845_v4 = vmul.f32 0.0051020407, %v1761_v12  ;;  %v2005_v60 = vmax.f32 %v1941_v14, 0.0  ;;  %v1968_v14 = vsub.f32 %v1840_v35, %v1904_v38  ;;  %v1874_v12 = vmul.f32 %v6163_v9, %v6163_v9 }
 0x257   : > { %v1284_v26 = vpop.xlane.xlu0 %1283  ;;  %3966 = vrsqrt.f32 %v2099_v3  ;;  %v2257_v3 = vmul.f32 %v3955_v57, %v2193_v63  ;;  %v7955_v57 = vld [vmem:[#allocation151_spill] sm:$0xff] }
 0x258   : > { %2509 = vperm.xlu0 %3801, %v2255_v28   ;;  %v1973_v6 = vsub.f32 %v1845_v4, %v1909_v50  ;;  %v6275_v40 = vmul.f32 0.0051020407, %v1284_v26  ;;  %v2069_v18 = vadd.f32 0.001, %v2005_v60  ;;  %v7952_v28 = vld [vmem:[#allocation152_spill] sm:$0xff] }
 0x259   : > { %v1287_v32 = vpop.xlane.xlu1 %1286  ;;  %2634 = vperm.xlu1 %3800, %v2280_v33   ;;  %v2094_v26 = vadd.f32 0.001, %v2030_v34  ;;  %v1842_v60 = vmul.f32 0.0051020407, %v6208_v59  ;;  %v2225_v33 = vld [vmem:[%s6037_s23 + $0x188] sm:$0xff]  ;;  %v2188_v34 = vld [vmem:[%s6037_s23 + $0x60] sm:$0xff]  ;;  %v1906_v59 = vmul.f32 %v6178_v56, %v6178_v56 }
 0x25a   : > { %7947 = vst [vmem:[#allocation205_spill] sm:$0xff] %v6275_v40  ;;  %v6279_v20 = vmul.f32 0.0051020407, %v1287_v32  ;;  %v2037_v11 = vmax.f32 %v1973_v6, 0.0  ;;  %v2064_v50 = vadd.f32 0.001, %v2000_v21  ;;  %3968 = vrsqrt.f32 %v2069_v18 }
 0x25b   : > { %v1380_v2 = vpop.xlane.xlu0 %1379  ;;  %3970 = vrsqrt.f32 %v2094_v26  ;;  %v2195_v56 = vld [vmem:[%s6037_s23 + $0x98] sm:$0xff]  ;;  %v1812_v26 = vmul.f32 0.0051020407, %v6247_v51  ;;  %v1844_v51 = vmul.f32 0.0051020407, %v6262_v37 }
 0x25c   : > { %v6289_v7 = vmul.f32 0.0051020407, %v1380_v2  ;;  %2669 = vperm.xlu0 %3801, %v2287_v45   ;;  %v3957_v45 = vpop.eup %3956  ;;  %v1938_v2 = vsub.f32 %v1810_v53, %v1874_v12  ;;  %v2032_v12 = vmax.f32 %v1968_v14, 0.0  ;;  %v1970_v14 = vsub.f32 %v1842_v60, %v1906_v59  ;;  %v2227_v59 = vld [vmem:[%s6037_s23 + $0x198] sm:$0xff] }
 0x25d   : > { %v1383_v48 = vpop.xlane.xlu1 %1382  ;;  %2484 = vperm.xlu1 %3800, %v2250_v46   ;;  %v2282_v46 = vmul.f32 %v3953_v23, %v2218_v54  ;;  %v3959_v24 = vpop.eup %3958  ;;  %v2101_v23 = vadd.f32 0.001, %v2037_v11  ;;  %v2289_v63 = vmul.f32 %v3957_v45, %v2225_v33  ;;  %3972 = vrsqrt.f32 %v2064_v50  ;;  %v2220_v11 = vld [vmem:[%s6037_s23 + $0x160] sm:$0xff]  ;;  %v2190_v33 = vld [vmem:[%s6037_s23 + $0x70] sm:$0xff] }
 0x25e   : > { %7950 = vst [vmem:[#allocation94_spill] sm:$0xff] %v6289_v7  ;;  %v6296_v35 = vmul.f32 0.0051020407, %v1383_v48  ;;  %v7956_v48 = vld [vmem:[#allocation153_spill] sm:$0xff]  ;;  %v3961_v53 = vpop.eup %3960  ;;  %v2002_v8 = vmax.f32 %v1938_v2, 0.0  ;;  %v2252_v62 = vmul.f32 %v3959_v24, %v2188_v34  ;;  %v2034_v50 = vmax.f32 %v1970_v14, 0.0 }
 0x25f   : > { %v6301_v6 = vpop.xlane.xlu0 %1667  ;;  %v3963_v21 = vpop.eup %3962  ;;  %3974 = vrsqrt.f32 %v2101_v23 }
 0x260   : > { %2519 = vperm.xlu0 %3801, %v2257_v3   ;;  %v1879_v3 = vmul.f32 %v6279_v20, %v6279_v20  ;;  %v3965_v38 = vpop.eup %3964  ;;  %v1911_v2 = vmul.f32 %v6296_v35, %v6296_v35  ;;  %v2066_v34 = vadd.f32 0.001, %v2002_v8 }
 0x261   : > { %v1671_v54 = vpop.xlane.xlu1 %1670  ;;  %2644 = vperm.xlu1 %3800, %v2282_v46   ;;  %v2096_v46 = vadd.f32 0.001, %v2032_v12  ;;  %v3967_v45 = vpop.eup %3966  ;;  %v2259_v24 = vmul.f32 %v3965_v38, %v2195_v56  ;;  %v2284_v12 = vmul.f32 %v3961_v53, %v2220_v11  ;;  %v2098_v11 = vadd.f32 0.001, %v2034_v50 }
 0x262   : > { %v1815_v4 = vmul.f32 0.0051020407, %v1671_v54  ;;  %v2291_v37 = vmul.f32 %v3967_v45, %v2227_v59  ;;  %v7961_v59 = vld [vmem:[#allocation163_spill] sm:$0xff] }
 0x263   : > { %v6315_v32 = vpop.xlane.xlu0 %1763  ;;  %3976 = vrsqrt.f32 %v2096_v46 }
 0x264   : > { %v1943_v18 = vsub.f32 %v1815_v4, %v1879_v3  ;;  %2679 = vperm.xlu0 %3801, %v2289_v63   ;;  %v1876_v4 = vmul.f32 %v6223_v13, %v6223_v13  ;;  %v2254_v3 = vmul.f32 %v3963_v21, %v2190_v33  ;;  %v3969_v14 = vpop.eup %3968  ;;  %v2197_v21 = vld [vmem:[%s6037_s23 + $0xa8] sm:$0xff]  ;;  %v2222_v33 = vld [vmem:[%s6037_s23 + $0x170] sm:$0xff] }
 0x265   : > { %v1767_v9 = vpop.xlane.xlu1 %1766  ;;  %2494 = vperm.xlu1 %3800, %v2252_v62  }
 0x266   : > { %v2007_v54 = vmax.f32 %v1943_v18, 0.0  ;;  %v1847_v60 = vmul.f32 0.0051020407, %v1767_v9  ;;  %v1940_v18 = vsub.f32 %v1812_v26, %v1876_v4  ;;  %v1908_v9 = vmul.f32 %v6235_v10, %v6235_v10 }
 0x267   : > { %v1290_v63 = vpop.xlane.xlu0 %1289 }
 0x268   : > { %v2071_v23 = vadd.f32 0.001, %v2007_v54  ;;  %v1975_v62 = vsub.f32 %v1847_v60, %v1911_v2  ;;  %2529 = vperm.xlu0 %3801, %v2259_v24   ;;  %v6329_v56 = vmul.f32 0.0051020407, %v1290_v63  ;;  %v3971_v24 = vpop.eup %3970  ;;  %v1972_v4 = vsub.f32 %v1844_v51, %v1908_v9  ;;  %v2229_v2 = vld [vmem:[%s6037_s23 + $0x1a8] sm:$0xff]  ;;  %v2192_v51 = vld [vmem:[%s6037_s23 + $0x80] sm:$0xff] }
 0x269   : > { %v1293_v8 = vpop.xlane.xlu1 %1292  ;;  %2654 = vperm.xlu1 %3800, %v2284_v12   ;;  %v1814_v63 = vmul.f32 0.0051020407, %v6301_v6  ;;  %v2004_v45 = vmax.f32 %v1940_v18, 0.0  ;;  %v3973_v9 = vpop.eup %3972  ;;  %v2286_v26 = vmul.f32 %v3971_v24, %v2222_v33  ;;  %v1846_v33 = vmul.f32 0.0051020407, %v6315_v32 }
 0x26a   : > { %7957 = vst [vmem:[#allocation96_spill] sm:$0xff] %v6329_v56  ;;  %3978 = vrsqrt.f32 %v2071_v23  ;;  %v2039_v38 = vmax.f32 %v1975_v62, 0.0  ;;  %v6331_v53 = vmul.f32 0.0051020407, %v1293_v8  ;;  %v7962_v8 = vld [vmem:[#allocation166_spill] sm:$0xff]  ;;  %v2036_v62 = vmax.f32 %v1972_v4, 0.0 }
 0x26b   : > { %3980 = vrsqrt.f32 %v2066_v34  ;;  %v1386_v54 = vpop.xlane.xlu0 %1385  ;;  %v1878_v34 = vmul.f32 %v6275_v40, %v6275_v40  ;;  %v2068_v18 = vadd.f32 0.001, %v2004_v45 }
 0x26c   : > { %v2103_v12 = vadd.f32 0.001, %v2039_v38  ;;  %v6340_v23 = vmul.f32 0.0051020407, %v1386_v54  ;;  %2689 = vperm.xlu0 %3801, %v2291_v37   ;;  %v2261_v38 = vmul.f32 %v3969_v14, %v2197_v21  ;;  %v3975_v54 = vpop.eup %3974  ;;  %v1881_v24 = vmul.f32 %v6331_v53, %v6331_v53 }
 0x26d   : > { %v1389_v50 = vpop.xlane.xlu1 %1388  ;;  %2504 = vperm.xlu1 %3800, %v2254_v3   ;;  %v1942_v40 = vsub.f32 %v1814_v63, %v1878_v34  ;;  %v2293_v63 = vmul.f32 %v3975_v54, %v2229_v2  ;;  %v2199_v34 = vld [vmem:[%s6037_s23 + $0xb8] sm:$0xff]  ;;  %v2256_v3 = vmul.f32 %v3973_v9, %v2192_v51  ;;  %v1880_v9 = vmul.f32 %v6329_v56, %v6329_v56 }
 0x26e   : > { %7960 = vst [vmem:[#allocation207_spill] sm:$0xff] %v6340_v23  ;;  %3982 = vrsqrt.f32 %v2103_v12  ;;  %v6348_v6 = vmul.f32 0.0051020407, %v1389_v50  ;;  %v2100_v12 = vadd.f32 0.001, %v2036_v62 }
 0x26f   : > { %v1674_v60 = vpop.xlane.xlu0 %1673  ;;  %3984 = vrsqrt.f32 %v2098_v11  ;;  %v2006_v21 = vmax.f32 %v1942_v40, 0.0  ;;  %v1910_v11 = vmul.f32 %v6289_v7, %v6289_v7  ;;  %v2231_v40 = vld [vmem:[%s6037_s23 + $0x1b8] sm:$0xff] }
 0x270   : > { %7963 = vst [vmem:[#allocation95_spill] sm:$0xff] %v6348_v6  ;;  %2539 = vperm.xlu0 %3801, %v2261_v38   ;;  %v3977_v38 = vpop.eup %3976  ;;  %3986 = vrsqrt.f32 %v2068_v18  ;;  %v1816_v14 = vmul.f32 0.0051020407, %v1674_v60  ;;  %v1913_v62 = vmul.f32 %v6348_v6, %v6348_v6 }
 0x271   : > { %v1677_v37 = vpop.xlane.xlu1 %1676  ;;  %2664 = vperm.xlu1 %3800, %v2286_v26   ;;  %v2224_v26 = vld [vmem:[%s6037_s23 + $0x180] sm:$0xff]  ;;  %3988 = vrsqrt.f32 %v2100_v12  ;;  %v2070_v18 = vadd.f32 0.001, %v2006_v21  ;;  %v1912_v12 = vmul.f32 %v6340_v23, %v6340_v23 }
 0x272   : > { %v1817_v4 = vmul.f32 0.0051020407, %v1677_v37  ;;  %v1974_v37 = vsub.f32 %v1846_v33, %v1910_v11 }
 0x273   : > { %v1770_v46 = vpop.xlane.xlu0 %1769 }
 0x274   : > { %v3979_v50 = vpop.eup %3978  ;;  %v1945_v45 = vsub.f32 %v1817_v4, %v1881_v24  ;;  %2699 = vperm.xlu0 %3801, %v2293_v63   ;;  %v2288_v4 = vmul.f32 %v3977_v38, %v2224_v26  ;;  %v1848_v33 = vmul.f32 0.0051020407, %v1770_v46 }
 0x275   : > { %v3981_v32 = vpop.eup %3980  ;;  %v1773_v10 = vpop.xlane.xlu1 %1772  ;;  %2514 = vperm.xlu1 %3800, %v2256_v3   ;;  %v2263_v2 = vmul.f32 %v3979_v50, %v2199_v34  ;;  %v2194_v3 = vld [vmem:[%s6037_s23 + $0x90] sm:$0xff]  ;;  %v1944_v50 = vsub.f32 %v1816_v14, %v1880_v9 }
 0x276   : > { %v2009_v54 = vmax.f32 %v1945_v45, 0.0  ;;  %v1849_v51 = vmul.f32 0.0051020407, %v1773_v10  ;;  %v2038_v45 = vmax.f32 %v1974_v37, 0.0  ;;  %v2258_v26 = vmul.f32 %v3981_v32, %v2194_v3 }
 0x277   : > { %v1296_v24 = vpop.xlane.xlu0 %1295  ;;  %v2008_v37 = vmax.f32 %v1944_v50, 0.0 }
 0x278   : > { %v3983_v63 = vpop.eup %3982  ;;  %v2073_v60 = vadd.f32 0.001, %v2009_v54  ;;  %v1977_v7 = vsub.f32 %v1849_v51, %v1913_v62  ;;  %2549 = vperm.xlu0 %3801, %v2263_v2   ;;  %v6373_v34 = vmul.f32 0.0051020407, %v1296_v24  ;;  %v7972_v24 = vld [vmem:[#allocation177_spill] sm:$0xff] }
 0x279   : > { %v1299_v11 = vpop.xlane.xlu1 %1298  ;;  %2674 = vperm.xlu1 %3800, %v2288_v4   ;;  %v2295_v10 = vmul.f32 %v3983_v63, %v2231_v40  ;;  %v3985_v38 = vpop.eup %3984  ;;  %v1976_v40 = vsub.f32 %v1848_v33, %v1912_v12  ;;  %v7973_v4 = vld [vmem:[#allocation180_spill] sm:$0xff]  ;;  %v2196_v54 = vld [vmem:[%s6037_s23 + $0xa0] sm:$0xff]  ;;  %v2072_v63 = vadd.f32 0.001, %v2008_v37 }
 0x27a   : > { %7968 = vst [vmem:[#allocation168_spill] sm:$0xff] %v6373_v34  ;;  %3990 = vrsqrt.f32 %v2073_v60  ;;  %v2041_v56 = vmax.f32 %v1977_v7, 0.0  ;;  %v6375_v6 = vmul.f32 0.0051020407, %v1299_v11  ;;  %v2226_v7 = vld [vmem:[%s6037_s23 + $0x190] sm:$0xff]  ;;  %v3987_v11 = vpop.eup %3986 }
 0x27b   : > { %v1392_v21 = vpop.xlane.xlu0 %1391  ;;  %3992 = vrsqrt.f32 %v2070_v18  ;;  %v2102_v60 = vadd.f32 0.001, %v2038_v45  ;;  %v2290_v50 = vmul.f32 %v3985_v38, %v2226_v7  ;;  %v2040_v18 = vmax.f32 %v1976_v40, 0.0  ;;  %v3989_v38 = vpop.eup %3988  ;;  %v2228_v40 = vld [vmem:[%s6037_s23 + $0x1a0] sm:$0xff] }
 0x27c   : > { %v2105_v62 = vadd.f32 0.001, %v2041_v56  ;;  %v6383_v51 = vmul.f32 0.0051020407, %v1392_v21  ;;  %2709 = vperm.xlu0 %3801, %v2295_v10   ;;  %v1882_v21 = vmul.f32 %v6373_v34, %v6373_v34  ;;  %v1883_v12 = vmul.f32 %v6375_v6, %v6375_v6 }
 0x27d   : > { %v1395_v9 = vpop.xlane.xlu1 %1394  ;;  %2524 = vperm.xlu1 %3800, %v2258_v26   ;;  %v2260_v2 = vmul.f32 %v3987_v11, %v2196_v54 }
 0x27e   : > { %7971 = vst [vmem:[#allocation182_spill] sm:$0xff] %v6383_v51  ;;  %3994 = vrsqrt.f32 %v2105_v62  ;;  %v6390_v3 = vmul.f32 0.0051020407, %v1395_v9  ;;  %v1914_v37 = vmul.f32 %v6383_v51, %v6383_v51  ;;  %v2292_v51 = vmul.f32 %v3989_v38, %v2228_v40  ;;  %v2202_v40 = vld [vmem:[%s6037_s23 + $0xd0] sm:$0xff] }
 0x27f   : > { %v1680_v10 = vpop.xlane.xlu0 %1679  ;;  %3996 = vrsqrt.f32 %v2102_v60 }
 0x280   : > { %v1818_v26 = vmul.f32 0.0051020407, %v1680_v10  ;;  %v2201_v10 = vld [vmem:[%s6037_s23 + $0xc8] sm:$0xff]  ;;  %3998 = vrsqrt.f32 %v2072_v63  ;;  %v1915_v54 = vmul.f32 %v6390_v3, %v6390_v3 }
 0x281   : > { %v1683_v32 = vpop.xlane.xlu1 %1682  ;;  %2684 = vperm.xlu1 %3800, %v2290_v50   ;;  %v2104_v50 = vadd.f32 0.001, %v2040_v18  ;;  %v2198_v18 = vld [vmem:[%s6037_s23 + $0xb0] sm:$0xff] }
 0x282   : > { %v1946_v7 = vsub.f32 %v1818_v26, %v1882_v21  ;;  %v1819_v33 = vmul.f32 0.0051020407, %v1683_v32 }
 0x283   : > { %v1776_v56 = vpop.xlane.xlu0 %1775  ;;  %4000 = vrsqrt.f32 %v2104_v50 }
 0x284   : > { %v3991_v34 = vpop.eup %3990  ;;  %v1947_v62 = vsub.f32 %v1819_v33, %v1883_v12  ;;  %v1850_v46 = vmul.f32 0.0051020407, %v1776_v56  ;;  %v2010_v14 = vmax.f32 %v1946_v7, 0.0  ;;  %v2233_v33 = vld [vmem:[%s6037_s23 + $0x1c8] sm:$0xff] }
 0x285   : > { %v1779_v60 = vpop.xlane.xlu1 %1778  ;;  %2534 = vperm.xlu1 %3800, %v2260_v2   ;;  %v2265_v21 = vmul.f32 %v3991_v34, %v2201_v10  ;;  %v3993_v26 = vpop.eup %3992 }
 0x286   : > { %v2011_v32 = vmax.f32 %v1947_v62, 0.0  ;;  %v1978_v9 = vsub.f32 %v1850_v46, %v1914_v37  ;;  %v1851_v11 = vmul.f32 0.0051020407, %v1779_v60  ;;  %v2074_v7 = vadd.f32 0.001, %v2010_v14  ;;  %v2200_v14 = vld [vmem:[%s6037_s23 + $0xc0] sm:$0xff] }
 0x287   : > { %v1302_v12 = vpop.xlane.xlu0 %1301  ;;  %2559 = vperm.xlu0 %3801, %v2265_v21   ;;  %v2262_v38 = vmul.f32 %v3993_v26, %v2198_v18 }
 0x288   : > { %v3995_v56 = vpop.eup %3994  ;;  %v2075_v45 = vadd.f32 0.001, %v2011_v32  ;;  %v1979_v63 = vsub.f32 %v1851_v11, %v1915_v54  ;;  %v6413_v23 = vmul.f32 0.0051020407, %v1302_v12  ;;  %v2042_v2 = vmax.f32 %v1978_v9, 0.0 }
 0x289   : > { %v1305_v34 = vpop.xlane.xlu1 %1304  ;;  %2694 = vperm.xlu1 %3800, %v2292_v51   ;;  %v2297_v46 = vmul.f32 %v3995_v56, %v2233_v33  ;;  %v3997_v21 = vpop.eup %3996  ;;  %v2230_v51 = vld [vmem:[%s6037_s23 + $0x1b0] sm:$0xff] }
 0x28a   : > { %7978 = vst [vmem:[#allocation178_spill] sm:$0xff] %v6413_v23  ;;  %4002 = vrsqrt.f32 %v2075_v45  ;;  %v2043_v62 = vmax.f32 %v1979_v63, 0.0  ;;  %v6415_v10 = vmul.f32 0.0051020407, %v1305_v34  ;;  %v2106_v12 = vadd.f32 0.001, %v2042_v2  ;;  %v3999_v34 = vpop.eup %3998 }
 0x28b   : > { %v1398_v37 = vpop.xlane.xlu0 %1397  ;;  %2719 = vperm.xlu0 %3801, %v2297_v46   ;;  %4004 = vrsqrt.f32 %v2074_v7  ;;  %v2232_v2 = vld [vmem:[%s6037_s23 + $0x1c0] sm:$0xff] }
 0x28c   : > { %7979 = vst [vmem:[#allocation135_spill] sm:$0xff] %v6415_v10  ;;  %v2107_v32 = vadd.f32 0.001, %v2043_v62  ;;  %v6421_v54 = vmul.f32 0.0051020407, %v1398_v37  ;;  %v2294_v62 = vmul.f32 %v3997_v21, %v2230_v51  ;;  %v1885_v21 = vmul.f32 %v6415_v10, %v6415_v10  ;;  %v2203_v37 = vld [vmem:[%s6037_s23 + $0xd8] sm:$0xff] }
 0x28d   : > { %v1401_v45 = vpop.xlane.xlu1 %1400  ;;  %2544 = vperm.xlu1 %3800, %v2262_v38   ;;  %v1884_v38 = vmul.f32 %v6413_v23, %v6413_v23  ;;  %v4001_v7 = vpop.eup %4000 }
 0x28e   : > { %7982 = vst [vmem:[#allocation138_spill] sm:$0xff] %v6421_v54  ;;  %4006 = vrsqrt.f32 %v2107_v32  ;;  %v6428_v56 = vmul.f32 0.0051020407, %v1401_v45  ;;  %v1916_v33 = vmul.f32 %v6421_v54, %v6421_v54 }
 0x28f   : > { %v1686_v46 = vpop.xlane.xlu0 %1685  ;;  %4008 = vrsqrt.f32 %v2106_v12 }
 0x290   : > { %7985 = vst [vmem:[#allocation149_spill] sm:$0xff] %v6428_v56  ;;  %v1820_v11 = vmul.f32 0.0051020407, %v1686_v46  ;;  %v2264_v46 = vmul.f32 %v3999_v34, %v2200_v14  ;;  %v2235_v14 = vld [vmem:[%s6037_s23 + $0x1d8] sm:$0xff] }
 0x291   : > { %v1689_v18 = vpop.xlane.xlu1 %1688  ;;  %2704 = vperm.xlu1 %3800, %v2294_v62  }
 0x292   : > { %v1948_v60 = vsub.f32 %v1820_v11, %v1884_v38  ;;  %v1821_v51 = vmul.f32 0.0051020407, %v1689_v18  ;;  %v1917_v11 = vmul.f32 %v6428_v56, %v6428_v56 }
 0x293   : > { %v1782_v63 = vpop.xlane.xlu0 %1781 }
 0x294   : > { %v4003_v26 = vpop.eup %4002  ;;  %v2012_v9 = vmax.f32 %v1948_v60, 0.0  ;;  %v1949_v32 = vsub.f32 %v1821_v51, %v1885_v21  ;;  %v1852_v45 = vmul.f32 0.0051020407, %v1782_v63  ;;  %v2296_v21 = vmul.f32 %v4001_v7, %v2232_v2  ;;  %v7991_v2 = vld [vmem:[#allocation201_spill] sm:$0xff] }
 0x295   : > { %v1785_v12 = vpop.xlane.xlu1 %1784  ;;  %2554 = vperm.xlu1 %3800, %v2264_v46   ;;  %v2267_v18 = vmul.f32 %v4003_v26, %v2203_v37  ;;  %v4005_v34 = vpop.eup %4004 }
 0x296   : > { %v2076_v62 = vadd.f32 0.001, %v2012_v9  ;;  %v2013_v38 = vmax.f32 %v1949_v32, 0.0  ;;  %v1980_v10 = vsub.f32 %v1852_v45, %v1916_v33  ;;  %v1853_v50 = vmul.f32 0.0051020407, %v1785_v12 }
 0x297   : > { %2569 = vperm.xlu0 %3801, %v2267_v18   ;;  %v1308_v60 = vpop.xlane.xlu0 %1307  ;;  %v2266_v7 = vmul.f32 %v4005_v34, %v2202_v40 }
 0x298   : > { %v4007_v51 = vpop.eup %4006  ;;  %4010 = vrsqrt.f32 %v2076_v62  ;;  %v2077_v63 = vadd.f32 0.001, %v2013_v38  ;;  %v2044_v54 = vmax.f32 %v1980_v10, 0.0  ;;  %v1981_v23 = vsub.f32 %v1853_v50, %v1917_v11  ;;  %v7992_v10 = vld [vmem:[#allocation203_spill] sm:$0xff] }
 0x299   : > { %v6451_v56 = vmul.f32 0.0051020407, %v1308_v60  ;;  %2714 = vperm.xlu1 %3800, %v2296_v21   ;;  %v1311_v26 = vpop.xlane.xlu1 %1310  ;;  %v2299_v9 = vmul.f32 %v4007_v51, %v2235_v14  ;;  %v4009_v11 = vpop.eup %4008  ;;  %v2234_v62 = vld [vmem:[%s6037_s23 + $0x1d0] sm:$0xff] }
 0x29a   : > { %4012 = vrsqrt.f32 %v2077_v63  ;;  %v2108_v33 = vadd.f32 0.001, %v2044_v54  ;;  %v2045_v37 = vmax.f32 %v1981_v23, 0.0  ;;  %v6453_v32 = vmul.f32 0.0051020407, %v1311_v26 }
 0x29b   : > { %2729 = vperm.xlu0 %3801, %v2299_v9   ;;  %v1404_v45 = vpop.xlane.xlu0 %1403  ;;  %v2298_v63 = vmul.f32 %v4009_v11, %v2234_v62  ;;  %v2205_v9 = vld [vmem:[%s6037_s23 + $0xe8] sm:$0xff] }
 0x29c   : > { %7990 = vst [vmem:[#allocation152_spill] sm:$0xff] %v6453_v32  ;;  %4014 = vrsqrt.f32 %v2108_v33  ;;  %v2109_v12 = vadd.f32 0.001, %v2045_v37  ;;  %v6459_v18 = vmul.f32 0.0051020407, %v1404_v45  ;;  %v1886_v33 = vmul.f32 %v6451_v56, %v6451_v56  ;;  %v2204_v45 = vld [vmem:[%s6037_s23 + $0xe0] sm:$0xff] }
 0x29d   : > { %2564 = vperm.xlu1 %3800, %v2266_v7   ;;  %v1407_v23 = vpop.xlane.xlu1 %1406  ;;  %v1887_v11 = vmul.f32 %v6453_v32, %v6453_v32 }
 0x29e   : > { %7993 = vst [vmem:[#allocation151_spill] sm:$0xff] %v6459_v18  ;;  %4016 = vrsqrt.f32 %v2109_v12  ;;  %v6466_v34 = vmul.f32 0.0051020407, %v1407_v23  ;;  %v1918_v7 = vmul.f32 %v6459_v18, %v6459_v18 }
 0x29f   : > { %v1692_v51 = vpop.xlane.xlu0 %1691 }
 0x2a0   : > { %7996 = vst [vmem:[#allocation153_spill] sm:$0xff] %v6466_v34  ;;  %v1822_v37 = vmul.f32 0.0051020407, %v1692_v51 }
 0x2a1   : > { %2724 = vperm.xlu1 %3800, %v2298_v63   ;;  %v1695_v38 = vpop.xlane.xlu1 %1694  ;;  %v2236_v63 = vld [vmem:[%s6037_s23 + $0x1e0] sm:$0xff] }
 0x2a2   : > { %v4011_v21 = vpop.eup %4010  ;;  %v1950_v50 = vsub.f32 %v1822_v37, %v1886_v33  ;;  %v1823_v62 = vmul.f32 0.0051020407, %v1695_v38  ;;  %v1919_v33 = vmul.f32 %v6466_v34, %v6466_v34 }
 0x2a3   : > { %v1788_v46 = vpop.xlane.xlu0 %1787  ;;  %v2268_v51 = vmul.f32 %v4011_v21, %v2204_v45 }
 0x2a4   : > { %v4013_v26 = vpop.eup %4012  ;;  %v2014_v60 = vmax.f32 %v1950_v50, 0.0  ;;  %v1951_v14 = vsub.f32 %v1823_v62, %v1887_v11  ;;  %v1854_v23 = vmul.f32 0.0051020407, %v1788_v46  ;;  %v2237_v50 = vld [vmem:[%s6037_s23 + $0x1e8] sm:$0xff] }
 0x2a5   : > { %2574 = vperm.xlu1 %3800, %v2268_v51   ;;  %v1791_v37 = vpop.xlane.xlu1 %1790  ;;  %v2269_v12 = vmul.f32 %v4013_v26, %v2205_v9 }
 0x2a6   : > { %v4015_v38 = vpop.eup %4014  ;;  %v2078_v40 = vadd.f32 0.001, %v2014_v60  ;;  %v2015_v21 = vmax.f32 %v1951_v14, 0.0  ;;  %v1982_v45 = vsub.f32 %v1854_v23, %v1918_v7  ;;  %v1855_v32 = vmul.f32 0.0051020407, %v1791_v37  ;;  %v8001_v60 = vld [vmem:[#allocation31_spill] sm:$0xff] }
 0x2a7   : > { %2579 = vperm.xlu0 %3801, %v2269_v12   ;;  %v2300_v11 = vmul.f32 %v4015_v38, %v2236_v63  ;;  %v8002_v14 = vld [vmem:[#allocation220_spill] sm:$0xff]  ;;  %v8004_v37 = vld [vmem:[#allocation33_spill] sm:$0xff] }
 0x2a8   : > { %v4017_v62 = vpop.eup %4016  ;;  %4018 = vrsqrt.f32 %v2078_v40  ;;  %v2079_v46 = vadd.f32 0.001, %v2015_v21  ;;  %v2046_v18 = vmax.f32 %v1982_v45, 0.0  ;;  %v1983_v51 = vsub.f32 %v1855_v32, %v1919_v33  ;;  %v8006_v33 = vld [vmem:[#allocation78_spill] sm:$0xff] }
 0x2a9   : > { %2734 = vperm.xlu1 %3800, %v2300_v11   ;;  %v2595_v34 = vpop.permute.xlu1 %2594  ;;  %v2301_v54 = vmul.f32 %v4017_v62, %v2237_v50  ;;  %v8003_v7 = vsub.f32 %v8001_v60, %v8002_v14  ;;  %v8005_v12 = vsub.f32 %v8004_v37, %v8002_v14  ;;  %v8007_v21 = vld [vmem:[#allocation30_spill] sm:$0xff]  ;;  %v8010_v62 = vld [vmem:[#allocation32_spill] sm:$0xff] }
 0x2aa   : > { %4020 = vrsqrt.f32 %v2079_v46  ;;  %v2110_v26 = vadd.f32 0.001, %v2046_v18  ;;  %v2047_v9 = vmax.f32 %v1983_v51, 0.0  ;;  %v8008_v45 = vld [vmem:[#allocation218_spill] sm:$0xff] }
 0x2ab   : > { %v2816_v23 = vmul.f32 %v2595_v34, %v8003_v7  ;;  %v2817_v63 = vmul.f32 %v2595_v34, %v8005_v12  ;;  %2739 = vperm.xlu0 %3801, %v2301_v54   ;;  %v2435_v40 = vpop.permute.xlu0 %2434  ;;  %v8009_v50 = vsub.f32 %v8007_v21, %v8008_v45  ;;  %v8011_v46 = vsub.f32 %v8010_v62, %v8008_v45  ;;  %v8012_v54 = vld [vmem:[#allocation6_spill] sm:$0xff]  ;;  %v8019_v21 = vld [vmem:[#allocation35_spill] sm:$0xff]  ;;  %v8022_v62 = vld [vmem:[#allocation37_spill] sm:$0xff] }
 0x2ac   : > { %4022 = vrsqrt.f32 %v2110_v26  ;;  %v2111_v32 = vadd.f32 0.001, %v2047_v9  ;;  %v8013_v26 = vld [vmem:[#allocation34_spill] sm:$0xff]  ;;  %v8014_v9 = vld [vmem:[#allocation221_spill] sm:$0xff]  ;;  %v8020_v45 = vld [vmem:[#allocation219_spill] sm:$0xff] }
 0x2ad   : > { %v3328_v38 = vadd.f32 %v8006_v33, %v2816_v23  ;;  %v2752_v11 = vmul.f32 %v2435_v40, %v8009_v50  ;;  %v3329_v18 = vadd.f32 %v8006_v33, %v2817_v63  ;;  %v2753_v51 = vmul.f32 %v2435_v40, %v8011_v46  ;;  %v2440_v60 = vpop.permute.xlu1 %2439  ;;  %v8016_v23 = vld [vmem:[#allocation36_spill] sm:$0xff] }
 0x2ae   : > { %4024 = vrsqrt.f32 %v2111_v32  ;;  %v8015_v14 = vsub.f32 %v8013_v26, %v8014_v9  ;;  %v8017_v37 = vsub.f32 %v8016_v23, %v8014_v9  ;;  %v8018_v32 = vld [vmem:[#allocation5_spill] sm:$0xff]  ;;  %v8021_v50 = vsub.f32 %v8019_v21, %v8020_v45  ;;  %v2207_v21 = vld [vmem:[%s6037_s23 + $0xf8] sm:$0xff] }
 0x2af   : > { %3456 = vst [vmem:[%s6505_s26 + $0x200] sm:$0xff] %v3328_v38  ;;  %v3264_v34 = vadd.f32 %v8012_v54, %v2752_v11  ;;  %3457 = vst [vmem:[%s6505_s26 + $0x208] sm:$0xff] %v3329_v18  ;;  %v3265_v63 = vadd.f32 %v8012_v54, %v2753_v51  ;;  %v2600_v40 = vpop.permute.xlu0 %2599  ;;  %v8023_v46 = vsub.f32 %v8022_v62, %v8020_v45  ;;  %v2206_v18 = vld [vmem:[%s6037_s23 + $0xf0] sm:$0xff]  ;;  %v8024_v54 = vld [vmem:[#allocation69_spill] sm:$0xff] }
 0x2b0   : > { %v2754_v7 = vmul.f32 %v2440_v60, %v8015_v14  ;;  %v2755_v12 = vmul.f32 %v2440_v60, %v8017_v37  ;;  %v2818_v11 = vmul.f32 %v2600_v40, %v8021_v50  ;;  %v8025_v14 = vld [vmem:[#allocation40_spill] sm:$0xff]  ;;  %v8031_v62 = vld [vmem:[#allocation45_spill] sm:$0xff] }
 0x2b1   : > { %3392 = vst [vmem:[%s6505_s26] sm:$0xff] %v3264_v34  ;;  %v2819_v26 = vmul.f32 %v2600_v40, %v8023_v46  ;;  %3393 = vst [vmem:[%s6505_s26 + $0x8] sm:$0xff] %v3265_v63  ;;  %v2445_v51 = vpop.permute.xlu1 %2444  ;;  %v8032_v46 = vld [vmem:[#allocation140_spill] sm:$0xff] }
 0x2b2   : > { %v3266_v33 = vadd.f32 %v8018_v32, %v2754_v7  ;;  %v3267_v38 = vadd.f32 %v8018_v32, %v2755_v12  ;;  %v4019_v60 = vpop.eup %4018  ;;  %v3330_v34 = vadd.f32 %v8024_v54, %v2818_v11  ;;  %v8026_v7 = vld [vmem:[#allocation222_spill] sm:$0xff] }
 0x2b3   : > { %v3331_v9 = vadd.f32 %v8024_v54, %v2819_v26  ;;  %v8027_v23 = vsub.f32 %v8025_v14, %v8026_v7  ;;  %v8028_v12 = vld [vmem:[#allocation42_spill] sm:$0xff]  ;;  %v2610_v63 = vpop.permute.xlu0 %2609  ;;  %v2270_v45 = vmul.f32 %v4019_v60, %v2206_v18  ;;  %v8033_v26 = vsub.f32 %v8031_v62, %v8032_v46  ;;  %v8034_v14 = vld [vmem:[#allocation47_spill] sm:$0xff] }
 0x2b4   : > { %3394 = vst [vmem:[%s6505_s26 + $0x10] sm:$0xff] %v3266_v33  ;;  %3395 = vst [vmem:[%s6505_s26 + $0x18] sm:$0xff] %v3267_v38  ;;  %v8029_v32 = vsub.f32 %v8028_v12, %v8026_v7  ;;  %v4021_v33 = vpop.eup %4020  ;;  %v8030_v38 = vld [vmem:[#allocation8_spill] sm:$0xff] }
 0x2b5   : > { %v2756_v37 = vmul.f32 %v2445_v51, %v8027_v23  ;;  %3458 = vst [vmem:[%s6505_s26 + $0x210] sm:$0xff] %v3330_v34  ;;  %3459 = vst [vmem:[%s6505_s26 + $0x218] sm:$0xff] %v3331_v9  ;;  %v2822_v54 = vmul.f32 %v2610_v63, %v8033_v26  ;;  %v2238_v23 = vld [vmem:[%s6037_s23 + $0x1f0] sm:$0xff]  ;;  %2584 = vperm.xlu1 %3800, %v2270_v45   ;;  %v2605_v18 = vpop.permute.xlu1 %2604  ;;  %v2271_v60 = vmul.f32 %v4021_v33, %v2207_v21  ;;  %v2239_v45 = vld [vmem:[%s6037_s23 + $0x1f8] sm:$0xff] }
 0x2b6   : > { %v2757_v40 = vmul.f32 %v2445_v51, %v8029_v32  ;;  %v8035_v51 = vsub.f32 %v8034_v14, %v8032_v46  ;;  %v4023_v34 = vpop.eup %4022  ;;  %v8036_v9 = vld [vmem:[#allocation79_spill] sm:$0xff]  ;;  %v8037_v32 = vld [vmem:[#allocation41_spill] sm:$0xff] }
 0x2b7   : > { %v3268_v50 = vadd.f32 %v8030_v38, %v2756_v37  ;;  %v3334_v37 = vadd.f32 %v8036_v9, %v2822_v54  ;;  %v8040_v26 = vld [vmem:[#allocation43_spill] sm:$0xff]  ;;  %v2620_v14 = vpop.permute.xlu0 %2619  ;;  %2589 = vperm.xlu0 %3801, %v2271_v60   ;;  %v2302_v21 = vmul.f32 %v4023_v34, %v2238_v23  ;;  %v8048_v34 = vld [vmem:[#allocation89_spill] sm:$0xff] }
 0x2b8   : > { %v3269_v11 = vadd.f32 %v8030_v38, %v2757_v40  ;;  %v2823_v7 = vmul.f32 %v2610_v63, %v8035_v51  ;;  %v8038_v40 = vld [vmem:[#allocation134_spill] sm:$0xff]  ;;  %v4025_v33 = vpop.eup %4024  ;;  %v8043_v51 = vld [vmem:[#allocation55_spill] sm:$0xff] }
 0x2b9   : > { %3396 = vst [vmem:[%s6505_s26 + $0x20] sm:$0xff] %v3268_v50  ;;  %v8039_v38 = vsub.f32 %v8037_v32, %v8038_v40  ;;  %v8041_v63 = vsub.f32 %v8040_v26, %v8038_v40  ;;  %3462 = vst [vmem:[%s6505_s26 + $0x230] sm:$0xff] %v3334_v37  ;;  %v8042_v50 = vld [vmem:[#allocation88_spill] sm:$0xff]  ;;  %2744 = vperm.xlu1 %3800, %v2302_v21   ;;  %v2450_v23 = vpop.permute.xlu1 %2449  ;;  %v2303_v60 = vmul.f32 %v4025_v33, %v2239_v45  ;;  %v8050_v26 = vld [vmem:[#allocation223_spill] sm:$0xff] }
 0x2ba   : > { %3397 = vst [vmem:[%s6505_s26 + $0x28] sm:$0xff] %v3269_v11  ;;  %v3335_v12 = vadd.f32 %v8036_v9, %v2823_v7  ;;  %v8044_v7 = vld [vmem:[#allocation154_spill] sm:$0xff]  ;;  %v2942_v21 = vld [vmem:[%s4233_s11 + $0x1f0] sm:$0xff] }
 0x2bb   : > { %v2820_v62 = vmul.f32 %v2605_v18, %v8039_v38  ;;  %v2821_v46 = vmul.f32 %v2605_v18, %v8041_v63  ;;  %v8045_v9 = vsub.f32 %v8043_v51, %v8044_v7  ;;  %v8046_v18 = vld [vmem:[#allocation57_spill] sm:$0xff]  ;;  %2749 = vperm.xlu0 %3801, %v2303_v60   ;;  %v8054_v45 = vld [vmem:[#allocation7_spill] sm:$0xff] }
 0x2bc   : > { %3463 = vst [vmem:[%s6505_s26 + $0x238] sm:$0xff] %v3335_v12  ;;  %v8047_v40 = vsub.f32 %v8046_v18, %v8044_v7  ;;  %v2630_v7 = vpop.permute.xlu0 %2629  ;;  %v8060_v60 = vld [vmem:[#allocation99_spill] sm:$0xff] }
 0x2bd   : > { %v3332_v11 = vadd.f32 %v8042_v50, %v2820_v62  ;;  %v3333_v54 = vadd.f32 %v8042_v50, %v2821_v46  ;;  %v2826_v32 = vmul.f32 %v2620_v14, %v8045_v9  ;;  %v8049_v62 = vld [vmem:[#allocation44_spill] sm:$0xff]  ;;  %v8052_v50 = vld [vmem:[#allocation46_spill] sm:$0xff]  ;;  %3256 = vperm.xlu1 %3800, %v2942_v21  }
 0x2be   : > { %v2827_v38 = vmul.f32 %v2620_v14, %v8047_v40  ;;  %v8051_v63 = vsub.f32 %v8049_v62, %v8050_v26  ;;  %v8053_v51 = vsub.f32 %v8052_v50, %v8050_v26  ;;  %v8056_v9 = vld [vmem:[#allocation162_spill] sm:$0xff]  ;;  %v8058_v40 = vld [vmem:[#allocation67_spill] sm:$0xff]  ;;  %v2455_v62 = vpop.permute.xlu1 %2454 }
 0x2bf   : > { %3460 = vst [vmem:[%s6505_s26 + $0x220] sm:$0xff] %v3332_v11  ;;  %3461 = vst [vmem:[%s6505_s26 + $0x228] sm:$0xff] %v3333_v54  ;;  %v3338_v37 = vadd.f32 %v8048_v34, %v2826_v32  ;;  %v8055_v54 = vld [vmem:[#allocation65_spill] sm:$0xff]  ;;  %v8061_v26 = vld [vmem:[#allocation50_spill] sm:$0xff] }
 0x2c0   : > { %v3339_v12 = vadd.f32 %v8048_v34, %v2827_v38  ;;  %v2758_v46 = vmul.f32 %v2450_v23, %v8051_v63  ;;  %v2759_v14 = vmul.f32 %v2450_v23, %v8053_v51  ;;  %v8057_v32 = vsub.f32 %v8055_v54, %v8056_v9  ;;  %v2943_v23 = vld [vmem:[%s4233_s11 + $0x1f8] sm:$0xff]  ;;  %v8066_v21 = vld [vmem:[#allocation10_spill] sm:$0xff]  ;;  %s3737_s11 = sshll.u32 %s4145_s22, 14  ;;  %s7146_s22 = scalar_lea.sflag [#allocation3], %s250_s30 }
 0x2c1   : > { %3466 = vst [vmem:[%s6505_s26 + $0x250] sm:$0xff] %v3338_v37  ;;  %v8059_v38 = vsub.f32 %v8058_v40, %v8056_v9  ;;  %v8062_v63 = vld [vmem:[#allocation136_spill] sm:$0xff]  ;;  %3261 = vperm.xlu0 %3801, %v2943_v23   ;;  %v8067_v54 = vld [vmem:[#allocation74_spill] sm:$0xff]  ;;  %v8071_v23 = vld [vmem:[#allocation13_spill] sm:$0xff]  ;;  %s7136_s9 = scalar_lea.hbm %s7192_s5, %s3737_s11 }
 0x2c2   : > { %3467 = vst [vmem:[%s6505_s26 + $0x258] sm:$0xff] %v3339_v12  ;;  %v3270_v33 = vadd.f32 %v8054_v45, %v2758_v46  ;;  %v3271_v11 = vadd.f32 %v8054_v45, %v2759_v14  ;;  %v2830_v18 = vmul.f32 %v2630_v7, %v8057_v32  ;;  %v8063_v46 = vsub.f32 %v8061_v26, %v8062_v63  ;;  %v8064_v51 = vld [vmem:[#allocation52_spill] sm:$0xff] }
 0x2c3   : > { %v2831_v34 = vmul.f32 %v2630_v7, %v8059_v38  ;;  %v8065_v14 = vsub.f32 %v8064_v51, %v8062_v63  ;;  %v2480_v7 = vpop.permute.xlu0 %2479  ;;  %v8068_v9 = vsub.f32 %v8067_v54, %v5887_v19  ;;  %v8080_v54 = vld [vmem:[#allocation77_spill] sm:$0xff] }
 0x2c4   : > { %3398 = vst [vmem:[%s6505_s26 + $0x30] sm:$0xff] %v3270_v33  ;;  %3399 = vst [vmem:[%s6505_s26 + $0x38] sm:$0xff] %v3271_v11  ;;  %v3342_v37 = vadd.f32 %v8060_v60, %v2830_v18  ;;  %v2760_v50 = vmul.f32 %v2455_v62, %v8063_v46  ;;  %v8069_v18 = vld [vmem:[#allocation76_spill] sm:$0xff]  ;;  %v8075_v46 = vld [vmem:[#allocation53_spill] sm:$0xff] }
 0x2c5   : > { %v3343_v12 = vadd.f32 %v8060_v60, %v2831_v34  ;;  %v2761_v45 = vmul.f32 %v2455_v62, %v8065_v14  ;;  %v2770_v32 = vmul.f32 %v2480_v7, %v8068_v9  ;;  %v8070_v40 = vsub.f32 %v8069_v18, %v5887_v19  ;;  %v2615_v34 = vpop.permute.xlu1 %2614  ;;  %v8077_v14 = vld [vmem:[#allocation98_spill] sm:$0xff] }
 0x2c6   : > { %3470 = vst [vmem:[%s6505_s26 + $0x270] sm:$0xff] %v3342_v37  ;;  %v3272_v33 = vadd.f32 %v8066_v21, %v2760_v50  ;;  %v8072_v37 = vld [vmem:[#allocation51_spill] sm:$0xff]  ;;  %v8081_v9 = vsub.f32 %v8080_v54, %v5901_v39 }
 0x2c7   : > { %3471 = vst [vmem:[%s6505_s26 + $0x278] sm:$0xff] %v3343_v12  ;;  %v3273_v11 = vadd.f32 %v8066_v21, %v2761_v45  ;;  %v2771_v38 = vmul.f32 %v2480_v7, %v8070_v40  ;;  %v3282_v62 = vadd.f32 %v8071_v23, %v2770_v32  ;;  %v8073_v12 = vld [vmem:[#allocation148_spill] sm:$0xff]  ;;  %v2640_v19 = vpop.permute.xlu0 %2639  ;;  %v8078_v21 = vld [vmem:[#allocation75_spill] sm:$0xff]  ;;  %v8082_v40 = vld [vmem:[#allocation109_spill] sm:$0xff] }
 0x2c8   : > { %3400 = vst [vmem:[%s6505_s26 + $0x40] sm:$0xff] %v3272_v33  ;;  %v8074_v26 = vsub.f32 %v8072_v37, %v8073_v12  ;;  %v8076_v50 = vsub.f32 %v8075_v46, %v8073_v12  ;;  %v8079_v33 = vsub.f32 %v8078_v21, %v5901_v39  ;;  %v2835_v32 = vmul.f32 %v2640_v19, %v8081_v9  ;;  %v8086_v12 = vld [vmem:[#allocation56_spill] sm:$0xff]  ;;  %v8088_v46 = vld [vmem:[#allocation9_spill] sm:$0xff]  ;;  %v8093_v54 = vld [vmem:[#allocation15_spill] sm:$0xff] }
 0x2c9   : > { %3401 = vst [vmem:[%s6505_s26 + $0x48] sm:$0xff] %v3273_v11  ;;  %v3283_v60 = vadd.f32 %v8071_v23, %v2771_v38  ;;  %3410 = vst [vmem:[%s6505_s26 + $0x90] sm:$0xff] %v3282_v62  ;;  %v2460_v18 = vpop.permute.xlu1 %2459  ;;  %v8083_v23 = vld [vmem:[#allocation54_spill] sm:$0xff]  ;;  %v8084_v62 = vld [vmem:[#allocation141_spill] sm:$0xff] }
 0x2ca   : > { %v2824_v63 = vmul.f32 %v2615_v34, %v8074_v26  ;;  %v2825_v51 = vmul.f32 %v2615_v34, %v8076_v50  ;;  %v2834_v11 = vmul.f32 %v2640_v19, %v8079_v33  ;;  %v3347_v34 = vadd.f32 %v8082_v40, %v2835_v32  ;;  %v8089_v19 = vld [vmem:[#allocation84_spill] sm:$0xff] }
 0x2cb   : > { %3411 = vst [vmem:[%s6505_s26 + $0x98] sm:$0xff] %v3283_v60  ;;  %v8085_v60 = vsub.f32 %v8083_v23, %v8084_v62  ;;  %v8087_v26 = vsub.f32 %v8086_v12, %v8084_v62  ;;  %v2490_v39 = vpop.permute.xlu0 %2489  ;;  %v8097_v23 = vld [vmem:[#allocation62_spill] sm:$0xff] }
 0x2cc   : > { %v3336_v45 = vadd.f32 %v8077_v14, %v2824_v63  ;;  %v3337_v7 = vadd.f32 %v8077_v14, %v2825_v51  ;;  %v3346_v38 = vadd.f32 %v8082_v40, %v2834_v11  ;;  %3475 = vst [vmem:[%s6505_s26 + $0x298] sm:$0xff] %v3347_v34  ;;  %v8090_v14 = vsub.f32 %v8089_v19, %v5927_v43  ;;  %v8095_v40 = vld [vmem:[#allocation150_spill] sm:$0xff] }
 0x2cd   : > { %v2762_v37 = vmul.f32 %v2460_v18, %v8085_v60  ;;  %v2763_v63 = vmul.f32 %v2460_v18, %v8087_v26  ;;  %v2465_v11 = vpop.permute.xlu1 %2464  ;;  %v8094_v18 = vld [vmem:[#allocation60_spill] sm:$0xff]  ;;  %v8098_v62 = vsub.f32 %v8097_v23, %v8095_v40  ;;  %v8110_v23 = vsub.f32 %v7881_v42, %v5967_v1 }
 0x2ce   : > { %3464 = vst [vmem:[%s6505_s26 + $0x240] sm:$0xff] %v3336_v45  ;;  %3465 = vst [vmem:[%s6505_s26 + $0x248] sm:$0xff] %v3337_v7  ;;  %v2774_v45 = vmul.f32 %v2490_v39, %v8090_v14  ;;  %v8091_v7 = vld [vmem:[#allocation86_spill] sm:$0xff] }
 0x2cf   : > { %3474 = vst [vmem:[%s6505_s26 + $0x290] sm:$0xff] %v3346_v38  ;;  %v3274_v50 = vadd.f32 %v8088_v46, %v2762_v37  ;;  %v3275_v51 = vadd.f32 %v8088_v46, %v2763_v63  ;;  %v8092_v21 = vsub.f32 %v8091_v7, %v5927_v43  ;;  %v8096_v38 = vsub.f32 %v8094_v18, %v8095_v40  ;;  %v2650_v43 = vpop.permute.xlu0 %2649  ;;  %v8099_v37 = vld [vmem:[#allocation12_spill] sm:$0xff]  ;;  %v8100_v63 = vld [vmem:[#allocation85_spill] sm:$0xff] }
 0x2d0   : > { %v3286_v9 = vadd.f32 %v8093_v54, %v2774_v45  ;;  %v2765_v60 = vmul.f32 %v2465_v11, %v8098_v62  ;;  %v8104_v45 = vld [vmem:[#allocation119_spill] sm:$0xff]  ;;  %v8109_v40 = vld [vmem:[#allocation108_spill] sm:$0xff] }
 0x2d1   : > { %v2775_v33 = vmul.f32 %v2490_v39, %v8092_v21  ;;  %3402 = vst [vmem:[%s6505_s26 + $0x50] sm:$0xff] %v3274_v50  ;;  %3403 = vst [vmem:[%s6505_s26 + $0x58] sm:$0xff] %v3275_v51  ;;  %v2764_v34 = vmul.f32 %v2465_v11, %v8096_v38  ;;  %v8101_v39 = vsub.f32 %v8100_v63, %v5941_v17  ;;  %v8102_v50 = vld [vmem:[#allocation87_spill] sm:$0xff]  ;;  %v2625_v14 = vpop.permute.xlu1 %2624  ;;  %v8113_v63 = vld [vmem:[#allocation64_spill] sm:$0xff] }
 0x2d2   : > { %3414 = vst [vmem:[%s6505_s26 + $0xb0] sm:$0xff] %v3286_v9  ;;  %v3277_v26 = vadd.f32 %v8099_v37, %v2765_v60  ;;  %v8103_v51 = vsub.f32 %v8102_v50, %v5941_v17  ;;  %v8107_v9 = vld [vmem:[#allocation63_spill] sm:$0xff]  ;;  %v8111_v60 = vsub.f32 %v7882_v22, %v5967_v1 }
 0x2d3   : > { %v3287_v32 = vadd.f32 %v8093_v54, %v2775_v33  ;;  %v3276_v12 = vadd.f32 %v8099_v37, %v2764_v34  ;;  %v2838_v46 = vmul.f32 %v2650_v43, %v8101_v39  ;;  %v8105_v33 = vld [vmem:[#allocation61_spill] sm:$0xff]  ;;  %v2500_v17 = vpop.permute.xlu0 %2499  ;;  %v8114_v39 = vld [vmem:[#allocation155_spill] sm:$0xff] }
 0x2d4   : > { %v2839_v19 = vmul.f32 %v2650_v43, %v8103_v51  ;;  %3405 = vst [vmem:[%s6505_s26 + $0x68] sm:$0xff] %v3277_v26  ;;  %v8106_v11 = vsub.f32 %v8105_v33, %v5836_v41  ;;  %v2778_v62 = vmul.f32 %v2500_v17, %v8110_v23  ;;  %v2779_v43 = vmul.f32 %v2500_v17, %v8111_v60  ;;  %v8112_v37 = vld [vmem:[#allocation17_spill] sm:$0xff]  ;;  %v8116_v51 = vld [vmem:[#allocation66_spill] sm:$0xff]  ;;  %v8118_v22 = vld [vmem:[#allocation11_spill] sm:$0xff] }
 0x2d5   : > { %3415 = vst [vmem:[%s6505_s26 + $0xb8] sm:$0xff] %v3287_v32  ;;  %3404 = vst [vmem:[%s6505_s26 + $0x60] sm:$0xff] %v3276_v12  ;;  %v3350_v7 = vadd.f32 %v8104_v45, %v2838_v46  ;;  %v8108_v32 = vsub.f32 %v8107_v9, %v5836_v41  ;;  %v2470_v41 = vpop.permute.xlu1 %2469  ;;  %v8115_v46 = vsub.f32 %v8113_v63, %v8114_v39  ;;  %v8120_v33 = vld [vmem:[#allocation97_spill] sm:$0xff]  ;;  %v8125_v23 = vld [vmem:[#allocation72_spill] sm:$0xff] }
 0x2d6   : > { %v3351_v21 = vadd.f32 %v8104_v45, %v2839_v19  ;;  %v2828_v54 = vmul.f32 %v2625_v14, %v8106_v11  ;;  %v3290_v12 = vadd.f32 %v8112_v37, %v2778_v62  ;;  %v3291_v26 = vadd.f32 %v8112_v37, %v2779_v43  ;;  %v8127_v60 = vld [vmem:[#allocation14_spill] sm:$0xff]  ;;  %v8128_v37 = vld [vmem:[#allocation104_spill] sm:$0xff] }
 0x2d7   : > { %v2829_v18 = vmul.f32 %v2625_v14, %v8108_v32  ;;  %3478 = vst [vmem:[%s6505_s26 + $0x2b0] sm:$0xff] %v3350_v7  ;;  %v2766_v50 = vmul.f32 %v2470_v41, %v8115_v46  ;;  %v8117_v42 = vsub.f32 %v8116_v51, %v8114_v39  ;;  %v2660_v1 = vpop.permute.xlu0 %2659  ;;  %v8119_v7 = vsub.f32 %v7889_v5, %v5984_v44  ;;  %v8122_v32 = vld [vmem:[#allocation129_spill] sm:$0xff]  ;;  %v8130_v63 = vld [vmem:[#allocation106_spill] sm:$0xff] }
 0x2d8   : > { %3479 = vst [vmem:[%s6505_s26 + $0x2b8] sm:$0xff] %v3351_v21  ;;  %v3340_v38 = vadd.f32 %v8109_v40, %v2828_v54  ;;  %3418 = vst [vmem:[%s6505_s26 + $0xd0] sm:$0xff] %v3290_v12  ;;  %v8121_v11 = vsub.f32 %v8120_v33, %v5984_v44  ;;  %v8126_v5 = vsub.f32 %v8125_v23, %v7922_v29  ;;  %v8138_v33 = vld [vmem:[#allocation118_spill] sm:$0xff] }
 0x2d9   : > { %v3341_v34 = vadd.f32 %v8109_v40, %v2829_v18  ;;  %v2767_v19 = vmul.f32 %v2470_v41, %v8117_v42  ;;  %3419 = vst [vmem:[%s6505_s26 + $0xd8] sm:$0xff] %v3291_v26  ;;  %v3278_v14 = vadd.f32 %v8118_v22, %v2766_v50  ;;  %v2842_v21 = vmul.f32 %v2660_v1, %v8119_v7  ;;  %v2475_v9 = vpop.permute.xlu1 %2474  ;;  %v8123_v40 = vld [vmem:[#allocation70_spill] sm:$0xff]  ;;  %v8132_v50 = vld [vmem:[#allocation19_spill] sm:$0xff] }
 0x2da   : > { %3468 = vst [vmem:[%s6505_s26 + $0x260] sm:$0xff] %v3340_v38  ;;  %v2843_v54 = vmul.f32 %v2660_v1, %v8121_v11  ;;  %v8124_v38 = vsub.f32 %v8123_v40, %v7922_v29  ;;  %v2769_v62 = vmul.f32 %v2475_v9, %v8126_v5  ;;  %v8129_v12 = vsub.f32 %v8128_v37, %v6022_v52  ;;  %v8134_v1 = vld [vmem:[#allocation164_spill] sm:$0xff]  ;;  %v8142_v40 = vld [vmem:[#allocation107_spill] sm:$0xff] }
 0x2db   : > { %3469 = vst [vmem:[%s6505_s26 + $0x268] sm:$0xff] %v3341_v34  ;;  %v3279_v45 = vadd.f32 %v8118_v22, %v2767_v19  ;;  %3406 = vst [vmem:[%s6505_s26 + $0x70] sm:$0xff] %v3278_v14  ;;  %v3354_v18 = vadd.f32 %v8122_v32, %v2842_v21  ;;  %v2510_v44 = vpop.permute.xlu0 %2509  ;;  %v8131_v39 = vsub.f32 %v8130_v63, %v6022_v52  ;;  %v8133_v19 = vld [vmem:[#allocation71_spill] sm:$0xff] }
 0x2dc   : > { %v3355_v17 = vadd.f32 %v8122_v32, %v2843_v54  ;;  %v2768_v34 = vmul.f32 %v2475_v9, %v8124_v38  ;;  %v3281_v41 = vadd.f32 %v8127_v60, %v2769_v62  ;;  %v2782_v26 = vmul.f32 %v2510_v44, %v8129_v12  ;;  %v8139_v9 = vld [vmem:[#allocation105_spill] sm:$0xff]  ;;  %v8140_v32 = vld [vmem:[#allocation190_spill] sm:$0xff]  ;;  %v8144_v5 = vld [vmem:[#allocation143_spill] sm:$0xff] }
 0x2dd   : > { %3407 = vst [vmem:[%s6505_s26 + $0x78] sm:$0xff] %v3279_v45  ;;  %3482 = vst [vmem:[%s6505_s26 + $0x2d0] sm:$0xff] %v3354_v18  ;;  %v2783_v46 = vmul.f32 %v2510_v44, %v8131_v39  ;;  %v2635_v29 = vpop.permute.xlu1 %2634  ;;  %v8135_v22 = vsub.f32 %v8133_v19, %v8134_v1  ;;  %v8136_v45 = vld [vmem:[#allocation73_spill] sm:$0xff]  ;;  %v8141_v18 = vsub.f32 %v8139_v9, %v8140_v32  ;;  %v8148_v12 = vld [vmem:[#allocation82_spill] sm:$0xff] }
 0x2de   : > { %3483 = vst [vmem:[%s6505_s26 + $0x2d8] sm:$0xff] %v3355_v17  ;;  %v3280_v43 = vadd.f32 %v8127_v60, %v2768_v34  ;;  %3409 = vst [vmem:[%s6505_s26 + $0x88] sm:$0xff] %v3281_v41  ;;  %v3294_v51 = vadd.f32 %v8132_v50, %v2782_v26  ;;  %v8137_v7 = vsub.f32 %v8136_v45, %v8134_v1  ;;  %v8145_v60 = vld [vmem:[#allocation80_spill] sm:$0xff] }
 0x2df   : > { %v3295_v42 = vadd.f32 %v8132_v50, %v2783_v46  ;;  %v2832_v14 = vmul.f32 %v2635_v29, %v8135_v22  ;;  %v2670_v52 = vpop.permute.xlu0 %2669  ;;  %v8143_v38 = vsub.f32 %v8142_v40, %v8140_v32  ;;  %v8150_v46 = vld [vmem:[#allocation16_spill] sm:$0xff]  ;;  %v8159_v32 = vld [vmem:[#allocation83_spill] sm:$0xff] }
 0x2e0   : > { %3408 = vst [vmem:[%s6505_s26 + $0x80] sm:$0xff] %v3280_v43  ;;  %v2833_v21 = vmul.f32 %v2635_v29, %v8137_v7  ;;  %3422 = vst [vmem:[%s6505_s26 + $0xf0] sm:$0xff] %v3294_v51  ;;  %v2846_v17 = vmul.f32 %v2670_v52, %v8141_v18  ;;  %v8146_v43 = vld [vmem:[#allocation169_spill] sm:$0xff]  ;;  %v8151_v51 = vld [vmem:[#allocation114_spill] sm:$0xff] }
 0x2e1   : > { %3423 = vst [vmem:[%s6505_s26 + $0xf8] sm:$0xff] %v3295_v42  ;;  %v3344_v11 = vadd.f32 %v8138_v33, %v2832_v14  ;;  %v2847_v34 = vmul.f32 %v2670_v52, %v8143_v38  ;;  %v2485_v23 = vpop.permute.xlu1 %2484  ;;  %v8147_v41 = vsub.f32 %v8145_v60, %v8146_v43  ;;  %v8149_v26 = vsub.f32 %v8148_v12, %v8146_v43  ;;  %v8153_v1 = vld [vmem:[#allocation116_spill] sm:$0xff]  ;;  %v8155_v7 = vld [vmem:[#allocation21_spill] sm:$0xff] }
 0x2e2   : > { %v3345_v54 = vadd.f32 %v8138_v33, %v2833_v21  ;;  %v3358_v62 = vadd.f32 %v8144_v5, %v2846_v17  ;;  %v8152_v42 = vsub.f32 %v8151_v51, %v6102_v31  ;;  %v8154_v22 = vsub.f32 %v8153_v1, %v6102_v31  ;;  %v8156_v33 = vld [vmem:[#allocation81_spill] sm:$0xff]  ;;  %v8161_v40 = vld [vmem:[#allocation128_spill] sm:$0xff] }
 0x2e3   : > { %3472 = vst [vmem:[%s6505_s26 + $0x280] sm:$0xff] %v3344_v11  ;;  %v3359_v44 = vadd.f32 %v8144_v5, %v2847_v34  ;;  %v2772_v37 = vmul.f32 %v2485_v23, %v8147_v41  ;;  %v2773_v63 = vmul.f32 %v2485_v23, %v8149_v26  ;;  %v2520_v39 = vpop.permute.xlu0 %2519  ;;  %v8157_v11 = vld [vmem:[#allocation176_spill] sm:$0xff]  ;;  %v8162_v23 = vld [vmem:[#allocation115_spill] sm:$0xff] }
 0x2e4   : > { %3473 = vst [vmem:[%s6505_s26 + $0x288] sm:$0xff] %v3345_v54  ;;  %3486 = vst [vmem:[%s6505_s26 + $0x2f0] sm:$0xff] %v3358_v62  ;;  %v2786_v19 = vmul.f32 %v2520_v39, %v8152_v42  ;;  %v2787_v14 = vmul.f32 %v2520_v39, %v8154_v22  ;;  %v8158_v54 = vsub.f32 %v8156_v33, %v8157_v11  ;;  %v8171_v42 = vld [vmem:[#allocation18_spill] sm:$0xff]  ;;  %v8172_v22 = vld [vmem:[#allocation124_spill] sm:$0xff] }
 0x2e5   : > { %3487 = vst [vmem:[%s6505_s26 + $0x2f8] sm:$0xff] %v3359_v44  ;;  %v3284_v29 = vadd.f32 %v8150_v46, %v2772_v37  ;;  %v3285_v50 = vadd.f32 %v8150_v46, %v2773_v63  ;;  %v2645_v45 = vpop.permute.xlu1 %2644  ;;  %v8160_v18 = vsub.f32 %v8159_v32, %v8157_v11  ;;  %v8163_v5 = vsub.f32 %v8162_v23, %v6122_v16  ;;  %v8164_v44 = vld [vmem:[#allocation117_spill] sm:$0xff]  ;;  %v8167_v63 = vld [vmem:[#allocation90_spill] sm:$0xff]  ;;  %v8176_v33 = vld [vmem:[#allocation23_spill] sm:$0xff] }
 0x2e6   : > { %v3298_v21 = vadd.f32 %v8155_v7, %v2786_v19  ;;  %v3299_v52 = vadd.f32 %v8155_v7, %v2787_v14  ;;  %v2836_v9 = vmul.f32 %v2645_v45, %v8158_v54  ;;  %v8165_v60 = vsub.f32 %v8164_v44, %v6122_v16  ;;  %v8166_v37 = vld [vmem:[#allocation157_spill] sm:$0xff]  ;;  %v8174_v7 = vld [vmem:[#allocation126_spill] sm:$0xff] }
 0x2e7   : > { %3412 = vst [vmem:[%s6505_s26 + $0xa0] sm:$0xff] %v3284_v29  ;;  %3413 = vst [vmem:[%s6505_s26 + $0xa8] sm:$0xff] %v3285_v50  ;;  %v2837_v17 = vmul.f32 %v2645_v45, %v8160_v18  ;;  %v2680_v31 = vpop.permute.xlu0 %2679  ;;  %v8168_v39 = vsub.f32 %v8167_v63, %v5965_v25  ;;  %v8169_v29 = vld [vmem:[#allocation92_spill] sm:$0xff]  ;;  %v8173_v14 = vsub.f32 %v8172_v22, %v6167_v0 }
 0x2e8   : > { %3426 = vst [vmem:[%s6505_s26 + $0x110] sm:$0xff] %v3298_v21  ;;  %3427 = vst [vmem:[%s6505_s26 + $0x118] sm:$0xff] %v3299_v52  ;;  %v3348_v38 = vadd.f32 %v8161_v40, %v2836_v9  ;;  %v2850_v62 = vmul.f32 %v2680_v31, %v8163_v5  ;;  %v2851_v43 = vmul.f32 %v2680_v31, %v8165_v60  ;;  %v8177_v9 = vld [vmem:[#allocation91_spill] sm:$0xff]  ;;  %v8182_v5 = vld [vmem:[#allocation125_spill] sm:$0xff] }
 0x2e9   : > { %v3349_v34 = vadd.f32 %v8161_v40, %v2837_v17  ;;  %v2495_v41 = vpop.permute.xlu1 %2494  ;;  %v8170_v50 = vsub.f32 %v8169_v29, %v5965_v25  ;;  %v8175_v21 = vsub.f32 %v8174_v7, %v6167_v0  ;;  %v8178_v32 = vsub.f32 %v8177_v9, %v5974_v36  ;;  %v8179_v17 = vld [vmem:[#allocation93_spill] sm:$0xff]  ;;  %v8184_v60 = vld [vmem:[#allocation127_spill] sm:$0xff]  ;;  %v8187_v63 = vld [vmem:[#allocation100_spill] sm:$0xff] }
 0x2ea   : > { %3476 = vst [vmem:[%s6505_s26 + $0x2a0] sm:$0xff] %v3348_v38  ;;  %v3362_v12 = vadd.f32 %v8166_v37, %v2850_v62  ;;  %v3363_v26 = vadd.f32 %v8166_v37, %v2851_v43  ;;  %v2776_v46 = vmul.f32 %v2495_v41, %v8168_v39  ;;  %v8180_v31 = vsub.f32 %v8179_v17, %v5974_v36  ;;  %v8181_v38 = vld [vmem:[#allocation142_spill] sm:$0xff]  ;;  %v8186_v37 = vld [vmem:[#allocation171_spill] sm:$0xff]  ;;  %v8194_v7 = vld [vmem:[#allocation25_spill] sm:$0xff] }
 0x2eb   : > { %3477 = vst [vmem:[%s6505_s26 + $0x2a8] sm:$0xff] %v3349_v34  ;;  %v2777_v51 = vmul.f32 %v2495_v41, %v8170_v50  ;;  %v2530_v16 = vpop.permute.xlu0 %2529  ;;  %v8183_v62 = vsub.f32 %v8182_v5, %v6186_v15  ;;  %v8185_v43 = vsub.f32 %v8184_v60, %v6186_v15  ;;  %v8188_v39 = vsub.f32 %v8187_v63, %v6020_v27  ;;  %v8189_v29 = vld [vmem:[#allocation102_spill] sm:$0xff]  ;;  %v8198_v9 = vld [vmem:[#allocation103_spill] sm:$0xff] }
 0x2ec   : > { %3490 = vst [vmem:[%s6505_s26 + $0x310] sm:$0xff] %v3362_v12  ;;  %3491 = vst [vmem:[%s6505_s26 + $0x318] sm:$0xff] %v3363_v26  ;;  %v3288_v19 = vadd.f32 %v8171_v42, %v2776_v46  ;;  %v2790_v45 = vmul.f32 %v2530_v16, %v8173_v14  ;;  %v2791_v52 = vmul.f32 %v2530_v16, %v8175_v21  ;;  %v8191_v16 = vld [vmem:[#allocation20_spill] sm:$0xff] }
 0x2ed   : > { %v3289_v1 = vadd.f32 %v8171_v42, %v2777_v51  ;;  %v2655_v25 = vpop.permute.xlu1 %2654  ;;  %v8190_v50 = vsub.f32 %v8189_v29, %v6020_v27  ;;  %v8193_v14 = vsub.f32 %v7942_v55, %v6225_v58  ;;  %v8200_v55 = vld [vmem:[#allocation156_spill] sm:$0xff] }
 0x2ee   : > { %3416 = vst [vmem:[%s6505_s26 + $0xc0] sm:$0xff] %v3288_v19  ;;  %v3302_v11 = vadd.f32 %v8176_v33, %v2790_v45  ;;  %v3303_v54 = vadd.f32 %v8176_v33, %v2791_v52  ;;  %v2840_v18 = vmul.f32 %v2655_v25, %v8178_v32  ;;  %v2841_v40 = vmul.f32 %v2655_v25, %v8180_v31  ;;  %v8195_v25 = vld [vmem:[#allocation101_spill] sm:$0xff]  ;;  %v8196_v33 = vld [vmem:[#allocation183_spill] sm:$0xff] }
 0x2ef   : > { %3417 = vst [vmem:[%s6505_s26 + $0xc8] sm:$0xff] %v3289_v1  ;;  %v2690_v0 = vpop.permute.xlu0 %2689  ;;  %v8192_v1 = vsub.f32 %v7941_v61, %v6225_v58  ;;  %v8199_v61 = vsub.f32 %v8198_v9, %v8196_v33  ;;  %v8201_v31 = vld [vmem:[#allocation137_spill] sm:$0xff] }
 0x2f0   : > { %3430 = vst [vmem:[%s6505_s26 + $0x130] sm:$0xff] %v3302_v11  ;;  %3431 = vst [vmem:[%s6505_s26 + $0x138] sm:$0xff] %v3303_v54  ;;  %v3352_v34 = vadd.f32 %v8181_v38, %v2840_v18  ;;  %v3353_v23 = vadd.f32 %v8181_v38, %v2841_v40  ;;  %v2854_v44 = vmul.f32 %v2690_v0, %v8183_v62  ;;  %v8203_v38 = vld [vmem:[#allocation139_spill] sm:$0xff]  ;;  %v8205_v62 = vld [vmem:[#allocation185_spill] sm:$0xff] }
 0x2f1   : > { %v2855_v41 = vmul.f32 %v2690_v0, %v8185_v43  ;;  %v2505_v36 = vpop.permute.xlu1 %2504  ;;  %v8197_v11 = vsub.f32 %v8195_v25, %v8196_v33  ;;  %v8202_v40 = vsub.f32 %v8201_v31, %v6243_v47  ;;  %v8206_v43 = vld [vmem:[#allocation110_spill] sm:$0xff]  ;;  %v8220_v33 = vsub.f32 %v7955_v57, %v6296_v35 }
 0x2f2   : > { %3480 = vst [vmem:[%s6505_s26 + $0x2c0] sm:$0xff] %v3352_v34  ;;  %3481 = vst [vmem:[%s6505_s26 + $0x2c8] sm:$0xff] %v3353_v23  ;;  %v3366_v12 = vadd.f32 %v8186_v37, %v2854_v44  ;;  %v2780_v46 = vmul.f32 %v2505_v36, %v8188_v39  ;;  %v2781_v51 = vmul.f32 %v2505_v36, %v8190_v50  ;;  %v8211_v39 = vld [vmem:[#allocation22_spill] sm:$0xff] }
 0x2f3   : > { %v3367_v26 = vadd.f32 %v8186_v37, %v2855_v41  ;;  %v2540_v15 = vpop.permute.xlu0 %2539  ;;  %v8204_v34 = vsub.f32 %v8203_v38, %v6243_v47  ;;  %v8207_v41 = vld [vmem:[#allocation196_spill] sm:$0xff]  ;;  %v8212_v50 = vsub.f32 %v7951_v30, %v6279_v20  ;;  %v8226_v57 = vld [vmem:[#allocation122_spill] sm:$0xff] }
 0x2f4   : > { %3494 = vst [vmem:[%s6505_s26 + $0x330] sm:$0xff] %v3366_v12  ;;  %v3292_v42 = vadd.f32 %v8191_v16, %v2780_v46  ;;  %v3293_v19 = vadd.f32 %v8191_v16, %v2781_v51  ;;  %v2794_v22 = vmul.f32 %v2540_v15, %v8192_v1  ;;  %v2795_v45 = vmul.f32 %v2540_v15, %v8193_v14  ;;  %v8209_v12 = vld [vmem:[#allocation112_spill] sm:$0xff]  ;;  %v8215_v14 = vld [vmem:[#allocation111_spill] sm:$0xff] }
 0x2f5   : > { %3495 = vst [vmem:[%s6505_s26 + $0x338] sm:$0xff] %v3367_v26  ;;  %v2665_v27 = vpop.permute.xlu1 %2664  ;;  %v8208_v36 = vsub.f32 %v8206_v43, %v8207_v41  ;;  %v8210_v26 = vsub.f32 %v8209_v12, %v8207_v41  ;;  %v8213_v15 = vsub.f32 %v7952_v28, %v6279_v20  ;;  %v8219_v28 = vld [vmem:[#allocation170_spill] sm:$0xff] }
 0x2f6   : > { %3420 = vst [vmem:[%s6505_s26 + $0xe0] sm:$0xff] %v3292_v42  ;;  %3421 = vst [vmem:[%s6505_s26 + $0xe8] sm:$0xff] %v3293_v19  ;;  %v3306_v21 = vadd.f32 %v8194_v7, %v2794_v22  ;;  %v3307_v52 = vadd.f32 %v8194_v7, %v2795_v45  ;;  %v2844_v54 = vmul.f32 %v2665_v27, %v8197_v11  ;;  %v8214_v19 = vld [vmem:[#allocation27_spill] sm:$0xff]  ;;  %v8217_v7 = vld [vmem:[#allocation113_spill] sm:$0xff] }
 0x2f7   : > { %v2845_v32 = vmul.f32 %v2665_v27, %v8199_v61  ;;  %v2700_v58 = vpop.permute.xlu0 %2699  ;;  %v8216_v45 = vsub.f32 %v8215_v14, %v6111_v49  ;;  %v8218_v30 = vsub.f32 %v8217_v7, %v6111_v49  ;;  %v8222_v61 = vld [vmem:[#allocation200_spill] sm:$0xff] }
 0x2f8   : > { %3434 = vst [vmem:[%s6505_s26 + $0x150] sm:$0xff] %v3306_v21  ;;  %3435 = vst [vmem:[%s6505_s26 + $0x158] sm:$0xff] %v3307_v52  ;;  %v3356_v18 = vadd.f32 %v8200_v55, %v2844_v54  ;;  %v2858_v0 = vmul.f32 %v2700_v58, %v8202_v40  ;;  %v2859_v23 = vmul.f32 %v2700_v58, %v8204_v34 }
 0x2f9   : > { %v3357_v17 = vadd.f32 %v8200_v55, %v2845_v32  ;;  %v2515_v5 = vpop.permute.xlu1 %2514  ;;  %v8221_v54 = vsub.f32 %v7956_v48, %v6296_v35  ;;  %v8223_v55 = vld [vmem:[#allocation120_spill] sm:$0xff] }
 0x2fa   : > { %3484 = vst [vmem:[%s6505_s26 + $0x2e0] sm:$0xff] %v3356_v18  ;;  %v3370_v44 = vadd.f32 %v8205_v62, %v2858_v0  ;;  %v3371_v60 = vadd.f32 %v8205_v62, %v2859_v23  ;;  %v2784_v37 = vmul.f32 %v2515_v5, %v8208_v36  ;;  %v2785_v63 = vmul.f32 %v2515_v5, %v8210_v26  ;;  %v8224_v18 = vld [vmem:[#allocation192_spill] sm:$0xff]  ;;  %v8229_v23 = vld [vmem:[#allocation121_spill] sm:$0xff] }
 0x2fb   : > { %3485 = vst [vmem:[%s6505_s26 + $0x2e8] sm:$0xff] %v3357_v17  ;;  %v2550_v47 = vpop.permute.xlu0 %2549  ;;  %v8225_v17 = vsub.f32 %v8223_v55, %v8224_v18  ;;  %v8227_v40 = vsub.f32 %v8226_v57, %v8224_v18  ;;  %v8228_v35 = vld [vmem:[#allocation24_spill] sm:$0xff]  ;;  %v8230_v5 = vld [vmem:[#allocation197_spill] sm:$0xff] }
 0x2fc   : > { %3498 = vst [vmem:[%s6505_s26 + $0x350] sm:$0xff] %v3370_v44  ;;  %3499 = vst [vmem:[%s6505_s26 + $0x358] sm:$0xff] %v3371_v60  ;;  %v3296_v46 = vadd.f32 %v8211_v39, %v2784_v37  ;;  %v3297_v29 = vadd.f32 %v8211_v39, %v2785_v63  ;;  %v2798_v51 = vmul.f32 %v2550_v47, %v8212_v50  ;;  %v8232_v60 = vld [vmem:[#allocation123_spill] sm:$0xff]  ;;  %v8234_v36 = vld [vmem:[#allocation184_spill] sm:$0xff] }
 0x2fd   : > { %v2799_v16 = vmul.f32 %v2550_v47, %v8213_v15  ;;  %v2675_v42 = vpop.permute.xlu1 %2674  ;;  %v8231_v62 = vsub.f32 %v8229_v23, %v8230_v5  ;;  %v8233_v43 = vsub.f32 %v8232_v60, %v8230_v5  ;;  %v8235_v63 = vld [vmem:[#allocation130_spill] sm:$0xff]  ;;  %v8239_v15 = vsub.f32 %v7961_v59, %v6331_v53  ;;  %v8254_v18 = vld [vmem:[#allocation212_spill] sm:$0xff] }
 0x2fe   : > { %3424 = vst [vmem:[%s6505_s26 + $0x100] sm:$0xff] %v3296_v46  ;;  %3425 = vst [vmem:[%s6505_s26 + $0x108] sm:$0xff] %v3297_v29  ;;  %v3310_v1 = vadd.f32 %v8214_v19, %v2798_v51  ;;  %v2848_v27 = vmul.f32 %v2675_v42, %v8216_v45  ;;  %v2849_v21 = vmul.f32 %v2675_v42, %v8218_v30  ;;  %v8237_v46 = vld [vmem:[#allocation132_spill] sm:$0xff]  ;;  %v8242_v45 = vld [vmem:[#allocation29_spill] sm:$0xff] }
 0x2ff   : > { %v3311_v22 = vadd.f32 %v8214_v19, %v2799_v16  ;;  %v2710_v20 = vpop.permute.xlu0 %2709  ;;  %v8236_v47 = vsub.f32 %v8235_v63, %v6223_v13  ;;  %v8238_v29 = vsub.f32 %v8237_v46, %v6223_v13  ;;  %v8240_v42 = vsub.f32 %v7962_v8, %v6331_v53  ;;  %v8243_v30 = vld [vmem:[#allocation131_spill] sm:$0xff]  ;;  %v8244_v59 = vld [vmem:[#allocation198_spill] sm:$0xff]  ;;  %v8260_v5 = vld [vmem:[#allocation28_spill] sm:$0xff] }
 0x300   : > { %3438 = vst [vmem:[%s6505_s26 + $0x170] sm:$0xff] %v3310_v1  ;;  %v3360_v52 = vadd.f32 %v8219_v28, %v2848_v27  ;;  %v3361_v25 = vadd.f32 %v8219_v28, %v2849_v21  ;;  %v2862_v11 = vmul.f32 %v2710_v20, %v8220_v33  ;;  %v2863_v49 = vmul.f32 %v2710_v20, %v8221_v54  ;;  %v8241_v1 = vld [vmem:[#allocation26_spill] sm:$0xff]  ;;  %v8246_v28 = vld [vmem:[#allocation133_spill] sm:$0xff]  ;;  %v8249_v33 = vld [vmem:[#allocation95_spill] sm:$0xff] }
 0x301   : > { %3439 = vst [vmem:[%s6505_s26 + $0x178] sm:$0xff] %v3311_v22  ;;  %v2525_v9 = vpop.permute.xlu1 %2524  ;;  %v8245_v21 = vsub.f32 %v8243_v30, %v8244_v59  ;;  %v8247_v53 = vsub.f32 %v8246_v28, %v8244_v59 }
 0x302   : > { %3488 = vst [vmem:[%s6505_s26 + $0x300] sm:$0xff] %v3360_v52  ;;  %3489 = vst [vmem:[%s6505_s26 + $0x308] sm:$0xff] %v3361_v25  ;;  %v3374_v32 = vadd.f32 %v8222_v61, %v2862_v11  ;;  %v3375_v58 = vadd.f32 %v8222_v61, %v2863_v49  ;;  %v2788_v31 = vmul.f32 %v2525_v9, %v8225_v17  ;;  %v8248_v25 = vld [vmem:[#allocation165_spill] sm:$0xff]  ;;  %v8251_v49 = vld [vmem:[#allocation167_spill] sm:$0xff] }
 0x303   : > { %v2789_v0 = vmul.f32 %v2525_v9, %v8227_v40  ;;  %v8250_v11 = vsub.f32 %v8248_v25, %v8249_v33  ;;  %v8252_v9 = vsub.f32 %v8251_v49, %v8249_v33  ;;  %v8255_v40 = vld [vmem:[#allocation144_spill] sm:$0xff]  ;;  %v8279_v33 = vld [vmem:[#allocation161_spill] sm:$0xff] }
 0x304   : > { %3502 = vst [vmem:[%s6505_s26 + $0x370] sm:$0xff] %v3374_v32  ;;  %3503 = vst [vmem:[%s6505_s26 + $0x378] sm:$0xff] %v3375_v58  ;;  %v3300_v48 = vadd.f32 %v8228_v35, %v2788_v31  ;;  %v8253_v32 = vld [vmem:[#allocation199_spill] sm:$0xff] }
 0x305   : > { %v3301_v38 = vadd.f32 %v8228_v35, %v2789_v0  ;;  %v2685_v34 = vpop.permute.xlu1 %2684  ;;  %v8256_v0 = vld [vmem:[#allocation205_spill] sm:$0xff] }
 0x306   : > { %3428 = vst [vmem:[%s6505_s26 + $0x120] sm:$0xff] %v3300_v48  ;;  %v2852_v44 = vmul.f32 %v2685_v34, %v8231_v62  ;;  %v2853_v41 = vmul.f32 %v2685_v34, %v8233_v43  ;;  %v2560_v51 = vpop.permute.xlu0 %2559  ;;  %v8257_v35 = vsub.f32 %v8255_v40, %v8256_v0  ;;  %v8261_v43 = vld [vmem:[#allocation145_spill] sm:$0xff] }
 0x307   : > { %3429 = vst [vmem:[%s6505_s26 + $0x128] sm:$0xff] %v3301_v38  ;;  %v2802_v16 = vmul.f32 %v2560_v51, %v8239_v15  ;;  %v2803_v19 = vmul.f32 %v2560_v51, %v8240_v42  ;;  %v8258_v38 = vld [vmem:[#allocation146_spill] sm:$0xff]  ;;  %v8268_v51 = vld [vmem:[#allocation96_spill] sm:$0xff] }
 0x308   : > { %v3364_v37 = vadd.f32 %v8234_v36, %v2852_v44  ;;  %v3365_v12 = vadd.f32 %v8234_v36, %v2853_v41  ;;  %v8259_v34 = vsub.f32 %v8258_v38, %v8256_v0  ;;  %v8262_v41 = vld [vmem:[#allocation94_spill] sm:$0xff]  ;;  %v8270_v42 = vld [vmem:[#allocation160_spill] sm:$0xff] }
 0x309   : > { %v2535_v26 = vpop.permute.xlu1 %2534  ;;  %v3314_v27 = vadd.f32 %v8242_v45, %v2802_v16  ;;  %v3315_v7 = vadd.f32 %v8242_v45, %v2803_v19  ;;  %v8263_v36 = vsub.f32 %v8261_v43, %v8262_v41  ;;  %v8271_v19 = vsub.f32 %v8270_v42, %v8268_v51 }
 0x30a   : > { %3492 = vst [vmem:[%s6505_s26 + $0x320] sm:$0xff] %v3364_v37  ;;  %3493 = vst [vmem:[%s6505_s26 + $0x328] sm:$0xff] %v3365_v12  ;;  %v2792_v39 = vmul.f32 %v2535_v26, %v8236_v47  ;;  %v2793_v50 = vmul.f32 %v2535_v26, %v8238_v29  ;;  %v2720_v52 = vpop.permute.xlu0 %2719  ;;  %v8264_v12 = vld [vmem:[#allocation147_spill] sm:$0xff] }
 0x30b   : > { %3442 = vst [vmem:[%s6505_s26 + $0x190] sm:$0xff] %v3314_v27  ;;  %3443 = vst [vmem:[%s6505_s26 + $0x198] sm:$0xff] %v3315_v7  ;;  %v2866_v54 = vmul.f32 %v2720_v52, %v8250_v11  ;;  %v2867_v61 = vmul.f32 %v2720_v52, %v8252_v9  ;;  %v8265_v26 = vsub.f32 %v8264_v12, %v8262_v41  ;;  %v8266_v47 = vld [vmem:[#allocation211_spill] sm:$0xff]  ;;  %v8293_v41 = vld [vmem:[#allocation173_spill] sm:$0xff] }
 0x30c   : > { %v3304_v22 = vadd.f32 %v8241_v1, %v2792_v39  ;;  %v3305_v14 = vadd.f32 %v8241_v1, %v2793_v50  ;;  %v8267_v50 = vld [vmem:[#allocation158_spill] sm:$0xff]  ;;  %v8273_v27 = vsub.f32 %v7973_v4, %v6375_v6 }
 0x30d   : > { %v2695_v13 = vpop.permute.xlu1 %2694  ;;  %v3378_v17 = vadd.f32 %v8254_v18, %v2866_v54  ;;  %v3379_v31 = vadd.f32 %v8254_v18, %v2867_v61  ;;  %v8269_v15 = vsub.f32 %v8267_v50, %v8268_v51  ;;  %v8281_v54 = vld [vmem:[#allocation179_spill] sm:$0xff]  ;;  %v8283_v61 = vld [vmem:[#allocation181_spill] sm:$0xff]  ;;  %v8299_v51 = vld [vmem:[#allocation186_spill] sm:$0xff] }
 0x30e   : > { %3432 = vst [vmem:[%s6505_s26 + $0x140] sm:$0xff] %v3304_v22  ;;  %3433 = vst [vmem:[%s6505_s26 + $0x148] sm:$0xff] %v3305_v14  ;;  %v2856_v20 = vmul.f32 %v2695_v13, %v8245_v21  ;;  %v2857_v8 = vmul.f32 %v2695_v13, %v8247_v53  ;;  %v8272_v14 = vsub.f32 %v7972_v24, %v6375_v6  ;;  %v8274_v13 = vld [vmem:[#allocation38_spill] sm:$0xff]  ;;  %v8275_v21 = vld [vmem:[#allocation39_spill] sm:$0xff] }
 0x30f   : > { %3506 = vst [vmem:[%s6505_s26 + $0x390] sm:$0xff] %v3378_v17  ;;  %3507 = vst [vmem:[%s6505_s26 + $0x398] sm:$0xff] %v3379_v31  ;;  %v8277_v24 = vld [vmem:[#allocation207_spill] sm:$0xff]  ;;  %v8282_v49 = vsub.f32 %v8281_v54, %v6390_v3  ;;  %v8286_v31 = vld [vmem:[#allocation214_spill] sm:$0xff] }
 0x310   : > { %v3368_v58 = vadd.f32 %v8253_v32, %v2856_v20  ;;  %v3369_v55 = vadd.f32 %v8253_v32, %v2857_v8  ;;  %v8276_v8 = vld [vmem:[#allocation159_spill] sm:$0xff]  ;;  %v8280_v6 = vsub.f32 %v8279_v33, %v8277_v24  ;;  %v8284_v32 = vsub.f32 %v8283_v61, %v6390_v3  ;;  %v8314_v54 = vld [vmem:[#allocation189_spill] sm:$0xff] }
 0x311   : > { %v2545_v57 = vpop.permute.xlu1 %2544  ;;  %v8278_v52 = vsub.f32 %v8276_v8, %v8277_v24  ;;  %v8310_v8 = vld [vmem:[#allocation49_spill] sm:$0xff]  ;;  %v8311_v33 = vld [vmem:[#allocation187_spill] sm:$0xff] }
 0x312   : > { %3496 = vst [vmem:[%s6505_s26 + $0x340] sm:$0xff] %v3368_v58  ;;  %3497 = vst [vmem:[%s6505_s26 + $0x348] sm:$0xff] %v3369_v55  ;;  %v2796_v48 = vmul.f32 %v2545_v57, %v8257_v35  ;;  %v2797_v23 = vmul.f32 %v2545_v57, %v8259_v34  ;;  %v8285_v55 = vld [vmem:[#allocation213_spill] sm:$0xff]  ;;  %v8287_v35 = vld [vmem:[#allocation172_spill] sm:$0xff] }
 0x313   : > { %v8290_v34 = vld [vmem:[#allocation174_spill] sm:$0xff] }
 0x314   : > { %v3308_v62 = vadd.f32 %v8260_v5, %v2796_v48  ;;  %v3309_v44 = vadd.f32 %v8260_v5, %v2797_v23  ;;  %v8288_v48 = vld [vmem:[#allocation168_spill] sm:$0xff] }
 0x315   : > { %v2705_v60 = vpop.permute.xlu1 %2704  ;;  %v8289_v38 = vsub.f32 %v8287_v35, %v8288_v48  ;;  %v8291_v23 = vsub.f32 %v8290_v34, %v8288_v48  ;;  %v8322_v48 = vld [vmem:[#allocation216_spill] sm:$0xff] }
 0x316   : > { %3436 = vst [vmem:[%s6505_s26 + $0x160] sm:$0xff] %v3308_v62  ;;  %3437 = vst [vmem:[%s6505_s26 + $0x168] sm:$0xff] %v3309_v44  ;;  %v2860_v37 = vmul.f32 %v2705_v60, %v8263_v36  ;;  %v2861_v63 = vmul.f32 %v2705_v60, %v8265_v26  ;;  %v2570_v22 = vpop.permute.xlu0 %2569  ;;  %v8292_v62 = vld [vmem:[#allocation48_spill] sm:$0xff]  ;;  %v8294_v36 = vld [vmem:[#allocation182_spill] sm:$0xff] }
 0x317   : > { %v2806_v45 = vmul.f32 %v2570_v22, %v8272_v14  ;;  %v2807_v7 = vmul.f32 %v2570_v22, %v8273_v27  ;;  %v8296_v26 = vld [vmem:[#allocation175_spill] sm:$0xff] }
 0x318   : > { %v3372_v39 = vadd.f32 %v8266_v47, %v2860_v37  ;;  %v3373_v46 = vadd.f32 %v8266_v47, %v2861_v63  ;;  %v8295_v37 = vsub.f32 %v8293_v41, %v8294_v36  ;;  %v8297_v63 = vsub.f32 %v8296_v26, %v8294_v36  ;;  %v8305_v27 = vld [vmem:[#allocation135_spill] sm:$0xff] }
 0x319   : > { %v2555_v29 = vpop.permute.xlu1 %2554  ;;  %v3318_v20 = vadd.f32 %v8275_v21, %v2806_v45  ;;  %v3319_v28 = vadd.f32 %v8275_v21, %v2807_v7  ;;  %v8304_v45 = vld [vmem:[#allocation191_spill] sm:$0xff] }
 0x31a   : > { %3500 = vst [vmem:[%s6505_s26 + $0x360] sm:$0xff] %v3372_v39  ;;  %3501 = vst [vmem:[%s6505_s26 + $0x368] sm:$0xff] %v3373_v46  ;;  %v2800_v16 = vmul.f32 %v2555_v29, %v8269_v15  ;;  %v2801_v1 = vmul.f32 %v2555_v29, %v8271_v19  ;;  %v2730_v11 = vpop.permute.xlu0 %2729  ;;  %v8298_v39 = vld [vmem:[#allocation215_spill] sm:$0xff]  ;;  %v8300_v15 = vld [vmem:[#allocation178_spill] sm:$0xff]  ;;  %v8306_v7 = vsub.f32 %v8304_v45, %v8305_v27 }
 0x31b   : > { %3446 = vst [vmem:[%s6505_s26 + $0x1b0] sm:$0xff] %v3318_v20  ;;  %3447 = vst [vmem:[%s6505_s26 + $0x1b8] sm:$0xff] %v3319_v28  ;;  %v2870_v9 = vmul.f32 %v2730_v11, %v8282_v49  ;;  %v2871_v58 = vmul.f32 %v2730_v11, %v8284_v32  ;;  %v8302_v19 = vld [vmem:[#allocation188_spill] sm:$0xff]  ;;  %v8309_v20 = vld [vmem:[#allocation58_spill] sm:$0xff] }
 0x31c   : > { %v3312_v30 = vadd.f32 %v8274_v13, %v2800_v16  ;;  %v3313_v59 = vadd.f32 %v8274_v13, %v2801_v1  ;;  %v8301_v16 = vsub.f32 %v8299_v51, %v8300_v15  ;;  %v8303_v1 = vsub.f32 %v8302_v19, %v8300_v15  ;;  %v8316_v32 = vld [vmem:[#allocation193_spill] sm:$0xff]  ;;  %v8332_v51 = vld [vmem:[#allocation202_spill] sm:$0xff]  ;;  %v8333_v15 = vld [vmem:[#allocation151_spill] sm:$0xff] }
 0x31d   : > { %v2715_v53 = vpop.permute.xlu1 %2714  ;;  %v3382_v57 = vadd.f32 %v8286_v31, %v2870_v9  ;;  %v3383_v40 = vadd.f32 %v8286_v31, %v2871_v58  ;;  %v8317_v58 = vld [vmem:[#allocation149_spill] sm:$0xff]  ;;  %v8335_v19 = vld [vmem:[#allocation204_spill] sm:$0xff] }
 0x31e   : > { %3440 = vst [vmem:[%s6505_s26 + $0x180] sm:$0xff] %v3312_v30  ;;  %3441 = vst [vmem:[%s6505_s26 + $0x188] sm:$0xff] %v3313_v59  ;;  %v2864_v25 = vmul.f32 %v2715_v53, %v8278_v52  ;;  %v2865_v4 = vmul.f32 %v2715_v53, %v8280_v6  ;;  %v8307_v30 = vld [vmem:[#allocation194_spill] sm:$0xff]  ;;  %v8337_v45 = vld [vmem:[#allocation208_spill] sm:$0xff] }
 0x31f   : > { %3510 = vst [vmem:[%s6505_s26 + $0x3b0] sm:$0xff] %v3382_v57  ;;  %3511 = vst [vmem:[%s6505_s26 + $0x3b8] sm:$0xff] %v3383_v40  ;;  %v8308_v59 = vsub.f32 %v8307_v30, %v8305_v27  ;;  %v8312_v6 = vld [vmem:[#allocation138_spill] sm:$0xff]  ;;  %v8321_v40 = vld [vmem:[#allocation217_spill] sm:$0xff] }
 0x320   : > { %v3376_v18 = vadd.f32 %v8285_v55, %v2864_v25  ;;  %v3377_v17 = vadd.f32 %v8285_v55, %v2865_v4  ;;  %v8313_v4 = vsub.f32 %v8311_v33, %v8312_v6  ;;  %v8315_v49 = vsub.f32 %v8314_v54, %v8312_v6  ;;  %v8338_v27 = vld [vmem:[#allocation153_spill] sm:$0xff]  ;;  %v8340_v30 = vld [vmem:[#allocation210_spill] sm:$0xff] }
 0x321   : > { %v2565_v0 = vpop.permute.xlu1 %2564  ;;  %v8318_v55 = vsub.f32 %v8316_v32, %v8317_v58 }
 0x322   : > { %3504 = vst [vmem:[%s6505_s26 + $0x380] sm:$0xff] %v3376_v18  ;;  %3505 = vst [vmem:[%s6505_s26 + $0x388] sm:$0xff] %v3377_v17  ;;  %v2804_v3 = vmul.f32 %v2565_v0, %v8289_v38  ;;  %v2805_v5 = vmul.f32 %v2565_v0, %v8291_v23  ;;  %v8319_v17 = vld [vmem:[#allocation195_spill] sm:$0xff]  ;;  %v8323_v23 = vsub.f32 %v7991_v2, %v6451_v56 }
 0x323   : > { %v8320_v31 = vsub.f32 %v8319_v17, %v8317_v58 }
 0x324   : > { %v3316_v44 = vadd.f32 %v8292_v62, %v2804_v3  ;;  %v3317_v60 = vadd.f32 %v8292_v62, %v2805_v5  ;;  %v8324_v62 = vsub.f32 %v7992_v10, %v6451_v56  ;;  %v8331_v56 = vld [vmem:[#allocation59_spill] sm:$0xff] }
 0x325   : > { %v2725_v43 = vpop.permute.xlu1 %2724 }
 0x326   : > { %3444 = vst [vmem:[%s6505_s26 + $0x1a0] sm:$0xff] %v3316_v44  ;;  %3445 = vst [vmem:[%s6505_s26 + $0x1a8] sm:$0xff] %v3317_v60  ;;  %v2868_v12 = vmul.f32 %v2725_v43, %v8295_v37  ;;  %v2869_v47 = vmul.f32 %v2725_v43, %v8297_v63  ;;  %v2580_v14 = vpop.permute.xlu0 %2579  ;;  %v8325_v43 = vld [vmem:[#allocation68_spill] sm:$0xff]  ;;  %v8326_v37 = vld [vmem:[#allocation206_spill] sm:$0xff] }
 0x327   : > { %v2810_v13 = vmul.f32 %v2580_v14, %v8306_v7  ;;  %v2811_v21 = vmul.f32 %v2580_v14, %v8308_v59  ;;  %v8339_v7 = vsub.f32 %v8337_v45, %v8338_v27  ;;  %v8341_v59 = vsub.f32 %v8340_v30, %v8338_v27 }
 0x328   : > { %v3380_v46 = vadd.f32 %v8298_v39, %v2868_v12  ;;  %v3381_v29 = vadd.f32 %v8298_v39, %v2869_v47  ;;  %v8327_v12 = vld [vmem:[#allocation152_spill] sm:$0xff]  ;;  %v8329_v47 = vld [vmem:[#allocation209_spill] sm:$0xff] }
 0x329   : > { %v2575_v50 = vpop.permute.xlu1 %2574  ;;  %v3322_v24 = vadd.f32 %v8310_v8, %v2810_v13  ;;  %v3323_v52 = vadd.f32 %v8310_v8, %v2811_v21  ;;  %v8328_v26 = vsub.f32 %v8326_v37, %v8327_v12  ;;  %v8330_v39 = vsub.f32 %v8329_v47, %v8327_v12 }
 0x32a   : > { %3508 = vst [vmem:[%s6505_s26 + $0x3a0] sm:$0xff] %v3380_v46  ;;  %3509 = vst [vmem:[%s6505_s26 + $0x3a8] sm:$0xff] %v3381_v29  ;;  %v2808_v42 = vmul.f32 %v2575_v50, %v8301_v16  ;;  %v2809_v22 = vmul.f32 %v2575_v50, %v8303_v1  ;;  %v2740_v61 = vpop.permute.xlu0 %2739  ;;  %v8334_v16 = vsub.f32 %v8332_v51, %v8333_v15 }
 0x32b   : > { %3450 = vst [vmem:[%s6505_s26 + $0x1d0] sm:$0xff] %v3322_v24  ;;  %3451 = vst [vmem:[%s6505_s26 + $0x1d8] sm:$0xff] %v3323_v52  ;;  %v2874_v18 = vmul.f32 %v2740_v61, %v8318_v55  ;;  %v2875_v57 = vmul.f32 %v2740_v61, %v8320_v31  ;;  %v8336_v1 = vsub.f32 %v8335_v19, %v8333_v15 }
 0x32c   : > { %v3320_v28 = vadd.f32 %v8309_v20, %v2808_v42  ;;  %v3321_v53 = vadd.f32 %v8309_v20, %v2809_v22 }
 0x32d   : > { %v2735_v25 = vpop.permute.xlu1 %2734  ;;  %v3386_v38 = vadd.f32 %v8322_v48, %v2874_v18  ;;  %v3387_v3 = vadd.f32 %v8322_v48, %v2875_v57 }
 0x32e   : > { %3448 = vst [vmem:[%s6505_s26 + $0x1c0] sm:$0xff] %v3320_v28  ;;  %3449 = vst [vmem:[%s6505_s26 + $0x1c8] sm:$0xff] %v3321_v53  ;;  %v2872_v11 = vmul.f32 %v2735_v25, %v8313_v4  ;;  %v2873_v9 = vmul.f32 %v2735_v25, %v8315_v49 }
 0x32f   : > { %3514 = vst [vmem:[%s6505_s26 + $0x3d0] sm:$0xff] %v3386_v38  ;;  %3515 = vst [vmem:[%s6505_s26 + $0x3d8] sm:$0xff] %v3387_v3 }
 0x330   : > { %v3384_v0 = vadd.f32 %v8321_v40, %v2872_v11  ;;  %v3385_v35 = vadd.f32 %v8321_v40, %v2873_v9 }
 0x332   : > { %3512 = vst [vmem:[%s6505_s26 + $0x3c0] sm:$0xff] %v3384_v0  ;;  %3513 = vst [vmem:[%s6505_s26 + $0x3c8] sm:$0xff] %v3385_v35 }
 0x334   : > { %v2585_v34 = vpop.permute.xlu1 %2584 }
 0x335   : > { %v2812_v5 = vmul.f32 %v2585_v34, %v8323_v23  ;;  %v2813_v44 = vmul.f32 %v2585_v34, %v8324_v62 }
 0x336   : > { %v2590_v60 = vpop.permute.xlu0 %2589 }
 0x337   : > { %v3324_v41 = vadd.f32 %v8325_v43, %v2812_v5  ;;  %v3325_v36 = vadd.f32 %v8325_v43, %v2813_v44  ;;  %v2814_v63 = vmul.f32 %v2590_v60, %v8328_v26  ;;  %v2815_v2 = vmul.f32 %v2590_v60, %v8330_v39 }
 0x338   : > { %v2745_v46 = vpop.permute.xlu1 %2744 }
 0x339   : > { %3452 = vst [vmem:[%s6505_s26 + $0x1e0] sm:$0xff] %v3324_v41  ;;  %3453 = vst [vmem:[%s6505_s26 + $0x1e8] sm:$0xff] %v3325_v36  ;;  %v3326_v10 = vadd.f32 %v8331_v56, %v2814_v63  ;;  %v3327_v29 = vadd.f32 %v8331_v56, %v2815_v2  ;;  %v2876_v42 = vmul.f32 %v2745_v46, %v8334_v16 }
 0x33a   : > { %v2750_v50 = vpop.permute.xlu0 %2749  ;;  %v2877_v22 = vmul.f32 %v2745_v46, %v8336_v1 }
 0x33b   : > { %3454 = vst [vmem:[%s6505_s26 + $0x1f0] sm:$0xff] %v3326_v10  ;;  %3455 = vst [vmem:[%s6505_s26 + $0x1f8] sm:$0xff] %v3327_v29  ;;  %v2878_v13 = vmul.f32 %v2750_v50, %v8339_v7  ;;  %v2879_v21 = vmul.f32 %v2750_v50, %v8341_v59 }
 0x33c   : > { %v3257_v14 = vpop.permute.xlu1 %3256 }
 0x33d   : > { %v3388_v20 = vadd.f32 %v3257_v14, %v2876_v42  ;;  %v3389_v28 = vadd.f32 %v3257_v14, %v2877_v22 }
 0x33f   : > { %3516 = vst [vmem:[%s6505_s26 + $0x3e0] sm:$0xff] %v3388_v20  ;;  %3517 = vst [vmem:[%s6505_s26 + $0x3e8] sm:$0xff] %v3389_v28 }
 0x340   : > { %v3262_v53 = vpop.permute.xlu0 %3261 }
 0x341   : > { %v3390_v8 = vadd.f32 %v3262_v53, %v2878_v13  ;;  %v3391_v24 = vadd.f32 %v3262_v53, %v2879_v21 }
 0x343   : > { %3518 = vst [vmem:[%s6505_s26 + $0x3f0] sm:$0xff] %v3390_v8  ;;  %3519 = vst [vmem:[%s6505_s26 + $0x3f8] sm:$0xff] %v3391_v24 }
 0x344   : > { %4039 = shalt.err (!%p4036_p3)
}
 0x345   : > { %s4040_s15 = scalar_lea.hbm %s7136_s9, 16384  ;;  %s4044_s23 = scalar_lea.hbm %s7192_s5, 32768 }
 0x346   : > { %p4041_p4 = scmp.ne.s32.totalorder %s7136_s9, %s4040_s15  ;;  %p4045_p9 = scmp.lt.u32.totalorder %s7136_s9, %s7192_s5 }
 0x347   : > { %p4046_p10 = scmp.lt.u32.totalorder %s4044_s23, %s4040_s15  ;;  %p4048_p12 = scmp.lt.u32.totalorder %s4040_s15, %s7136_s9 }
 0x348   : > { %p4042_p7 = pnand %p4041_p4, %p4162_p5 }
 0x349   : > { %p4047_p11 = por %p4046_p10, %p4045_p9 }
 0x34a   : > { %p4043_p8 = pneg %p4042_p7 }
 0x34b   : > { %p4049_p13 = por %p4048_p12, %p4047_p11 }
 0x34d   : > { %p4050_p0 = pnand %p4049_p13, %p4043_p8 }
 0x34f   : > { %4053 = shalt.err (!%p4050_p0)
}
 0x350   : > { %s4092_s26 = smov 256   ;;  %s4093_s11 = smov 16  }
 0x351   : > { %3758 = dma.vmem_to_hbm [thread:$0]  (%p4162_p5), %s7138_s6, 16384, %s7136_s9, %s7146_s22, %s4092_s26, %s4092_s26, %s4093_s11  }
 0x352 PF: > { %p3764_p1 = scmp.ge.s32.totalorder %s4088_s21, 2  ;;  %s3550_s7 = sand.u32 1, %s4076_s18  }
 0x353   : > { %s3551_s8 = scalar_lea.sflag [#allocation3], %s3550_s7 }
 0x354   : > { %p3761_p2 = pnand %p3764_p1, %p4166_p6 }
 0x356   : > { %4071 = dma.done.wait (!%p3761_p2), %s3551_s8, 16384  }
 0x357   : > { %4073 = vsyncadd (!%p3761_p2), %s3551_s8, 4294950912  ;;  %p15_p3 = scmp.ge.s32.totalorder %s4149_s24, 4   ;;  %s8342_s18 = smov %s4080_s19 }
 0x358   : > { %s8343_s19 = smov %s4084_s20  ;;  %s8344_s20 = smov %s4160_s27 }
 0x359   : > { %s8345_s21 = smov %s4149_s24  ;;  %17 = sbr.rel (!%p15_p3) target bundleno = 3 (0x3), region = 81 }
 0x360   :  { %3556 = vsyncpa [#allocation3], 1 }
 0x361   :  { %3558 = vsyncpa [#allocation3 + $0x1], 1 }

</bundles_post_ra>
